<compile_context>
chip_gen: v7x
topology: tpu7x:2x2x1
jax: 0.10.0
libtpu: 0.0.40
codegen_flags: <defaults>
</compile_context>

<pallas_src>
import functools

import jax
import jax.numpy as jnp
from jax.experimental import pallas as pl
from jax.experimental.pallas import tpu as pltpu

EPS = 1e-5
LANE = 128
K_QUANT = 16  # bf16 sublane packing quantum


def _round_up(x, m):
    return ((x + m - 1) // m) * m


def _tile_m(m, max_tile=512):
    """Row tile for the [M, C] kernels.

    v5e/v6e have a single TensorCore, so splitting M just to get >1 grid step
    buys nothing and only adds ~0.35us/step pipeline overhead: take the whole
    M (or the largest multiple-of-8 divisor <= max_tile).
    """
    # TODO(synk): on v7x, split M in two and tag that axis CORE_PARALLEL (or use
    # core_map) to shard across the two TensorCores once M is large enough.
    if m <= max_tile:
        return m
    for tm in range(max_tile, 7, -8):
        if m % tm == 0:
            return tm
    return m  # not reached at these shapes


# ----------------------------- Pallas kernels ------------------------------ #
def _conv_stats_kernel(p_ref, w_ref, o_ref, stat_ref):
    # conv-as-GEMM (bf16 x bf16 -> f32 accumulate) + per-tile BN statistics.
    acc = jnp.dot(p_ref[...], w_ref[...], preferred_element_type=jnp.float32)
    o_ref[...] = acc.astype(o_ref.dtype)            # bf16, lane-dense store
    s = jnp.sum(acc, axis=0, keepdims=True)         # [1, C] column sums (f32)
    q = jnp.sum(acc * acc, axis=0, keepdims=True)   # [1, C] column sums of squares
    stat_ref[...] = jnp.concatenate([s, q], axis=0)[None]   # [1, 2, C]


def _bn_relu_kernel(x_ref, scale_ref, shift_ref, o_ref):
    # fused affine BatchNorm (batch-stat scale/shift precomputed) + ReLU
    x = x_ref[...].astype(jnp.float32)
    o_ref[...] = jnp.maximum(x * scale_ref[...] + shift_ref[...], 0.0).astype(
        o_ref.dtype
    )


def conv_stats_gemm(patches, w_mat):
    """patches [M,K] bf16, w_mat [K,C] bf16 -> (conv [M,C] bf16, stats [G,2,C] f32)."""
    M, K = patches.shape
    C = w_mat.shape[1]
    tm = _tile_m(M)
    G = M // tm
    return pl.pallas_call(
        _conv_stats_kernel,
        out_shape=(
            jax.ShapeDtypeStruct((M, C), jnp.bfloat16),
            jax.ShapeDtypeStruct((G, 2, C), jnp.float32),
        ),
        grid=(G,),
        in_specs=[
            pl.BlockSpec((tm, K), lambda i: (i, 0)),
            pl.BlockSpec((K, C), lambda i: (0, 0)),
        ],
        out_specs=(
            pl.BlockSpec((tm, C), lambda i: (i, 0)),
            pl.BlockSpec((1, 2, C), lambda i: (i, 0, 0)),
        ),
        compiler_params=pltpu.CompilerParams(dimension_semantics=("parallel",)),
    )(patches, w_mat)


def bn_relu(x, scale, shift):
    """x: [M, C] bf16, scale/shift: [1, C] f32 -> [M, C] bf16."""
    M, C = x.shape
    tm = _tile_m(M)
    return pl.pallas_call(
        _bn_relu_kernel,
        out_shape=jax.ShapeDtypeStruct((M, C), jnp.bfloat16),
        grid=(M // tm,),
        in_specs=[
            pl.BlockSpec((tm, C), lambda i: (i, 0)),
            pl.BlockSpec((1, C), lambda i: (0, 0)),
            pl.BlockSpec((1, C), lambda i: (0, 0)),
        ],
        out_specs=pl.BlockSpec((tm, C), lambda i: (i, 0)),
        compiler_params=pltpu.CompilerParams(dimension_semantics=("parallel",)),
    )(x, scale, shift)


# ------------------------------- JAX glue ---------------------------------- #
def im2col(x_nhwc, kh, kw, stride, pad):
    """Extract conv patches (bf16). Returns ([N*Ho*Wo, kh*kw*C], Ho, Wo)."""
    # TODO(synk): at realistic batch/spatial sizes, fold im2col into the conv
    # kernel via a (kh*kw) reduction grid axis over shifted windows of the
    # padded NHWC input instead of materializing the patch matrix in HBM.
    N, H, W, C = x_nhwc.shape
    xp = jnp.pad(x_nhwc, ((0, 0), (pad, pad), (pad, pad), (0, 0)))
    Ho = (H + 2 * pad - kh) // stride + 1
    Wo = (W + 2 * pad - kw) // stride + 1
    cols = []
    for i in range(kh):
        for j in range(kw):
            cols.append(
                xp[:, i : i + stride * Ho : stride, j : j + stride * Wo : stride, :]
            )
    patches = jnp.stack(cols, axis=3)  # [N, Ho, Wo, kh*kw, C]
    return patches.reshape(N * Ho * Wo, kh * kw * C), Ho, Wo


def encoder_module(x_nhwc, w, gamma, beta, *, stride, kernel, pad):
    """One EncoderModule: Conv2d (bias cancelled by train-mode BN) -> BN -> ReLU."""
    N = x_nhwc.shape[0]
    cout, cin = w.shape[0], w.shape[1]
    kh = kw = kernel

    if kernel == 1 and stride == 1 and pad == 0:
        # 1x1 conv: patches are just the flattened pixels, no im2col.
        Ho, Wo = x_nhwc.shape[1], x_nhwc.shape[2]
        patches = x_nhwc.reshape(N * Ho * Wo, cin)
    else:
        patches, Ho, Wo = im2col(x_nhwc, kh, kw, stride, pad)
    M, K = patches.shape

    # weight (Cout, Cin, kh, kw) -> GEMM layout (kh*kw*Cin, Cout_pad).  Only the
    # OUTPUT channels are lane-padded (dense full-width stores); the padding is
    # stripped before the next layer so it never inflates the next K.
    cout_pad = _round_up(cout, LANE)
    w_mat = jnp.transpose(w, (2, 3, 1, 0)).reshape(kh * kw * cin, cout)
    w_mat = jnp.pad(w_mat, ((0, 0), (0, cout_pad - cout)))

    # pad the contraction dim to the bf16 sublane quantum (only the 1x1 Cin=3 layer)
    k_pad = _round_up(K, K_QUANT)
    if k_pad != K:
        patches = jnp.pad(patches, ((0, 0), (0, k_pad - K)))
        w_mat = jnp.pad(w_mat, ((0, k_pad - K), (0, 0)))

    # bf16 MXU operands, f32 accumulation; stats and BN scale/shift stay in f32.
    conv, stats = conv_stats_gemm(
        patches.astype(jnp.bfloat16), w_mat.astype(jnp.bfloat16)
    )

    # train-mode BatchNorm: biased batch statistics over (N, Ho, Wo), computed
    # from the per-tile sums the conv kernel emitted (tiny [G, 2, C] reduce).
    col_sum = jnp.sum(stats[:, 0, :], axis=0)
    col_ssq = jnp.sum(stats[:, 1, :], axis=0)
    mean = col_sum / M
    var = jnp.maximum(col_ssq / M - mean * mean, 0.0)
    gamma_p = jnp.pad(gamma, (0, cout_pad - cout))
    beta_p = jnp.pad(beta, (0, cout_pad - cout))
    scale = gamma_p / jnp.sqrt(var + EPS)
    shift = beta_p - mean * scale

    out = bn_relu(conv, scale.reshape(1, -1), shift.reshape(1, -1))  # [M, Cout_pad]
    # strip the lane padding per layer so the next layer's K uses the real cout.
    return out.reshape(N, Ho, Wo, cout_pad)[..., :cout]


def encoder_forward(x_nchw, weights, *, configs, n_neurons_in_middle_layer):
    x = jnp.transpose(x_nchw, (0, 2, 3, 1)).astype(jnp.bfloat16)  # NCHW -> NHWC bf16
    for wts, cfg in zip(weights, configs):
        x = encoder_module(
            x,
            wts["w"],
            wts["gamma"],
            wts["beta"],
            stride=cfg["stride"],
            kernel=cfg["kernel"],
            pad=cfg["pad"],
        )
    # back to NCHW so the flatten order matches torch's .view(-1, n)
    x_nchw_out = jnp.transpose(x, (0, 3, 1, 2)).astype(jnp.float32)
    return x_nchw_out.reshape(-1, n_neurons_in_middle_layer)


def init_encoder_params(key, color_channels, pooling_kernels):
    # Static layer configs stay Python-side (NOT passed through jit as arrays).
    configs = [
        dict(cin=color_channels, cout=32, stride=1, kernel=1, pad=0),
        dict(cin=32, cout=64, stride=1, kernel=3, pad=1),
        dict(cin=64, cout=128, stride=pooling_kernels[0], kernel=3, pad=1),
        dict(cin=128, cout=256, stride=pooling_kernels[1], kernel=3, pad=1),
    ]
    weights = []
    for cfg in configs:
        key, kw_ = jax.random.split(key)
        fan_in = cfg["cin"] * cfg["kernel"] ** 2
        w = jax.random.normal(
            kw_, (cfg["cout"], cfg["cin"], cfg["kernel"], cfg["kernel"]), jnp.float32
        ) * (1.0 / jnp.sqrt(fan_in))
        # Conv bias is omitted: train-mode BatchNorm subtracts the batch mean
        # immediately after the conv, so the bias cancels exactly.
        weights.append(
            dict(
                w=w,
                gamma=jnp.ones((cfg["cout"],), jnp.float32),  # BN default weight
                beta=jnp.zeros((cfg["cout"],), jnp.float32),  # BN default bias
            )
        )
    return weights, configs


if __name__ == "__main__":
    # Small, module-consistent shapes:
    #   batch=2, color_channels=3, spatial 16x16, pooling_kernels=(2, 2)
    #   -> final feature map (2, 256, 4, 4) => n_neurons = 256*4*4 = 4096
    batch, color_channels, H, W = 2, 3, 16, 16
    pooling_kernels = (2, 2)
    n_neurons_in_middle_layer = 256 * (H // 4) * (W // 4)

    key = jax.random.PRNGKey(0)
    key, kx = jax.random.split(key)
    x = jax.random.normal(kx, (batch, color_channels, H, W), jnp.float32)

    weights, configs = init_encoder_params(key, color_channels, pooling_kernels)

    fwd = jax.jit(
        functools.partial(
            encoder_forward,
            configs=configs,
            n_neurons_in_middle_layer=n_neurons_in_middle_layer,
        )
    )
    out = fwd(x, weights)
    jax.block_until_ready(out)

    assert out.shape == (batch, n_neurons_in_middle_layer), out.shape
    assert bool(jnp.all(jnp.isfinite(out)))
    print("KERNEL_OK")
</pallas_src>

<mosaic_0001>
module attributes {stable_mosaic.version = 11 : i64} {
  func.func @_bn_relu_kernel(%arg0: i32, %arg1: memref<512x128xbf16, #tpu.memory_space<vmem>>, %arg2: memref<1x128xf32, #tpu.memory_space<vmem>>, %arg3: memref<1x128xf32, #tpu.memory_space<vmem>>, %arg4: memref<512x128xbf16, #tpu.memory_space<vmem>>) attributes {dimension_semantics = [#tpu.dimension_semantics<parallel>], iteration_bounds = array<i64: 1>, scalar_prefetch = 0 : i64, scratch_operands = 0 : i64, tpu.core_type = #tpu.core_type<tc>, window_params = [{transform_indices = @transform_0, window_bounds = array<i64: 512, 128>}, {pipeline_mode = #tpu.pipeline_mode<synchronous>, transform_indices = @transform_1, window_bounds = array<i64: 1, 128>}, {pipeline_mode = #tpu.pipeline_mode<synchronous>, transform_indices = @transform_2, window_bounds = array<i64: 1, 128>}, {transform_indices = @transform_3, window_bounds = array<i64: 512, 128>}]} {
    %c0 = arith.constant 0 : index
    %c0_0 = arith.constant 0 : index
    %0 = vector.load %arg1[%c0, %c0_0] : memref<512x128xbf16, #tpu.memory_space<vmem>>, vector<512x128xbf16>
    %1 = arith.extf %0 : vector<512x128xbf16> to vector<512x128xf32>
    %c0_1 = arith.constant 0 : index
    %c0_2 = arith.constant 0 : index
    %2 = vector.load %arg2[%c0_1, %c0_2] : memref<1x128xf32, #tpu.memory_space<vmem>>, vector<1x128xf32>
    %3 = vector.broadcast %2 : vector<1x128xf32> to vector<512x128xf32>
    %4 = arith.mulf %1, %3 : vector<512x128xf32>
    %c0_3 = arith.constant 0 : index
    %c0_4 = arith.constant 0 : index
    %5 = vector.load %arg3[%c0_3, %c0_4] : memref<1x128xf32, #tpu.memory_space<vmem>>, vector<1x128xf32>
    %6 = vector.broadcast %5 : vector<1x128xf32> to vector<512x128xf32>
    %7 = arith.addf %4, %6 : vector<512x128xf32>
    %cst = arith.constant 0.000000e+00 : f32
    %8 = vector.broadcast %cst : f32 to vector<512x128xf32>
    %9 = arith.maximumf %7, %8 : vector<512x128xf32>
    %10 = arith.truncf %9 : vector<512x128xf32> to vector<512x128xbf16>
    %c0_5 = arith.constant 0 : index
    %c0_6 = arith.constant 0 : index
    %11 = vector.load %arg4[%c0_5, %c0_6] : memref<512x128xbf16, #tpu.memory_space<vmem>>, vector<512x128xbf16>
    tpu.vector_store %arg4[%c0_5, %c0_6], %10 {strides = array<i32>} : memref<512x128xbf16, #tpu.memory_space<vmem>>, vector<512x128xbf16>,
    return
  }
  func.func @transform_0(%arg0: i32) -> (i32, i32) {
    %c0_i32 = arith.constant 0 : i32
    %c0_i32_0 = arith.constant 0 : i32
    return %arg0, %c0_i32 : i32, i32
  }
  func.func @transform_1(%arg0: i32) -> (i32, i32) {
    %c0_i32 = arith.constant 0 : i32
    %c0_i32_0 = arith.constant 0 : i32
    %c0_i32_1 = arith.constant 0 : i32
    return %c0_i32, %c0_i32_0 : i32, i32
  }
  func.func @transform_2(%arg0: i32) -> (i32, i32) {
    %c0_i32 = arith.constant 0 : i32
    %c0_i32_0 = arith.constant 0 : i32
    %c0_i32_1 = arith.constant 0 : i32
    return %c0_i32, %c0_i32_0 : i32, i32
  }
  func.func @transform_3(%arg0: i32) -> (i32, i32) {
    %c0_i32 = arith.constant 0 : i32
    %c0_i32_0 = arith.constant 0 : i32
    return %arg0, %c0_i32 : i32, i32
  }
}

module attributes {stable_mosaic.version = 11 : i64} {
  func.func @_conv_stats_kernel(%arg0: i32, %arg1: memref<512x16xbf16, #tpu.memory_space<vmem>>, %arg2: memref<16x128xbf16, #tpu.memory_space<vmem>>, %arg3: memref<512x128xbf16, #tpu.memory_space<vmem>>, %arg4: memref<1x2x128xf32, #tpu.memory_space<vmem>>) attributes {dimension_semantics = [#tpu.dimension_semantics<parallel>], iteration_bounds = array<i64: 1>, scalar_prefetch = 0 : i64, scratch_operands = 0 : i64, tpu.core_type = #tpu.core_type<tc>, window_params = [{transform_indices = @transform_0, window_bounds = array<i64: 512, 16>}, {pipeline_mode = #tpu.pipeline_mode<synchronous>, transform_indices = @transform_1, window_bounds = array<i64: 16, 128>}, {transform_indices = @transform_2, window_bounds = array<i64: 512, 128>}, {transform_indices = @transform_3, window_bounds = array<i64: 1, 2, 128>}]} {
    %c0 = arith.constant 0 : index
    %c0_0 = arith.constant 0 : index
    %0 = vector.load %arg1[%c0, %c0_0] : memref<512x16xbf16, #tpu.memory_space<vmem>>, vector<512x16xbf16>
    %c0_1 = arith.constant 0 : index
    %c0_2 = arith.constant 0 : index
    %1 = vector.load %arg2[%c0_1, %c0_2] : memref<16x128xbf16, #tpu.memory_space<vmem>>, vector<16x128xbf16>
    %cst = arith.constant dense<0.000000e+00> : vector<512x128xf32>
    %2 = tpu.matmul %0, %1, %cst {dimension_numbers = #tpu.dot_dimension_numbers<[1], [0], [0], [1], [0, 0, 1, 1], [], []>} : vector<512x16xbf16>, vector<16x128xbf16>, vector<512x128xf32> -> vector<512x128xf32>
    %3 = arith.truncf %2 : vector<512x128xf32> to vector<512x128xbf16>
    %c0_3 = arith.constant 0 : index
    %c0_4 = arith.constant 0 : index
    %4 = vector.load %arg3[%c0_3, %c0_4] : memref<512x128xbf16, #tpu.memory_space<vmem>>, vector<512x128xbf16>
    tpu.vector_store %arg3[%c0_3, %c0_4], %3 {strides = array<i32>} : memref<512x128xbf16, #tpu.memory_space<vmem>>, vector<512x128xbf16>,
    %cst_5 = arith.constant dense<0.000000e+00> : vector<128xf32>
    %5 = vector.multi_reduction <add>, %2, %cst_5 [0] : vector<512x128xf32> to vector<128xf32>
    %6 = vector.shape_cast %5 : vector<128xf32> to vector<1x128xf32>
    %7 = arith.mulf %2, %2 : vector<512x128xf32>
    %cst_6 = arith.constant dense<0.000000e+00> : vector<128xf32>
    %8 = vector.multi_reduction <add>, %7, %cst_6 [0] : vector<512x128xf32> to vector<128xf32>
    %9 = vector.shape_cast %8 : vector<128xf32> to vector<1x128xf32>
    %10 = tpu.concatenate %6, %9 in 0 : vector<1x128xf32>, vector<1x128xf32> -> vector<2x128xf32>
    %11 = vector.shape_cast %10 : vector<2x128xf32> to vector<1x2x128xf32>
    %c0_7 = arith.constant 0 : index
    %c0_8 = arith.constant 0 : index
    %c0_9 = arith.constant 0 : index
    %12 = vector.load %arg4[%c0_7, %c0_8, %c0_9] : memref<1x2x128xf32, #tpu.memory_space<vmem>>, vector<1x2x128xf32>
    tpu.vector_store %arg4[%c0_7, %c0_8, %c0_9], %11 {strides = array<i32>} : memref<1x2x128xf32, #tpu.memory_space<vmem>>, vector<1x2x128xf32>,
    return
  }
  func.func @transform_0(%arg0: i32) -> (i32, i32) {
    %c0_i32 = arith.constant 0 : i32
    %c0_i32_0 = arith.constant 0 : i32
    return %arg0, %c0_i32 : i32, i32
  }
  func.func @transform_1(%arg0: i32) -> (i32, i32) {
    %c0_i32 = arith.constant 0 : i32
    %c0_i32_0 = arith.constant 0 : i32
    %c0_i32_1 = arith.constant 0 : i32
    return %c0_i32, %c0_i32_0 : i32, i32
  }
  func.func @transform_2(%arg0: i32) -> (i32, i32) {
    %c0_i32 = arith.constant 0 : i32
    %c0_i32_0 = arith.constant 0 : i32
    return %arg0, %c0_i32 : i32, i32
  }
  func.func @transform_3(%arg0: i32) -> (i32, i32, i32) {
    %c0_i32 = arith.constant 0 : i32
    %c0_i32_0 = arith.constant 0 : i32
    %c0_i32_1 = arith.constant 0 : i32
    return %arg0, %c0_i32, %c0_i32_0 : i32, i32, i32
  }
}

module attributes {stable_mosaic.version = 11 : i64} {
  func.func @_conv_stats_kernel(%arg0: i32, %arg1: memref<512x288xbf16, #tpu.memory_space<vmem>>, %arg2: memref<288x128xbf16, #tpu.memory_space<vmem>>, %arg3: memref<512x128xbf16, #tpu.memory_space<vmem>>, %arg4: memref<1x2x128xf32, #tpu.memory_space<vmem>>) attributes {dimension_semantics = [#tpu.dimension_semantics<parallel>], iteration_bounds = array<i64: 1>, scalar_prefetch = 0 : i64, scratch_operands = 0 : i64, tpu.core_type = #tpu.core_type<tc>, window_params = [{transform_indices = @transform_0, window_bounds = array<i64: 512, 288>}, {pipeline_mode = #tpu.pipeline_mode<synchronous>, transform_indices = @transform_1, window_bounds = array<i64: 288, 128>}, {transform_indices = @transform_2, window_bounds = array<i64: 512, 128>}, {transform_indices = @transform_3, window_bounds = array<i64: 1, 2, 128>}]} {
    %c0 = arith.constant 0 : index
    %c0_0 = arith.constant 0 : index
    %0 = vector.load %arg1[%c0, %c0_0] : memref<512x288xbf16, #tpu.memory_space<vmem>>, vector<512x288xbf16>
    %c0_1 = arith.constant 0 : index
    %c0_2 = arith.constant 0 : index
    %1 = vector.load %arg2[%c0_1, %c0_2] : memref<288x128xbf16, #tpu.memory_space<vmem>>, vector<288x128xbf16>
    %cst = arith.constant dense<0.000000e+00> : vector<512x128xf32>
    %2 = tpu.matmul %0, %1, %cst {dimension_numbers = #tpu.dot_dimension_numbers<[1], [0], [0], [1], [0, 0, 1, 1], [], []>} : vector<512x288xbf16>, vector<288x128xbf16>, vector<512x128xf32> -> vector<512x128xf32>
    %3 = arith.truncf %2 : vector<512x128xf32> to vector<512x128xbf16>
    %c0_3 = arith.constant 0 : index
    %c0_4 = arith.constant 0 : index
    %4 = vector.load %arg3[%c0_3, %c0_4] : memref<512x128xbf16, #tpu.memory_space<vmem>>, vector<512x128xbf16>
    tpu.vector_store %arg3[%c0_3, %c0_4], %3 {strides = array<i32>} : memref<512x128xbf16, #tpu.memory_space<vmem>>, vector<512x128xbf16>,
    %cst_5 = arith.constant dense<0.000000e+00> : vector<128xf32>
    %5 = vector.multi_reduction <add>, %2, %cst_5 [0] : vector<512x128xf32> to vector<128xf32>
    %6 = vector.shape_cast %5 : vector<128xf32> to vector<1x128xf32>
    %7 = arith.mulf %2, %2 : vector<512x128xf32>
    %cst_6 = arith.constant dense<0.000000e+00> : vector<128xf32>
    %8 = vector.multi_reduction <add>, %7, %cst_6 [0] : vector<512x128xf32> to vector<128xf32>
    %9 = vector.shape_cast %8 : vector<128xf32> to vector<1x128xf32>
    %10 = tpu.concatenate %6, %9 in 0 : vector<1x128xf32>, vector<1x128xf32> -> vector<2x128xf32>
    %11 = vector.shape_cast %10 : vector<2x128xf32> to vector<1x2x128xf32>
    %c0_7 = arith.constant 0 : index
    %c0_8 = arith.constant 0 : index
    %c0_9 = arith.constant 0 : index
    %12 = vector.load %arg4[%c0_7, %c0_8, %c0_9] : memref<1x2x128xf32, #tpu.memory_space<vmem>>, vector<1x2x128xf32>
    tpu.vector_store %arg4[%c0_7, %c0_8, %c0_9], %11 {strides = array<i32>} : memref<1x2x128xf32, #tpu.memory_space<vmem>>, vector<1x2x128xf32>,
    return
  }
  func.func @transform_0(%arg0: i32) -> (i32, i32) {
    %c0_i32 = arith.constant 0 : i32
    %c0_i32_0 = arith.constant 0 : i32
    return %arg0, %c0_i32 : i32, i32
  }
  func.func @transform_1(%arg0: i32) -> (i32, i32) {
    %c0_i32 = arith.constant 0 : i32
    %c0_i32_0 = arith.constant 0 : i32
    %c0_i32_1 = arith.constant 0 : i32
    return %c0_i32, %c0_i32_0 : i32, i32
  }
  func.func @transform_2(%arg0: i32) -> (i32, i32) {
    %c0_i32 = arith.constant 0 : i32
    %c0_i32_0 = arith.constant 0 : i32
    return %arg0, %c0_i32 : i32, i32
  }
  func.func @transform_3(%arg0: i32) -> (i32, i32, i32) {
    %c0_i32 = arith.constant 0 : i32
    %c0_i32_0 = arith.constant 0 : i32
    %c0_i32_1 = arith.constant 0 : i32
    return %arg0, %c0_i32, %c0_i32_0 : i32, i32, i32
  }
}

module attributes {stable_mosaic.version = 11 : i64} {
  func.func @_conv_stats_kernel(%arg0: i32, %arg1: memref<128x576xbf16, #tpu.memory_space<vmem>>, %arg2: memref<576x128xbf16, #tpu.memory_space<vmem>>, %arg3: memref<128x128xbf16, #tpu.memory_space<vmem>>, %arg4: memref<1x2x128xf32, #tpu.memory_space<vmem>>) attributes {dimension_semantics = [#tpu.dimension_semantics<parallel>], iteration_bounds = array<i64: 1>, scalar_prefetch = 0 : i64, scratch_operands = 0 : i64, tpu.core_type = #tpu.core_type<tc>, window_params = [{transform_indices = @transform_0, window_bounds = array<i64: 128, 576>}, {pipeline_mode = #tpu.pipeline_mode<synchronous>, transform_indices = @transform_1, window_bounds = array<i64: 576, 128>}, {transform_indices = @transform_2, window_bounds = array<i64: 128, 128>}, {transform_indices = @transform_3, window_bounds = array<i64: 1, 2, 128>}]} {
    %c0 = arith.constant 0 : index
    %c0_0 = arith.constant 0 : index
    %0 = vector.load %arg1[%c0, %c0_0] : memref<128x576xbf16, #tpu.memory_space<vmem>>, vector<128x576xbf16>
    %c0_1 = arith.constant 0 : index
    %c0_2 = arith.constant 0 : index
    %1 = vector.load %arg2[%c0_1, %c0_2] : memref<576x128xbf16, #tpu.memory_space<vmem>>, vector<576x128xbf16>
    %cst = arith.constant dense<0.000000e+00> : vector<128x128xf32>
    %2 = tpu.matmul %0, %1, %cst {dimension_numbers = #tpu.dot_dimension_numbers<[1], [0], [0], [1], [0, 0, 1, 1], [], []>} : vector<128x576xbf16>, vector<576x128xbf16>, vector<128x128xf32> -> vector<128x128xf32>
    %3 = arith.truncf %2 : vector<128x128xf32> to vector<128x128xbf16>
    %c0_3 = arith.constant 0 : index
    %c0_4 = arith.constant 0 : index
    %4 = vector.load %arg3[%c0_3, %c0_4] : memref<128x128xbf16, #tpu.memory_space<vmem>>, vector<128x128xbf16>
    tpu.vector_store %arg3[%c0_3, %c0_4], %3 {strides = array<i32>} : memref<128x128xbf16, #tpu.memory_space<vmem>>, vector<128x128xbf16>,
    %cst_5 = arith.constant dense<0.000000e+00> : vector<128xf32>
    %5 = vector.multi_reduction <add>, %2, %cst_5 [0] : vector<128x128xf32> to vector<128xf32>
    %6 = vector.shape_cast %5 : vector<128xf32> to vector<1x128xf32>
    %7 = arith.mulf %2, %2 : vector<128x128xf32>
    %cst_6 = arith.constant dense<0.000000e+00> : vector<128xf32>
    %8 = vector.multi_reduction <add>, %7, %cst_6 [0] : vector<128x128xf32> to vector<128xf32>
    %9 = vector.shape_cast %8 : vector<128xf32> to vector<1x128xf32>
    %10 = tpu.concatenate %6, %9 in 0 : vector<1x128xf32>, vector<1x128xf32> -> vector<2x128xf32>
    %11 = vector.shape_cast %10 : vector<2x128xf32> to vector<1x2x128xf32>
    %c0_7 = arith.constant 0 : index
    %c0_8 = arith.constant 0 : index
    %c0_9 = arith.constant 0 : index
    %12 = vector.load %arg4[%c0_7, %c0_8, %c0_9] : memref<1x2x128xf32, #tpu.memory_space<vmem>>, vector<1x2x128xf32>
    tpu.vector_store %arg4[%c0_7, %c0_8, %c0_9], %11 {strides = array<i32>} : memref<1x2x128xf32, #tpu.memory_space<vmem>>, vector<1x2x128xf32>,
    return
  }
  func.func @transform_0(%arg0: i32) -> (i32, i32) {
    %c0_i32 = arith.constant 0 : i32
    %c0_i32_0 = arith.constant 0 : i32
    return %arg0, %c0_i32 : i32, i32
  }
  func.func @transform_1(%arg0: i32) -> (i32, i32) {
    %c0_i32 = arith.constant 0 : i32
    %c0_i32_0 = arith.constant 0 : i32
    %c0_i32_1 = arith.constant 0 : i32
    return %c0_i32, %c0_i32_0 : i32, i32
  }
  func.func @transform_2(%arg0: i32) -> (i32, i32) {
    %c0_i32 = arith.constant 0 : i32
    %c0_i32_0 = arith.constant 0 : i32
    return %arg0, %c0_i32 : i32, i32
  }
  func.func @transform_3(%arg0: i32) -> (i32, i32, i32) {
    %c0_i32 = arith.constant 0 : i32
    %c0_i32_0 = arith.constant 0 : i32
    %c0_i32_1 = arith.constant 0 : i32
    return %arg0, %c0_i32, %c0_i32_0 : i32, i32, i32
  }
}

module attributes {stable_mosaic.version = 11 : i64} {
  func.func @_bn_relu_kernel(%arg0: i32, %arg1: memref<128x128xbf16, #tpu.memory_space<vmem>>, %arg2: memref<1x128xf32, #tpu.memory_space<vmem>>, %arg3: memref<1x128xf32, #tpu.memory_space<vmem>>, %arg4: memref<128x128xbf16, #tpu.memory_space<vmem>>) attributes {dimension_semantics = [#tpu.dimension_semantics<parallel>], iteration_bounds = array<i64: 1>, scalar_prefetch = 0 : i64, scratch_operands = 0 : i64, tpu.core_type = #tpu.core_type<tc>, window_params = [{transform_indices = @transform_0, window_bounds = array<i64: 128, 128>}, {pipeline_mode = #tpu.pipeline_mode<synchronous>, transform_indices = @transform_1, window_bounds = array<i64: 1, 128>}, {pipeline_mode = #tpu.pipeline_mode<synchronous>, transform_indices = @transform_2, window_bounds = array<i64: 1, 128>}, {transform_indices = @transform_3, window_bounds = array<i64: 128, 128>}]} {
    %c0 = arith.constant 0 : index
    %c0_0 = arith.constant 0 : index
    %0 = vector.load %arg1[%c0, %c0_0] : memref<128x128xbf16, #tpu.memory_space<vmem>>, vector<128x128xbf16>
    %1 = arith.extf %0 : vector<128x128xbf16> to vector<128x128xf32>
    %c0_1 = arith.constant 0 : index
    %c0_2 = arith.constant 0 : index
    %2 = vector.load %arg2[%c0_1, %c0_2] : memref<1x128xf32, #tpu.memory_space<vmem>>, vector<1x128xf32>
    %3 = vector.broadcast %2 : vector<1x128xf32> to vector<128x128xf32>
    %4 = arith.mulf %1, %3 : vector<128x128xf32>
    %c0_3 = arith.constant 0 : index
    %c0_4 = arith.constant 0 : index
    %5 = vector.load %arg3[%c0_3, %c0_4] : memref<1x128xf32, #tpu.memory_space<vmem>>, vector<1x128xf32>
    %6 = vector.broadcast %5 : vector<1x128xf32> to vector<128x128xf32>
    %7 = arith.addf %4, %6 : vector<128x128xf32>
    %cst = arith.constant 0.000000e+00 : f32
    %8 = vector.broadcast %cst : f32 to vector<128x128xf32>
    %9 = arith.maximumf %7, %8 : vector<128x128xf32>
    %10 = arith.truncf %9 : vector<128x128xf32> to vector<128x128xbf16>
    %c0_5 = arith.constant 0 : index
    %c0_6 = arith.constant 0 : index
    %11 = vector.load %arg4[%c0_5, %c0_6] : memref<128x128xbf16, #tpu.memory_space<vmem>>, vector<128x128xbf16>
    tpu.vector_store %arg4[%c0_5, %c0_6], %10 {strides = array<i32>} : memref<128x128xbf16, #tpu.memory_space<vmem>>, vector<128x128xbf16>,
    return
  }
  func.func @transform_0(%arg0: i32) -> (i32, i32) {
    %c0_i32 = arith.constant 0 : i32
    %c0_i32_0 = arith.constant 0 : i32
    return %arg0, %c0_i32 : i32, i32
  }
  func.func @transform_1(%arg0: i32) -> (i32, i32) {
    %c0_i32 = arith.constant 0 : i32
    %c0_i32_0 = arith.constant 0 : i32
    %c0_i32_1 = arith.constant 0 : i32
    return %c0_i32, %c0_i32_0 : i32, i32
  }
  func.func @transform_2(%arg0: i32) -> (i32, i32) {
    %c0_i32 = arith.constant 0 : i32
    %c0_i32_0 = arith.constant 0 : i32
    %c0_i32_1 = arith.constant 0 : i32
    return %c0_i32, %c0_i32_0 : i32, i32
  }
  func.func @transform_3(%arg0: i32) -> (i32, i32) {
    %c0_i32 = arith.constant 0 : i32
    %c0_i32_0 = arith.constant 0 : i32
    return %arg0, %c0_i32 : i32, i32
  }
}

module attributes {stable_mosaic.version = 11 : i64} {
  func.func @_conv_stats_kernel(%arg0: i32, %arg1: memref<32x1152xbf16, #tpu.memory_space<vmem>>, %arg2: memref<1152x256xbf16, #tpu.memory_space<vmem>>, %arg3: memref<32x256xbf16, #tpu.memory_space<vmem>>, %arg4: memref<1x2x256xf32, #tpu.memory_space<vmem>>) attributes {dimension_semantics = [#tpu.dimension_semantics<parallel>], iteration_bounds = array<i64: 1>, scalar_prefetch = 0 : i64, scratch_operands = 0 : i64, tpu.core_type = #tpu.core_type<tc>, window_params = [{transform_indices = @transform_0, window_bounds = array<i64: 32, 1152>}, {pipeline_mode = #tpu.pipeline_mode<synchronous>, transform_indices = @transform_1, window_bounds = array<i64: 1152, 256>}, {transform_indices = @transform_2, window_bounds = array<i64: 32, 256>}, {transform_indices = @transform_3, window_bounds = array<i64: 1, 2, 256>}]} {
    %c0 = arith.constant 0 : index
    %c0_0 = arith.constant 0 : index
    %0 = vector.load %arg1[%c0, %c0_0] : memref<32x1152xbf16, #tpu.memory_space<vmem>>, vector<32x1152xbf16>
    %c0_1 = arith.constant 0 : index
    %c0_2 = arith.constant 0 : index
    %1 = vector.load %arg2[%c0_1, %c0_2] : memref<1152x256xbf16, #tpu.memory_space<vmem>>, vector<1152x256xbf16>
    %cst = arith.constant dense<0.000000e+00> : vector<32x256xf32>
    %2 = tpu.matmul %0, %1, %cst {dimension_numbers = #tpu.dot_dimension_numbers<[1], [0], [0], [1], [0, 0, 1, 1], [], []>} : vector<32x1152xbf16>, vector<1152x256xbf16>, vector<32x256xf32> -> vector<32x256xf32>
    %3 = arith.truncf %2 : vector<32x256xf32> to vector<32x256xbf16>
    %c0_3 = arith.constant 0 : index
    %c0_4 = arith.constant 0 : index
    %4 = vector.load %arg3[%c0_3, %c0_4] : memref<32x256xbf16, #tpu.memory_space<vmem>>, vector<32x256xbf16>
    tpu.vector_store %arg3[%c0_3, %c0_4], %3 {strides = array<i32>} : memref<32x256xbf16, #tpu.memory_space<vmem>>, vector<32x256xbf16>,
    %cst_5 = arith.constant dense<0.000000e+00> : vector<256xf32>
    %5 = vector.multi_reduction <add>, %2, %cst_5 [0] : vector<32x256xf32> to vector<256xf32>
    %6 = vector.shape_cast %5 : vector<256xf32> to vector<1x256xf32>
    %7 = arith.mulf %2, %2 : vector<32x256xf32>
    %cst_6 = arith.constant dense<0.000000e+00> : vector<256xf32>
    %8 = vector.multi_reduction <add>, %7, %cst_6 [0] : vector<32x256xf32> to vector<256xf32>
    %9 = vector.shape_cast %8 : vector<256xf32> to vector<1x256xf32>
    %10 = tpu.concatenate %6, %9 in 0 : vector<1x256xf32>, vector<1x256xf32> -> vector<2x256xf32>
    %11 = vector.shape_cast %10 : vector<2x256xf32> to vector<1x2x256xf32>
    %c0_7 = arith.constant 0 : index
    %c0_8 = arith.constant 0 : index
    %c0_9 = arith.constant 0 : index
    %12 = vector.load %arg4[%c0_7, %c0_8, %c0_9] : memref<1x2x256xf32, #tpu.memory_space<vmem>>, vector<1x2x256xf32>
    tpu.vector_store %arg4[%c0_7, %c0_8, %c0_9], %11 {strides = array<i32>} : memref<1x2x256xf32, #tpu.memory_space<vmem>>, vector<1x2x256xf32>,
    return
  }
  func.func @transform_0(%arg0: i32) -> (i32, i32) {
    %c0_i32 = arith.constant 0 : i32
    %c0_i32_0 = arith.constant 0 : i32
    return %arg0, %c0_i32 : i32, i32
  }
  func.func @transform_1(%arg0: i32) -> (i32, i32) {
    %c0_i32 = arith.constant 0 : i32
    %c0_i32_0 = arith.constant 0 : i32
    %c0_i32_1 = arith.constant 0 : i32
    return %c0_i32, %c0_i32_0 : i32, i32
  }
  func.func @transform_2(%arg0: i32) -> (i32, i32) {
    %c0_i32 = arith.constant 0 : i32
    %c0_i32_0 = arith.constant 0 : i32
    return %arg0, %c0_i32 : i32, i32
  }
  func.func @transform_3(%arg0: i32) -> (i32, i32, i32) {
    %c0_i32 = arith.constant 0 : i32
    %c0_i32_0 = arith.constant 0 : i32
    %c0_i32_1 = arith.constant 0 : i32
    return %arg0, %c0_i32, %c0_i32_0 : i32, i32, i32
  }
}

module attributes {stable_mosaic.version = 11 : i64} {
  func.func @_bn_relu_kernel(%arg0: i32, %arg1: memref<32x256xbf16, #tpu.memory_space<vmem>>, %arg2: memref<1x256xf32, #tpu.memory_space<vmem>>, %arg3: memref<1x256xf32, #tpu.memory_space<vmem>>, %arg4: memref<32x256xbf16, #tpu.memory_space<vmem>>) attributes {dimension_semantics = [#tpu.dimension_semantics<parallel>], iteration_bounds = array<i64: 1>, scalar_prefetch = 0 : i64, scratch_operands = 0 : i64, tpu.core_type = #tpu.core_type<tc>, window_params = [{transform_indices = @transform_0, window_bounds = array<i64: 32, 256>}, {pipeline_mode = #tpu.pipeline_mode<synchronous>, transform_indices = @transform_1, window_bounds = array<i64: 1, 256>}, {pipeline_mode = #tpu.pipeline_mode<synchronous>, transform_indices = @transform_2, window_bounds = array<i64: 1, 256>}, {transform_indices = @transform_3, window_bounds = array<i64: 32, 256>}]} {
    %c0 = arith.constant 0 : index
    %c0_0 = arith.constant 0 : index
    %0 = vector.load %arg1[%c0, %c0_0] : memref<32x256xbf16, #tpu.memory_space<vmem>>, vector<32x256xbf16>
    %1 = arith.extf %0 : vector<32x256xbf16> to vector<32x256xf32>
    %c0_1 = arith.constant 0 : index
    %c0_2 = arith.constant 0 : index
    %2 = vector.load %arg2[%c0_1, %c0_2] : memref<1x256xf32, #tpu.memory_space<vmem>>, vector<1x256xf32>
    %3 = vector.broadcast %2 : vector<1x256xf32> to vector<32x256xf32>
    %4 = arith.mulf %1, %3 : vector<32x256xf32>
    %c0_3 = arith.constant 0 : index
    %c0_4 = arith.constant 0 : index
    %5 = vector.load %arg3[%c0_3, %c0_4] : memref<1x256xf32, #tpu.memory_space<vmem>>, vector<1x256xf32>
    %6 = vector.broadcast %5 : vector<1x256xf32> to vector<32x256xf32>
    %7 = arith.addf %4, %6 : vector<32x256xf32>
    %cst = arith.constant 0.000000e+00 : f32
    %8 = vector.broadcast %cst : f32 to vector<32x256xf32>
    %9 = arith.maximumf %7, %8 : vector<32x256xf32>
    %10 = arith.truncf %9 : vector<32x256xf32> to vector<32x256xbf16>
    %c0_5 = arith.constant 0 : index
    %c0_6 = arith.constant 0 : index
    %11 = vector.load %arg4[%c0_5, %c0_6] : memref<32x256xbf16, #tpu.memory_space<vmem>>, vector<32x256xbf16>
    tpu.vector_store %arg4[%c0_5, %c0_6], %10 {strides = array<i32>} : memref<32x256xbf16, #tpu.memory_space<vmem>>, vector<32x256xbf16>,
    return
  }
  func.func @transform_0(%arg0: i32) -> (i32, i32) {
    %c0_i32 = arith.constant 0 : i32
    %c0_i32_0 = arith.constant 0 : i32
    return %arg0, %c0_i32 : i32, i32
  }
  func.func @transform_1(%arg0: i32) -> (i32, i32) {
    %c0_i32 = arith.constant 0 : i32
    %c0_i32_0 = arith.constant 0 : i32
    %c0_i32_1 = arith.constant 0 : i32
    return %c0_i32, %c0_i32_0 : i32, i32
  }
  func.func @transform_2(%arg0: i32) -> (i32, i32) {
    %c0_i32 = arith.constant 0 : i32
    %c0_i32_0 = arith.constant 0 : i32
    %c0_i32_1 = arith.constant 0 : i32
    return %c0_i32, %c0_i32_0 : i32, i32
  }
  func.func @transform_3(%arg0: i32) -> (i32, i32) {
    %c0_i32 = arith.constant 0 : i32
    %c0_i32_0 = arith.constant 0 : i32
    return %arg0, %c0_i32 : i32, i32
  }
}

</mosaic_0001>

<bundles_post_ra>
// kernel: encoder_forward.9
= control target key start
LH: loop header
LB: loop body
LE: loop exit
PB: predicated region body
PF: predicated region fallthrough
CT: control target
= control target key end

     0   :  { %s1502_s0 = inlined_call_operand.vmem [shape: bf16[512,128], index: 0, kind: input, shape index: {}]   ;;  %s1503_s1 = inlined_call_operand.vmem [shape: f32[1,128], index: 1, kind: input, shape index: {}]   ;;  %s1504_s2 = inlined_call_operand.vmem [shape: f32[1,128], index: 2, kind: input, shape index: {}]   ;;  %s1505_s3 = inlined_call_operand.vmem [shape: bf16[512,128], index: 3, kind: output, shape index: {}]  }
   0x1   :  { %v803_v0 = vld [vmem:[%s1502_s0] sm:$0xff]   ;;  %v1090_v4 = vld [vmem:[%s1502_s0 + $0x8] sm:$0xff]   ;;  %v1091_v5 = vld [vmem:[%s1502_s0 + $0x10] sm:$0xff]  }
   0x2   :  { %v1178_v1 = vld [vmem:[%s1503_s1] ss:$0 sm:$0xff]  ;;  %v804_v2 = vunpack.c.l.bf16 %v803_v0  ;;  %v805_v3 = vunpack.c.h.bf16 %v803_v0  ;;  %v1092_v6 = vld [vmem:[%s1502_s0 + $0x18] sm:$0xff]   ;;  %v808_v8 = vunpack.c.l.bf16 %v1090_v4  ;;  %v809_v9 = vunpack.c.h.bf16 %v1090_v4  ;;  %v1094_v33 = vld [vmem:[%s1502_s0 + $0x28] sm:$0xff]  }
   0x3   :  { %v1192_v7 = vld [vmem:[%s1504_s2] ss:$0 sm:$0xff]  ;;  %v812_v10 = vunpack.c.l.bf16 %v1091_v5  ;;  %v813_v11 = vunpack.c.h.bf16 %v1091_v5  ;;  %v816_v14 = vunpack.c.l.bf16 %v1092_v6  ;;  %v817_v15 = vunpack.c.h.bf16 %v1092_v6  ;;  %v1095_v38 = vld [vmem:[%s1502_s0 + $0x30] sm:$0xff]   ;;  %v1096_v43 = vld [vmem:[%s1502_s0 + $0x38] sm:$0xff]  }
   0x4   :  { %v149_v12 = vmul.f32 %v804_v2, %v1178_v1  ;;  %v150_v13 = vmul.f32 %v805_v3, %v1178_v1  ;;  %v151_v16 = vmul.f32 %v808_v8, %v1178_v1  ;;  %v152_v17 = vmul.f32 %v809_v9, %v1178_v1  ;;  %v1093_v28 = vld [vmem:[%s1502_s0 + $0x20] sm:$0xff]  }
   0x5   :  { %v153_v18 = vmul.f32 %v812_v10, %v1178_v1  ;;  %v154_v19 = vmul.f32 %v813_v11, %v1178_v1  ;;  %v155_v22 = vmul.f32 %v816_v14, %v1178_v1  ;;  %v156_v23 = vmul.f32 %v817_v15, %v1178_v1  ;;  %v1097_v0 = vld [vmem:[%s1502_s0 + $0x40] sm:$0xff]   ;;  %v1098_v11 = vld [vmem:[%s1502_s0 + $0x48] sm:$0xff]  }
   0x6   :  { %v220_v20 = vadd.f32 %v1192_v7, %v149_v12  ;;  %v221_v21 = vadd.f32 %v1192_v7, %v150_v13  ;;  %v222_v24 = vadd.f32 %v1192_v7, %v151_v16  ;;  %v223_v25 = vadd.f32 %v1192_v7, %v152_v17  ;;  %v1099_v16 = vld [vmem:[%s1502_s0 + $0x50] sm:$0xff]  }
   0x7   :  { %v224_v26 = vadd.f32 %v1192_v7, %v153_v18  ;;  %v225_v27 = vadd.f32 %v1192_v7, %v154_v19  ;;  %v226_v31 = vadd.f32 %v1192_v7, %v155_v22  ;;  %v227_v32 = vadd.f32 %v1192_v7, %v156_v23 }
   0x8   :  { %v284_v29 = vmax.f32 %v220_v20, 0.0  ;;  %v285_v30 = vmax.f32 %v221_v21, 0.0  ;;  %v286_v34 = vmax.f32 %v222_v24, 0.0  ;;  %v287_v35 = vmax.f32 %v223_v25, 0.0  ;;  %v1100_v25 = vld [vmem:[%s1502_s0 + $0x58] sm:$0xff]  }
   0x9   :  { %v288_v36 = vmax.f32 %v224_v26, 0.0  ;;  %v289_v37 = vmax.f32 %v225_v27, 0.0  ;;  %v290_v40 = vmax.f32 %v226_v31, 0.0  ;;  %v291_v41 = vmax.f32 %v227_v32, 0.0 }
   0xa   :  { %v933_v39 = vpack.c.bf16 %v285_v30, %v284_v29  ;;  %v820_v42 = vunpack.c.l.bf16 %v1093_v28  ;;  %v938_v44 = vpack.c.bf16 %v287_v35, %v286_v34  ;;  %v821_v46 = vunpack.c.h.bf16 %v1093_v28 }
   0xb   :  { %v943_v45 = vpack.c.bf16 %v289_v37, %v288_v36  ;;  %v824_v47 = vunpack.c.l.bf16 %v1094_v33  ;;  %v948_v48 = vpack.c.bf16 %v291_v41, %v290_v40  ;;  %v825_v50 = vunpack.c.h.bf16 %v1094_v33 }
   0xc   :  { %934 = vst [vmem:[%s1505_s3] sm:$0xff] %v933_v39   ;;  %v157_v49 = vmul.f32 %v820_v42, %v1178_v1  ;;  %v828_v51 = vunpack.c.l.bf16 %v1095_v38  ;;  %1121 = vst [vmem:[%s1505_s3 + $0x8] sm:$0xff] %v938_v44   ;;  %v158_v52 = vmul.f32 %v821_v46, %v1178_v1  ;;  %v829_v54 = vunpack.c.h.bf16 %v1095_v38  ;;  %v1101_v38 = vld [vmem:[%s1502_s0 + $0x60] sm:$0xff]  }
   0xd   :  { %1122 = vst [vmem:[%s1505_s3 + $0x10] sm:$0xff] %v943_v45   ;;  %v159_v53 = vmul.f32 %v824_v47, %v1178_v1  ;;  %v832_v55 = vunpack.c.l.bf16 %v1096_v43  ;;  %1123 = vst [vmem:[%s1505_s3 + $0x18] sm:$0xff] %v948_v48   ;;  %v160_v57 = vmul.f32 %v825_v50, %v1178_v1  ;;  %v833_v59 = vunpack.c.h.bf16 %v1096_v43 }
   0xe   :  { %v228_v56 = vadd.f32 %v1192_v7, %v157_v49  ;;  %v161_v58 = vmul.f32 %v828_v51, %v1178_v1  ;;  %v229_v60 = vadd.f32 %v1192_v7, %v158_v52  ;;  %v162_v62 = vmul.f32 %v829_v54, %v1178_v1  ;;  %v1102_v51 = vld [vmem:[%s1502_s0 + $0x68] sm:$0xff]  }
   0xf   :  { %v230_v61 = vadd.f32 %v1192_v7, %v159_v53  ;;  %v163_v63 = vmul.f32 %v832_v55, %v1178_v1  ;;  %v231_v3 = vadd.f32 %v1192_v7, %v160_v57  ;;  %v164_v5 = vmul.f32 %v833_v59, %v1178_v1 }
  0x10   :  { %v292_v2 = vmax.f32 %v228_v56, 0.0  ;;  %v232_v4 = vadd.f32 %v1192_v7, %v161_v58  ;;  %v293_v6 = vmax.f32 %v229_v60, 0.0  ;;  %v233_v9 = vadd.f32 %v1192_v7, %v162_v62  ;;  %v1103_v60 = vld [vmem:[%s1502_s0 + $0x70] sm:$0xff]  }
  0x11   :  { %v294_v8 = vmax.f32 %v230_v61, 0.0  ;;  %v234_v10 = vadd.f32 %v1192_v7, %v163_v63  ;;  %v295_v12 = vmax.f32 %v231_v3, 0.0  ;;  %v235_v14 = vadd.f32 %v1192_v7, %v164_v5 }
  0x12   :  { %v296_v13 = vmax.f32 %v232_v4, 0.0  ;;  %v836_v15 = vunpack.c.l.bf16 %v1097_v0  ;;  %v953_v17 = vpack.c.bf16 %v293_v6, %v292_v2  ;;  %v297_v18 = vmax.f32 %v233_v9, 0.0  ;;  %v1104_v2 = vld [vmem:[%s1502_s0 + $0x78] sm:$0xff]  }
  0x13   :  { %v298_v19 = vmax.f32 %v234_v10, 0.0  ;;  %v837_v20 = vunpack.c.h.bf16 %v1097_v0  ;;  %v958_v21 = vpack.c.bf16 %v295_v12, %v294_v8  ;;  %v299_v22 = vmax.f32 %v235_v14, 0.0  ;;  %v1105_v12 = vld [vmem:[%s1502_s0 + $0x80] sm:$0xff]  }
  0x14   :  { %v165_v23 = vmul.f32 %v836_v15, %v1178_v1  ;;  %v840_v24 = vunpack.c.l.bf16 %v1098_v11  ;;  %1124 = vst [vmem:[%s1505_s3 + $0x20] sm:$0xff] %v953_v17   ;;  %v963_v26 = vpack.c.bf16 %v297_v18, %v296_v13  ;;  %v841_v28 = vunpack.c.h.bf16 %v1098_v11 }
  0x15   :  { %v166_v27 = vmul.f32 %v837_v20, %v1178_v1  ;;  %v844_v29 = vunpack.c.l.bf16 %v1099_v16  ;;  %1125 = vst [vmem:[%s1505_s3 + $0x28] sm:$0xff] %v958_v21   ;;  %v968_v30 = vpack.c.bf16 %v299_v22, %v298_v19  ;;  %v845_v33 = vunpack.c.h.bf16 %v1099_v16 }
  0x16   :  { %v236_v31 = vadd.f32 %v1192_v7, %v165_v23  ;;  %v167_v32 = vmul.f32 %v840_v24, %v1178_v1  ;;  %1126 = vst [vmem:[%s1505_s3 + $0x30] sm:$0xff] %v963_v26   ;;  %v168_v35 = vmul.f32 %v841_v28, %v1178_v1  ;;  %v848_v37 = vunpack.c.l.bf16 %v1100_v25 }
  0x17   :  { %v237_v34 = vadd.f32 %v1192_v7, %v166_v27  ;;  %v169_v36 = vmul.f32 %v844_v29, %v1178_v1  ;;  %1127 = vst [vmem:[%s1505_s3 + $0x38] sm:$0xff] %v968_v30   ;;  %v170_v41 = vmul.f32 %v845_v33, %v1178_v1  ;;  %v849_v42 = vunpack.c.h.bf16 %v1100_v25  ;;  %v1106_v29 = vld [vmem:[%s1502_s0 + $0x88] sm:$0xff]  }
  0x18   :  { %v300_v39 = vmax.f32 %v236_v31, 0.0  ;;  %v238_v40 = vadd.f32 %v1192_v7, %v167_v32  ;;  %v239_v44 = vadd.f32 %v1192_v7, %v168_v35  ;;  %v171_v46 = vmul.f32 %v848_v37, %v1178_v1 }
  0x19   :  { %v301_v43 = vmax.f32 %v237_v34, 0.0  ;;  %v240_v45 = vadd.f32 %v1192_v7, %v169_v36  ;;  %v241_v48 = vadd.f32 %v1192_v7, %v170_v41  ;;  %v172_v49 = vmul.f32 %v849_v42, %v1178_v1  ;;  %v1107_v34 = vld [vmem:[%s1502_s0 + $0x90] sm:$0xff]  }
  0x1a   :  { %v302_v47 = vmax.f32 %v238_v40, 0.0  ;;  %v852_v50 = vunpack.c.l.bf16 %v1101_v38  ;;  %v303_v53 = vmax.f32 %v239_v44, 0.0  ;;  %v242_v55 = vadd.f32 %v1192_v7, %v171_v46 }
  0x1b   :  { %v973_v52 = vpack.c.bf16 %v301_v43, %v300_v39  ;;  %v304_v54 = vmax.f32 %v240_v45, 0.0  ;;  %v305_v56 = vmax.f32 %v241_v48, 0.0  ;;  %v243_v57 = vadd.f32 %v1192_v7, %v172_v49  ;;  %v1108_v43 = vld [vmem:[%s1502_s0 + $0x98] sm:$0xff]  }
  0x1c   :  { %v853_v58 = vunpack.c.h.bf16 %v1101_v38  ;;  %v173_v59 = vmul.f32 %v852_v50, %v1178_v1  ;;  %v978_v61 = vpack.c.bf16 %v303_v53, %v302_v47  ;;  %v306_v62 = vmax.f32 %v242_v55, 0.0 }
  0x1d   :  { %1128 = vst [vmem:[%s1505_s3 + $0x40] sm:$0xff] %v973_v52   ;;  %v856_v63 = vunpack.c.l.bf16 %v1102_v51  ;;  %v857_v0 = vunpack.c.h.bf16 %v1102_v51  ;;  %v983_v3 = vpack.c.bf16 %v305_v56, %v304_v54  ;;  %v307_v4 = vmax.f32 %v243_v57, 0.0  ;;  %v1109_v56 = vld [vmem:[%s1502_s0 + $0xa0] sm:$0xff]  }
  0x1e   :  { %v174_v5 = vmul.f32 %v853_v58, %v1178_v1  ;;  %v244_v6 = vadd.f32 %v1192_v7, %v173_v59  ;;  %1129 = vst [vmem:[%s1505_s3 + $0x48] sm:$0xff] %v978_v61   ;;  %v860_v10 = vunpack.c.l.bf16 %v1103_v60  ;;  %v861_v11 = vunpack.c.h.bf16 %v1103_v60 }
  0x1f   :  { %v175_v8 = vmul.f32 %v856_v63, %v1178_v1  ;;  %v176_v9 = vmul.f32 %v857_v0, %v1178_v1  ;;  %1130 = vst [vmem:[%s1505_s3 + $0x50] sm:$0xff] %v983_v3   ;;  %v988_v13 = vpack.c.bf16 %v307_v4, %v306_v62  ;;  %v864_v16 = vunpack.c.l.bf16 %v1104_v2 }
  0x20   :  { %v245_v14 = vadd.f32 %v1192_v7, %v174_v5  ;;  %v308_v15 = vmax.f32 %v244_v6, 0.0  ;;  %v177_v19 = vmul.f32 %v860_v10, %v1178_v1  ;;  %v178_v20 = vmul.f32 %v861_v11, %v1178_v1 }
  0x21   :  { %v246_v17 = vadd.f32 %v1192_v7, %v175_v8  ;;  %v247_v18 = vadd.f32 %v1192_v7, %v176_v9  ;;  %1131 = vst [vmem:[%s1505_s3 + $0x58] sm:$0xff] %v988_v13   ;;  %v865_v22 = vunpack.c.h.bf16 %v1104_v2  ;;  %v179_v23 = vmul.f32 %v864_v16, %v1178_v1  ;;  %v1110_v2 = vld [vmem:[%s1502_s0 + $0xa8] sm:$0xff]   ;;  %v1111_v16 = vld [vmem:[%s1502_s0 + $0xb0] sm:$0xff]  }
  0x22   :  { %v309_v21 = vmax.f32 %v245_v14, 0.0  ;;  %v868_v24 = vunpack.c.l.bf16 %v1105_v12  ;;  %v248_v27 = vadd.f32 %v1192_v7, %v177_v19  ;;  %v249_v28 = vadd.f32 %v1192_v7, %v178_v20 }
  0x23   :  { %v310_v25 = vmax.f32 %v246_v17, 0.0  ;;  %v311_v26 = vmax.f32 %v247_v18, 0.0  ;;  %v180_v31 = vmul.f32 %v865_v22, %v1178_v1  ;;  %v250_v32 = vadd.f32 %v1192_v7, %v179_v23 }
  0x24   :  { %v993_v30 = vpack.c.bf16 %v309_v21, %v308_v15  ;;  %v869_v33 = vunpack.c.h.bf16 %v1105_v12  ;;  %v312_v36 = vmax.f32 %v248_v27, 0.0  ;;  %v313_v37 = vmax.f32 %v249_v28, 0.0  ;;  %v1112_v21 = vld [vmem:[%s1502_s0 + $0xb8] sm:$0xff]  }
  0x25   :  { %v998_v35 = vpack.c.bf16 %v311_v26, %v310_v25  ;;  %v181_v38 = vmul.f32 %v868_v24, %v1178_v1  ;;  %v251_v39 = vadd.f32 %v1192_v7, %v180_v31  ;;  %v314_v40 = vmax.f32 %v250_v32, 0.0 }
  0x26   :  { %1132 = vst [vmem:[%s1505_s3 + $0x60] sm:$0xff] %v993_v30   ;;  %v182_v41 = vmul.f32 %v869_v33, %v1178_v1  ;;  %v872_v42 = vunpack.c.l.bf16 %v1106_v29  ;;  %v1003_v44 = vpack.c.bf16 %v313_v37, %v312_v36  ;;  %v873_v46 = vunpack.c.h.bf16 %v1106_v29 }
  0x27   :  { %1133 = vst [vmem:[%s1505_s3 + $0x68] sm:$0xff] %v998_v35   ;;  %v252_v45 = vadd.f32 %v1192_v7, %v181_v38  ;;  %v876_v47 = vunpack.c.l.bf16 %v1107_v34  ;;  %v315_v48 = vmax.f32 %v251_v39, 0.0  ;;  %v877_v51 = vunpack.c.h.bf16 %v1107_v34  ;;  %v1113_v34 = vld [vmem:[%s1502_s0 + $0xc0] sm:$0xff]  }
  0x28   :  { %v253_v49 = vadd.f32 %v1192_v7, %v182_v41  ;;  %v183_v50 = vmul.f32 %v872_v42, %v1178_v1  ;;  %1134 = vst [vmem:[%s1505_s3 + $0x70] sm:$0xff] %v1003_v44   ;;  %v184_v53 = vmul.f32 %v873_v46, %v1178_v1  ;;  %v880_v55 = vunpack.c.l.bf16 %v1108_v43 }
  0x29   :  { %v316_v52 = vmax.f32 %v252_v45, 0.0  ;;  %v185_v54 = vmul.f32 %v876_v47, %v1178_v1  ;;  %v1008_v57 = vpack.c.bf16 %v315_v48, %v314_v40  ;;  %v186_v60 = vmul.f32 %v877_v51, %v1178_v1  ;;  %v1114_v47 = vld [vmem:[%s1502_s0 + $0xc8] sm:$0xff]  }
  0x2a   :  { %v317_v58 = vmax.f32 %v253_v49, 0.0  ;;  %v254_v59 = vadd.f32 %v1192_v7, %v183_v50  ;;  %v255_v61 = vadd.f32 %v1192_v7, %v184_v53  ;;  %v881_v63 = vunpack.c.h.bf16 %v1108_v43 }
  0x2b   :  { %v256_v62 = vadd.f32 %v1192_v7, %v185_v54  ;;  %v187_v0 = vmul.f32 %v880_v55, %v1178_v1  ;;  %1135 = vst [vmem:[%s1505_s3 + $0x78] sm:$0xff] %v1008_v57   ;;  %v257_v5 = vadd.f32 %v1192_v7, %v186_v60  ;;  %v884_v6 = vunpack.c.l.bf16 %v1109_v56 }
  0x2c   :  { %v1013_v3 = vpack.c.bf16 %v317_v58, %v316_v52  ;;  %v318_v4 = vmax.f32 %v254_v59, 0.0  ;;  %v319_v8 = vmax.f32 %v255_v61, 0.0  ;;  %v188_v10 = vmul.f32 %v881_v63, %v1178_v1  ;;  %v1115_v52 = vld [vmem:[%s1502_s0 + $0xd0] sm:$0xff]   ;;  %v1116_v61 = vld [vmem:[%s1502_s0 + $0xd8] sm:$0xff]  }
  0x2d   :  { %v320_v9 = vmax.f32 %v256_v62, 0.0  ;;  %v258_v11 = vadd.f32 %v1192_v7, %v187_v0  ;;  %v321_v12 = vmax.f32 %v257_v5, 0.0  ;;  %v885_v13 = vunpack.c.h.bf16 %v1109_v56 }
  0x2e   :  { %1136 = vst [vmem:[%s1505_s3 + $0x80] sm:$0xff] %v1013_v3   ;;  %v189_v14 = vmul.f32 %v884_v6, %v1178_v1  ;;  %v888_v15 = vunpack.c.l.bf16 %v1110_v2  ;;  %v1018_v17 = vpack.c.bf16 %v319_v8, %v318_v4  ;;  %v259_v18 = vadd.f32 %v1192_v7, %v188_v10 }
  0x2f   :  { %v322_v19 = vmax.f32 %v258_v11, 0.0  ;;  %v889_v20 = vunpack.c.h.bf16 %v1110_v2  ;;  %v1023_v22 = vpack.c.bf16 %v321_v12, %v320_v9  ;;  %v190_v23 = vmul.f32 %v885_v13, %v1178_v1  ;;  %v1117_v12 = vld [vmem:[%s1502_s0 + $0xe0] sm:$0xff]  }
  0x30   :  { %v260_v24 = vadd.f32 %v1192_v7, %v189_v14  ;;  %v191_v25 = vmul.f32 %v888_v15, %v1178_v1  ;;  %1137 = vst [vmem:[%s1505_s3 + $0x88] sm:$0xff] %v1018_v17   ;;  %v323_v26 = vmax.f32 %v259_v18, 0.0  ;;  %v892_v28 = vunpack.c.l.bf16 %v1111_v16 }
  0x31   :  { %v192_v27 = vmul.f32 %v889_v20, %v1178_v1  ;;  %v893_v29 = vunpack.c.h.bf16 %v1111_v16  ;;  %1138 = vst [vmem:[%s1505_s3 + $0x90] sm:$0xff] %v1023_v22   ;;  %v261_v30 = vadd.f32 %v1192_v7, %v190_v23  ;;  %v896_v33 = vunpack.c.l.bf16 %v1112_v21 }
  0x32   :  { %v324_v31 = vmax.f32 %v260_v24, 0.0  ;;  %v262_v32 = vadd.f32 %v1192_v7, %v191_v25  ;;  %v1028_v35 = vpack.c.bf16 %v323_v26, %v322_v19  ;;  %v193_v37 = vmul.f32 %v892_v28, %v1178_v1 }
  0x33   :  { %v263_v36 = vadd.f32 %v1192_v7, %v192_v27  ;;  %v194_v38 = vmul.f32 %v893_v29, %v1178_v1  ;;  %v325_v39 = vmax.f32 %v261_v30, 0.0  ;;  %v897_v41 = vunpack.c.h.bf16 %v1112_v21  ;;  %v1118_v21 = vld [vmem:[%s1502_s0 + $0xe8] sm:$0xff]  }
  0x34   :  { %v326_v40 = vmax.f32 %v262_v32, 0.0  ;;  %v195_v42 = vmul.f32 %v896_v33, %v1178_v1  ;;  %1139 = vst [vmem:[%s1505_s3 + $0x98] sm:$0xff] %v1028_v35   ;;  %v264_v44 = vadd.f32 %v1192_v7, %v193_v37  ;;  %v900_v46 = vunpack.c.l.bf16 %v1113_v34 }
  0x35   :  { %v327_v43 = vmax.f32 %v263_v36, 0.0  ;;  %v265_v45 = vadd.f32 %v1192_v7, %v194_v38  ;;  %v1033_v48 = vpack.c.bf16 %v325_v39, %v324_v31  ;;  %v196_v49 = vmul.f32 %v897_v41, %v1178_v1  ;;  %v1120_v39 = vld [vmem:[%s1502_s0 + $0xf8] sm:$0xff]  }
  0x36   :  { %v266_v50 = vadd.f32 %v1192_v7, %v195_v42  ;;  %v901_v51 = vunpack.c.h.bf16 %v1113_v34  ;;  %v328_v54 = vmax.f32 %v264_v44, 0.0  ;;  %v197_v56 = vmul.f32 %v900_v46, %v1178_v1  ;;  %v1119_v34 = vld [vmem:[%s1502_s0 + $0xf0] sm:$0xff]  }
  0x37   :  { %v1038_v53 = vpack.c.bf16 %v327_v43, %v326_v40  ;;  %v329_v55 = vmax.f32 %v265_v45, 0.0  ;;  %1140 = vst [vmem:[%s1505_s3 + $0xa0] sm:$0xff] %v1033_v48   ;;  %v267_v57 = vadd.f32 %v1192_v7, %v196_v49  ;;  %v904_v60 = vunpack.c.l.bf16 %v1114_v47 }
  0x38   :  { %v330_v58 = vmax.f32 %v266_v50, 0.0  ;;  %v198_v59 = vmul.f32 %v901_v51, %v1178_v1  ;;  %v268_v63 = vadd.f32 %v1192_v7, %v197_v56  ;;  %v905_v0 = vunpack.c.h.bf16 %v1114_v47 }
  0x39   :  { %1141 = vst [vmem:[%s1505_s3 + $0xa8] sm:$0xff] %v1038_v53   ;;  %v1043_v62 = vpack.c.bf16 %v329_v55, %v328_v54  ;;  %v908_v2 = vunpack.c.l.bf16 %v1115_v52  ;;  %v331_v3 = vmax.f32 %v267_v57, 0.0  ;;  %v199_v5 = vmul.f32 %v904_v60, %v1178_v1 }
  0x3a   :  { %v269_v4 = vadd.f32 %v1192_v7, %v198_v59  ;;  %v909_v6 = vunpack.c.h.bf16 %v1115_v52  ;;  %v332_v8 = vmax.f32 %v268_v63, 0.0  ;;  %v200_v9 = vmul.f32 %v905_v0, %v1178_v1 }
  0x3b   :  { %1142 = vst [vmem:[%s1505_s3 + $0xb0] sm:$0xff] %v1043_v62   ;;  %v201_v10 = vmul.f32 %v908_v2, %v1178_v1  ;;  %v912_v11 = vunpack.c.l.bf16 %v1116_v61  ;;  %v1048_v13 = vpack.c.bf16 %v331_v3, %v330_v58  ;;  %v270_v15 = vadd.f32 %v1192_v7, %v199_v5 }
  0x3c   :  { %v333_v14 = vmax.f32 %v269_v4, 0.0  ;;  %v202_v16 = vmul.f32 %v909_v6, %v1178_v1  ;;  %v271_v17 = vadd.f32 %v1192_v7, %v200_v9  ;;  %v913_v19 = vunpack.c.h.bf16 %v1116_v61 }
  0x3d   :  { %v272_v18 = vadd.f32 %v1192_v7, %v201_v10  ;;  %v203_v20 = vmul.f32 %v912_v11, %v1178_v1  ;;  %1143 = vst [vmem:[%s1505_s3 + $0xb8] sm:$0xff] %v1048_v13   ;;  %v334_v23 = vmax.f32 %v270_v15, 0.0  ;;  %v916_v25 = vunpack.c.l.bf16 %v1117_v12 }
  0x3e   :  { %v1053_v22 = vpack.c.bf16 %v333_v14, %v332_v8  ;;  %v273_v24 = vadd.f32 %v1192_v7, %v202_v16  ;;  %v335_v26 = vmax.f32 %v271_v17, 0.0  ;;  %v204_v28 = vmul.f32 %v913_v19, %v1178_v1 }
  0x3f   :  { %v336_v27 = vmax.f32 %v272_v18, 0.0  ;;  %v274_v29 = vadd.f32 %v1192_v7, %v203_v20  ;;  %v917_v31 = vunpack.c.h.bf16 %v1117_v12  ;;  %v205_v32 = vmul.f32 %v916_v25, %v1178_v1 }
  0x40   :  { %1144 = vst [vmem:[%s1505_s3 + $0xc0] sm:$0xff] %v1053_v22   ;;  %v337_v30 = vmax.f32 %v273_v24, 0.0  ;;  %v920_v33 = vunpack.c.l.bf16 %v1118_v21  ;;  %v1058_v35 = vpack.c.bf16 %v335_v26, %v334_v23  ;;  %v275_v36 = vadd.f32 %v1192_v7, %v204_v28 }
  0x41   :  { %v338_v37 = vmax.f32 %v274_v29, 0.0  ;;  %v921_v38 = vunpack.c.h.bf16 %v1118_v21  ;;  %v206_v41 = vmul.f32 %v917_v31, %v1178_v1  ;;  %v276_v42 = vadd.f32 %v1192_v7, %v205_v32 }
  0x42   :  { %v1063_v40 = vpack.c.bf16 %v337_v30, %v336_v27  ;;  %v207_v43 = vmul.f32 %v920_v33, %v1178_v1  ;;  %1145 = vst [vmem:[%s1505_s3 + $0xc8] sm:$0xff] %v1058_v35   ;;  %v339_v44 = vmax.f32 %v275_v36, 0.0  ;;  %v924_v46 = vunpack.c.l.bf16 %v1119_v34 }
  0x43   :  { %v208_v45 = vmul.f32 %v921_v38, %v1178_v1  ;;  %v925_v47 = vunpack.c.h.bf16 %v1119_v34  ;;  %v277_v48 = vadd.f32 %v1192_v7, %v206_v41  ;;  %v340_v49 = vmax.f32 %v276_v42, 0.0 }
  0x44   :  { %1146 = vst [vmem:[%s1505_s3 + $0xd0] sm:$0xff] %v1063_v40   ;;  %v278_v50 = vadd.f32 %v1192_v7, %v207_v43  ;;  %v928_v51 = vunpack.c.l.bf16 %v1120_v39  ;;  %v1068_v52 = vpack.c.bf16 %v339_v44, %v338_v37  ;;  %v209_v54 = vmul.f32 %v924_v46, %v1178_v1 }
  0x45   :  { %v279_v53 = vadd.f32 %v1192_v7, %v208_v45  ;;  %v210_v55 = vmul.f32 %v925_v47, %v1178_v1  ;;  %v341_v56 = vmax.f32 %v277_v48, 0.0  ;;  %v929_v58 = vunpack.c.h.bf16 %v1120_v39 }
  0x46   :  { %v342_v57 = vmax.f32 %v278_v50, 0.0  ;;  %v211_v59 = vmul.f32 %v928_v51, %v1178_v1  ;;  %1147 = vst [vmem:[%s1505_s3 + $0xd8] sm:$0xff] %v1068_v52   ;;  %v280_v61 = vadd.f32 %v1192_v7, %v209_v54 }
  0x47   :  { %v343_v60 = vmax.f32 %v279_v53, 0.0  ;;  %v281_v62 = vadd.f32 %v1192_v7, %v210_v55  ;;  %v1073_v63 = vpack.c.bf16 %v341_v56, %v340_v49  ;;  %v212_v0 = vmul.f32 %v929_v58, %v1178_v1 }
  0x48   :  { %v282_v2 = vadd.f32 %v1192_v7, %v211_v59  ;;  %v344_v4 = vmax.f32 %v280_v61, 0.0 }
  0x49   :  { %v1078_v3 = vpack.c.bf16 %v343_v60, %v342_v57  ;;  %v345_v5 = vmax.f32 %v281_v62, 0.0  ;;  %1148 = vst [vmem:[%s1505_s3 + $0xe0] sm:$0xff] %v1073_v63   ;;  %v283_v6 = vadd.f32 %v1192_v7, %v212_v0 }
  0x4a   :  { %v346_v8 = vmax.f32 %v282_v2, 0.0 }
  0x4b   :  { %1149 = vst [vmem:[%s1505_s3 + $0xe8] sm:$0xff] %v1078_v3   ;;  %v1083_v9 = vpack.c.bf16 %v345_v5, %v344_v4  ;;  %v347_v10 = vmax.f32 %v283_v6, 0.0 }
  0x4d   :  { %1150 = vst [vmem:[%s1505_s3 + $0xf0] sm:$0xff] %v1083_v9   ;;  %v1088_v1 = vpack.c.bf16 %v347_v10, %v346_v8 }
  0x4f   :  { %1151 = vst [vmem:[%s1505_s3 + $0xf8] sm:$0xff] %v1088_v1  }

// kernel: encoder_forward.8
= control target key start
LH: loop header
LB: loop body
LE: loop exit
PB: predicated region body
PF: predicated region fallthrough
CT: control target
= control target key end

     0   :  { %vm246_vm0 = vcmask 130048   ;;  %vm1154_vm1 = vcmask 1040384   ;;  %s2125_s1 = inlined_call_operand.vmem [shape: bf16[16,128], index: 1, kind: input, shape index: {}]   ;;  %s2126_s0 = inlined_call_operand.vmem [shape: bf16[512,16], index: 0, kind: input, shape index: {}]   ;;  %s2127_s2 = inlined_call_operand.vmem [shape: bf16[512,128], index: 2, kind: output, shape index: {0}]   ;;  %s2128_s3 = inlined_call_operand.vmem [shape: f32[1,2,128], index: 3, kind: output, shape index: {1}]  }
   0x1   :  { %v1650_v0 = vld [vmem:[%s2125_s1] sm:$0xff]   ;;  %v1652_v2 = vld [vmem:[%s2126_s0 + $0x8] sm:$0xff]   ;;  %v1653_v3 = vld [vmem:[%s2126_s0 + $0x10] sm:$0xff]  }
   0x2   :  { %v1651_v1 = vld [vmem:[%s2126_s0] sm:$0xff]   ;;  %1582 = vmatprep.subr.bf16.mxu0 %v1650_v0  ;;  %1648 = vmatprep.subr.bf16.mxu1 %v1650_v0  ;;  %v1654_v4 = vld [vmem:[%s2126_s0 + $0x18] sm:$0xff]   ;;  %v1656_v6 = vld [vmem:[%s2126_s0 + $0x28] sm:$0xff]  }
   0x3   :  { %1583 = vmatpush3.bf16.msra.mxu0 %v1650_v0  ;;  %1584 = vmatprep.mubr.msk.bf16.mxu0 %vm246_vm0, %v1651_v1  ;;  %v1655_v5 = vld [vmem:[%s2126_s0 + $0x20] sm:$0xff]   ;;  %v1657_v7 = vld [vmem:[%s2126_s0 + $0x30] sm:$0xff]   ;;  %v1668_v9 = vld [vmem:[%s2126_s0 + $0x88] sm:$0xff]  }
   0x4   :  { %1649 = vmatpush3.bf16.msra.mxu1 %v1650_v0  ;;  %v1667_v8 = vld [vmem:[%s2126_s0 + $0x80] sm:$0xff]   ;;  %v1669_v10 = vld [vmem:[%s2126_s0 + $0x90] sm:$0xff]   ;;  %v1670_v11 = vld [vmem:[%s2126_s0 + $0x98] sm:$0xff]  }
   0x5   :  { %1616 = vmatprep.mubr.msk.bf16.mxu1 %vm246_vm0, %v1667_v8  ;;  %v1671_v12 = vld [vmem:[%s2126_s0 + $0xa0] sm:$0xff]   ;;  %v1658_v13 = vld [vmem:[%s2126_s0 + $0x38] sm:$0xff]   ;;  %v1672_v15 = vld [vmem:[%s2126_s0 + $0xa8] sm:$0xff]  }
   0x6   :  { %1585 = vmatmul.mubr.msk.bf16.vlgmr.msra.gmra.mrb[0].mxu0 %vm246_vm0, %v1652_v2  ;;  %v1659_v14 = vld [vmem:[%s2126_s0 + $0x40] sm:$0xff]   ;;  %v1673_v16 = vld [vmem:[%s2126_s0 + $0xb0] sm:$0xff]   ;;  %v1660_v17 = vld [vmem:[%s2126_s0 + $0x48] sm:$0xff]  }
   0x7   :  { %1588 = vmatprep.mubr.msk.bf16.mxu0 %vm246_vm0, %v1653_v3  ;;  %1617 = vmatmul.mubr.msk.bf16.vlgmr.msra.gmra.mrb[0].mxu1 %vm246_vm0, %v1668_v9  ;;  %v1661_v18 = vld [vmem:[%s2126_s0 + $0x50] sm:$0xff]   ;;  %v1674_v19 = vld [vmem:[%s2126_s0 + $0xb8] sm:$0xff]   ;;  %v1675_v20 = vld [vmem:[%s2126_s0 + $0xc0] sm:$0xff]  }
   0x8   :  { %1620 = vmatprep.mubr.msk.bf16.mxu1 %vm246_vm0, %v1669_v10  ;;  %v1662_v21 = vld [vmem:[%s2126_s0 + $0x58] sm:$0xff]   ;;  %v1663_v22 = vld [vmem:[%s2126_s0 + $0x60] sm:$0xff]   ;;  %v1676_v23 = vld [vmem:[%s2126_s0 + $0xc8] sm:$0xff]  }
   0x9   :  { %v1677_v24 = vld [vmem:[%s2126_s0 + $0xd0] sm:$0xff]   ;;  %v1664_v25 = vld [vmem:[%s2126_s0 + $0x68] sm:$0xff]   ;;  %v1678_v27 = vld [vmem:[%s2126_s0 + $0xd8] sm:$0xff]  }
   0xa   :  { %v1665_v26 = vld [vmem:[%s2126_s0 + $0x70] sm:$0xff]   ;;  %v1679_v28 = vld [vmem:[%s2126_s0 + $0xe0] sm:$0xff]   ;;  %v1666_v29 = vld [vmem:[%s2126_s0 + $0x78] sm:$0xff]  }
   0xb   :  { %v1680_v30 = vld [vmem:[%s2126_s0 + $0xe8] sm:$0xff]   ;;  %v1681_v31 = vld [vmem:[%s2126_s0 + $0xf0] sm:$0xff]   ;;  %v1682_v32 = vld [vmem:[%s2126_s0 + $0xf8] sm:$0xff]  }
   0xe   :  { %1589 = vmatmul.mubr.msk.bf16.gmra.mrb[4].mxu0 %vm246_vm0, %v1654_v4 }
   0xf   :  { %1592 = vmatprep.mubr.msk.bf16.mxu0 %vm246_vm0, %v1655_v5  ;;  %1621 = vmatmul.mubr.msk.bf16.gmra.mrb[4].mxu1 %vm246_vm0, %v1670_v11 }
  0x10   :  { %1624 = vmatprep.mubr.msk.bf16.mxu1 %vm246_vm0, %v1671_v12 }
  0x16   :  { %1593 = vmatmul.mubr.msk.bf16.gmra.mrb[8].mxu0 %vm246_vm0, %v1656_v6 }
  0x17   :  { %1596 = vmatprep.mubr.msk.bf16.mxu0 %vm246_vm0, %v1657_v7  ;;  %1625 = vmatmul.mubr.msk.bf16.gmra.mrb[8].mxu1 %vm246_vm0, %v1672_v15 }
  0x18   :  { %1628 = vmatprep.mubr.msk.bf16.mxu1 %vm246_vm0, %v1673_v16 }
  0x1e   :  { %1597 = vmatmul.mubr.msk.bf16.gmra.mrb[12].mxu0 %vm246_vm0, %v1658_v13 }
  0x1f   :  { %1600 = vmatprep.mubr.msk.bf16.mxu0 %vm246_vm0, %v1659_v14  ;;  %1629 = vmatmul.mubr.msk.bf16.gmra.mrb[12].mxu1 %vm246_vm0, %v1674_v19 }
  0x20   :  { %1632 = vmatprep.mubr.msk.bf16.mxu1 %vm246_vm0, %v1675_v20 }
  0x26   :  { %1601 = vmatmul.mubr.msk.bf16.gmra.mrb[16].mxu0 %vm246_vm0, %v1660_v17 }
  0x27   :  { %1604 = vmatprep.mubr.msk.bf16.mxu0 %vm246_vm0, %v1661_v18  ;;  %1633 = vmatmul.mubr.msk.bf16.gmra.mrb[16].mxu1 %vm246_vm0, %v1676_v23 }
  0x28   :  { %1636 = vmatprep.mubr.msk.bf16.mxu1 %vm246_vm0, %v1677_v24 }
  0x2e   :  { %1605 = vmatmul.mubr.msk.bf16.gmra.mrb[20].mxu0 %vm246_vm0, %v1662_v21 }
  0x2f   :  { %1608 = vmatprep.mubr.msk.bf16.mxu0 %vm246_vm0, %v1663_v22  ;;  %1637 = vmatmul.mubr.msk.bf16.gmra.mrb[20].mxu1 %vm246_vm0, %v1678_v27 }
  0x30   :  { %1640 = vmatprep.mubr.msk.bf16.mxu1 %vm246_vm0, %v1679_v28 }
  0x36   :  { %1609 = vmatmul.mubr.msk.bf16.gmra.mrb[24].mxu0 %vm246_vm0, %v1664_v25 }
  0x37   :  { %1612 = vmatprep.mubr.msk.bf16.mxu0 %vm246_vm0, %v1665_v26  ;;  %1641 = vmatmul.mubr.msk.bf16.gmra.mrb[24].mxu1 %vm246_vm0, %v1680_v30 }
  0x38   :  { %1644 = vmatprep.mubr.msk.bf16.mxu1 %vm246_vm0, %v1681_v31 }
  0x3e   :  { %1613 = vmatmul.mubr.msk.bf16.gmra.mrb[28].mxu0 %vm246_vm0, %v1666_v29 }
  0x3f   :  { %1645 = vmatmul.mubr.msk.bf16.gmra.mrb[28].mxu1 %vm246_vm0, %v1682_v32 }
  0xd9   :  { %v1586_v33 = vpop.f32.mrb[0].mxu0 }
  0xda   :  { %v377_v34 = vpop.f32.mrb[1].mxu0  ;;  %v1023_v42 = vmul.f32 %v1586_v33, %v1586_v33  ;;  %v1846_v63 = vpop.f32.mrb[0].mxu1 }
  0xdb   :  { %v1587_v35 = vpop.f32.mrb[2].mxu0  ;;  %v1021_v38 = vmul.f32 %v377_v34, %v377_v34  ;;  %v1848_v0 = vpop.f32.mrb[1].mxu1 }
  0xdc   :  { %v1366_v36 = vpack.c.bf16 %v1587_v35, %v1586_v33  ;;  %v380_v37 = vpop.f32.mrb[3].mxu0  ;;  %v1024_v45 = vmul.f32 %v1587_v35, %v1587_v35  ;;  %v1850_v5 = vpop.f32.mrb[2].mxu1 }
  0xdd   :  { %v1361_v39 = vpack.c.bf16 %v380_v37, %v377_v34  ;;  %v952_v40 = vadd.f32 %v380_v37, %v377_v34  ;;  %v1022_v41 = vmul.f32 %v380_v37, %v380_v37  ;;  %v1446_v7 = vpack.c.bf16 %v1850_v5, %v1846_v63  ;;  %v1854_v8 = vpop.f32.mrb[3].mxu1 }
  0xde   :  { %1518 = vst [vmem:[%s2127_s2 + $0x8] sm:$0xff] %v1366_v36   ;;  %v1441_v13 = vpack.c.bf16 %v1854_v8, %v1848_v0 }
  0xdf   :  { %1362 = vst [vmem:[%s2127_s2] sm:$0xff] %v1361_v39   ;;  %v953_v43 = vadd.f32 %v1586_v33, %v952_v40  ;;  %v1085_v44 = vadd.f32 %v1022_v41, %v1021_v38  ;;  %1534 = vst [vmem:[%s2127_s2 + $0x88] sm:$0xff] %v1446_v7  }
  0xe0   :  { %1533 = vst [vmem:[%s2127_s2 + $0x80] sm:$0xff] %v1441_v13  }
  0xe1   :  { %v1086_v46 = vadd.f32 %v1085_v44, %v1023_v42  ;;  %v1590_v47 = vpop.f32.mrb[4].mxu0  ;;  %v954_v48 = vadd.f32 %v1587_v35, %v953_v43 }
  0xe2   :  { %v393_v49 = vpop.f32.mrb[5].mxu0  ;;  %v1027_v60 = vmul.f32 %v1590_v47, %v1590_v47  ;;  %v1870_v23 = vpop.f32.mrb[4].mxu1 }
  0xe3   :  { %v955_v50 = vadd.f32 %v954_v48, %v393_v49  ;;  %v1025_v51 = vmul.f32 %v393_v49, %v393_v49  ;;  %v1087_v52 = vadd.f32 %v1086_v46, %v1024_v45  ;;  %v1591_v53 = vpop.f32.mrb[6].mxu0  ;;  %v1872_v24 = vpop.f32.mrb[5].mxu1 }
  0xe4   :  { %v1376_v54 = vpack.c.bf16 %v1591_v53, %v1590_v47  ;;  %v396_v55 = vpop.f32.mrb[7].mxu0  ;;  %v1028_v1 = vmul.f32 %v1591_v53, %v1591_v53  ;;  %v1874_v29 = vpop.f32.mrb[6].mxu1 }
  0xe5   :  { %v1088_v56 = vadd.f32 %v1087_v52, %v1025_v51  ;;  %v1371_v57 = vpack.c.bf16 %v396_v55, %v393_v49  ;;  %v956_v58 = vadd.f32 %v955_v50, %v396_v55  ;;  %v1026_v59 = vmul.f32 %v396_v55, %v396_v55  ;;  %v1878_v32 = vpop.f32.mrb[7].mxu1 }
  0xe6   :  { %1520 = vst [vmem:[%s2127_s2 + $0x18] sm:$0xff] %v1376_v54   ;;  %v1456_v31 = vpack.c.bf16 %v1874_v29, %v1870_v23  ;;  %v1451_v37 = vpack.c.bf16 %v1878_v32, %v1872_v24 }
  0xe7   :  { %1519 = vst [vmem:[%s2127_s2 + $0x10] sm:$0xff] %v1371_v57   ;;  %v957_v61 = vadd.f32 %v1590_v47, %v956_v58  ;;  %v1089_v62 = vadd.f32 %v1088_v56, %v1026_v59 }
  0xe8   :  { %1536 = vst [vmem:[%s2127_s2 + $0x98] sm:$0xff] %v1456_v31   ;;  %1535 = vst [vmem:[%s2127_s2 + $0x90] sm:$0xff] %v1451_v37  }
  0xe9   :  { %v1090_v2 = vadd.f32 %v1089_v62, %v1027_v60  ;;  %v1594_v3 = vpop.f32.mrb[8].mxu0  ;;  %v958_v4 = vadd.f32 %v1591_v53, %v957_v61 }
  0xea   :  { %v409_v6 = vpop.f32.mrb[9].mxu0  ;;  %v1031_v20 = vmul.f32 %v1594_v3, %v1594_v3  ;;  %v1894_v47 = vpop.f32.mrb[8].mxu1 }
  0xeb   :  { %v959_v9 = vadd.f32 %v958_v4, %v409_v6  ;;  %v1029_v10 = vmul.f32 %v409_v6, %v409_v6  ;;  %v1091_v11 = vadd.f32 %v1090_v2, %v1028_v1  ;;  %v1595_v12 = vpop.f32.mrb[10].mxu0  ;;  %v1896_v48 = vpop.f32.mrb[9].mxu1 }
  0xec   :  { %v1386_v14 = vpack.c.bf16 %v1595_v12, %v1594_v3  ;;  %v412_v15 = vpop.f32.mrb[11].mxu0  ;;  %v1032_v25 = vmul.f32 %v1595_v12, %v1595_v12  ;;  %v1898_v53 = vpop.f32.mrb[10].mxu1 }
  0xed   :  { %v1092_v16 = vadd.f32 %v1091_v11, %v1029_v10  ;;  %v1381_v17 = vpack.c.bf16 %v412_v15, %v409_v6  ;;  %v960_v18 = vadd.f32 %v959_v9, %v412_v15  ;;  %v1030_v19 = vmul.f32 %v412_v15, %v412_v15  ;;  %v1902_v56 = vpop.f32.mrb[11].mxu1 }
  0xee   :  { %1522 = vst [vmem:[%s2127_s2 + $0x28] sm:$0xff] %v1386_v14   ;;  %v1466_v55 = vpack.c.bf16 %v1898_v53, %v1894_v47  ;;  %v1461_v61 = vpack.c.bf16 %v1902_v56, %v1896_v48 }
  0xef   :  { %1521 = vst [vmem:[%s2127_s2 + $0x20] sm:$0xff] %v1381_v17   ;;  %v961_v21 = vadd.f32 %v1594_v3, %v960_v18  ;;  %v1093_v22 = vadd.f32 %v1092_v16, %v1030_v19 }
  0xf0   :  { %1538 = vst [vmem:[%s2127_s2 + $0xa8] sm:$0xff] %v1466_v55   ;;  %1537 = vst [vmem:[%s2127_s2 + $0xa0] sm:$0xff] %v1461_v61  }
  0xf1   :  { %v1094_v26 = vadd.f32 %v1093_v22, %v1031_v20  ;;  %v1598_v27 = vpop.f32.mrb[12].mxu0  ;;  %v962_v28 = vadd.f32 %v1595_v12, %v961_v21 }
  0xf2   :  { %v425_v30 = vpop.f32.mrb[13].mxu0  ;;  %v1035_v44 = vmul.f32 %v1598_v27, %v1598_v27  ;;  %v1918_v11 = vpop.f32.mrb[12].mxu1 }
  0xf3   :  { %v963_v33 = vadd.f32 %v962_v28, %v425_v30  ;;  %v1033_v34 = vmul.f32 %v425_v30, %v425_v30  ;;  %v1095_v35 = vadd.f32 %v1094_v26, %v1032_v25  ;;  %v1599_v36 = vpop.f32.mrb[14].mxu0  ;;  %v1920_v12 = vpop.f32.mrb[13].mxu1 }
  0xf4   :  { %v1396_v38 = vpack.c.bf16 %v1599_v36, %v1598_v27  ;;  %v428_v39 = vpop.f32.mrb[15].mxu0  ;;  %v1036_v49 = vmul.f32 %v1599_v36, %v1599_v36  ;;  %v1922_v17 = vpop.f32.mrb[14].mxu1 }
  0xf5   :  { %v1096_v40 = vadd.f32 %v1095_v35, %v1033_v34  ;;  %v1391_v41 = vpack.c.bf16 %v428_v39, %v425_v30  ;;  %v964_v42 = vadd.f32 %v963_v33, %v428_v39  ;;  %v1034_v43 = vmul.f32 %v428_v39, %v428_v39  ;;  %v1926_v20 = vpop.f32.mrb[15].mxu1 }
  0xf6   :  { %1524 = vst [vmem:[%s2127_s2 + $0x38] sm:$0xff] %v1396_v38   ;;  %v1476_v19 = vpack.c.bf16 %v1922_v17, %v1918_v11 }
  0xf7   :  { %1523 = vst [vmem:[%s2127_s2 + $0x30] sm:$0xff] %v1391_v41   ;;  %v965_v45 = vadd.f32 %v1598_v27, %v964_v42  ;;  %v1097_v46 = vadd.f32 %v1096_v40, %v1034_v43  ;;  %v1471_v27 = vpack.c.bf16 %v1926_v20, %v1920_v12 }
  0xf8   :  { %1540 = vst [vmem:[%s2127_s2 + $0xb8] sm:$0xff] %v1476_v19  }
  0xf9   :  { %v1098_v50 = vadd.f32 %v1097_v46, %v1035_v44  ;;  %v1602_v51 = vpop.f32.mrb[16].mxu0  ;;  %v966_v52 = vadd.f32 %v1599_v36, %v965_v45  ;;  %1539 = vst [vmem:[%s2127_s2 + $0xb0] sm:$0xff] %v1471_v27  }
  0xfa   :  { %v441_v54 = vpop.f32.mrb[17].mxu0  ;;  %v1039_v7 = vmul.f32 %v1602_v51, %v1602_v51  ;;  %v1942_v39 = vpop.f32.mrb[16].mxu1 }
  0xfb   :  { %v967_v57 = vadd.f32 %v966_v52, %v441_v54  ;;  %v1037_v58 = vmul.f32 %v441_v54, %v441_v54  ;;  %v1099_v59 = vadd.f32 %v1098_v50, %v1036_v49  ;;  %v1603_v60 = vpop.f32.mrb[18].mxu0  ;;  %v1944_v40 = vpop.f32.mrb[17].mxu1 }
  0xfc   :  { %v1406_v62 = vpack.c.bf16 %v1603_v60, %v1602_v51  ;;  %v444_v1 = vpop.f32.mrb[19].mxu0  ;;  %v1040_v13 = vmul.f32 %v1603_v60, %v1603_v60  ;;  %v1946_v45 = vpop.f32.mrb[18].mxu1 }
  0xfd   :  { %v1100_v2 = vadd.f32 %v1099_v59, %v1037_v58  ;;  %v1401_v3 = vpack.c.bf16 %v444_v1, %v441_v54  ;;  %v968_v4 = vadd.f32 %v967_v57, %v444_v1  ;;  %v1038_v6 = vmul.f32 %v444_v1, %v444_v1  ;;  %v1950_v50 = vpop.f32.mrb[19].mxu1 }
  0xfe   :  { %1526 = vst [vmem:[%s2127_s2 + $0x48] sm:$0xff] %v1406_v62   ;;  %v1486_v49 = vpack.c.bf16 %v1946_v45, %v1942_v39  ;;  %v1481_v57 = vpack.c.bf16 %v1950_v50, %v1944_v40 }
  0xff   :  { %1525 = vst [vmem:[%s2127_s2 + $0x40] sm:$0xff] %v1401_v3   ;;  %v969_v9 = vadd.f32 %v1602_v51, %v968_v4  ;;  %v1101_v10 = vadd.f32 %v1100_v2, %v1038_v6 }
 0x100   :  { %1542 = vst [vmem:[%s2127_s2 + $0xc8] sm:$0xff] %v1486_v49   ;;  %1541 = vst [vmem:[%s2127_s2 + $0xc0] sm:$0xff] %v1481_v57   ;;  %v1053_v49 = vmul.f32 %v1848_v0, %v1848_v0 }
 0x101   :  { %v1102_v14 = vadd.f32 %v1101_v10, %v1039_v7  ;;  %v1606_v15 = vpop.f32.mrb[20].mxu0  ;;  %v970_v16 = vadd.f32 %v1603_v60, %v969_v9 }
 0x102   :  { %v457_v18 = vpop.f32.mrb[21].mxu0  ;;  %v1043_v36 = vmul.f32 %v1606_v15, %v1606_v15  ;;  %v1966_v6 = vpop.f32.mrb[20].mxu1 }
 0x103   :  { %v971_v21 = vadd.f32 %v970_v16, %v457_v18  ;;  %v1041_v22 = vmul.f32 %v457_v18, %v457_v18  ;;  %v1103_v25 = vadd.f32 %v1102_v14, %v1040_v13  ;;  %v1607_v26 = vpop.f32.mrb[22].mxu0  ;;  %v1968_v7 = vpop.f32.mrb[21].mxu1 }
 0x104   :  { %v1416_v28 = vpack.c.bf16 %v1607_v26, %v1606_v15  ;;  %v460_v30 = vpop.f32.mrb[23].mxu0  ;;  %v1044_v41 = vmul.f32 %v1607_v26, %v1607_v26 }
 0x105   :  { %v1104_v31 = vadd.f32 %v1103_v25, %v1041_v22  ;;  %v1411_v33 = vpack.c.bf16 %v460_v30, %v457_v18  ;;  %v972_v34 = vadd.f32 %v971_v21, %v460_v30  ;;  %v1042_v35 = vmul.f32 %v460_v30, %v460_v30 }
 0x106   :  { %1528 = vst [vmem:[%s2127_s2 + $0x58] sm:$0xff] %v1416_v28  }
 0x107   :  { %1527 = vst [vmem:[%s2127_s2 + $0x50] sm:$0xff] %v1411_v33   ;;  %v973_v37 = vadd.f32 %v1606_v15, %v972_v34  ;;  %v1105_v38 = vadd.f32 %v1104_v31, %v1042_v35  ;;  %v1970_v15 = vpop.f32.mrb[22].mxu1 }
 0x108   :  { %v1496_v18 = vpack.c.bf16 %v1970_v15, %v1966_v6  ;;  %v1974_v19 = vpop.f32.mrb[23].mxu1 }
 0x109   :  { %v1106_v42 = vadd.f32 %v1105_v38, %v1043_v36  ;;  %v1610_v43 = vpop.f32.mrb[24].mxu0  ;;  %v974_v44 = vadd.f32 %v1607_v26, %v973_v37  ;;  %v1491_v27 = vpack.c.bf16 %v1974_v19, %v1968_v7 }
 0x10a   :  { %v473_v46 = vpop.f32.mrb[25].mxu0  ;;  %v1047_v2 = vmul.f32 %v1610_v43, %v1610_v43  ;;  %1544 = vst [vmem:[%s2127_s2 + $0xd8] sm:$0xff] %v1496_v18  }
 0x10b   :  { %v975_v51 = vadd.f32 %v974_v44, %v473_v46  ;;  %v1045_v52 = vmul.f32 %v473_v46, %v473_v46  ;;  %v1107_v54 = vadd.f32 %v1106_v42, %v1044_v41  ;;  %v1611_v55 = vpop.f32.mrb[26].mxu0  ;;  %1543 = vst [vmem:[%s2127_s2 + $0xd0] sm:$0xff] %v1491_v27   ;;  %v1990_v41 = vpop.f32.mrb[24].mxu1 }
 0x10c   :  { %v1426_v58 = vpack.c.bf16 %v1611_v55, %v1610_v43  ;;  %v476_v59 = vpop.f32.mrb[27].mxu0  ;;  %v1048_v9 = vmul.f32 %v1611_v55, %v1611_v55  ;;  %v1992_v42 = vpop.f32.mrb[25].mxu1 }
 0x10d   :  { %v1108_v60 = vadd.f32 %v1107_v54, %v1045_v52  ;;  %v1421_v61 = vpack.c.bf16 %v476_v59, %v473_v46  ;;  %v976_v62 = vadd.f32 %v975_v51, %v476_v59  ;;  %v1046_v1 = vmul.f32 %v476_v59, %v476_v59  ;;  %v1996_v51 = vpop.f32.mrb[26].mxu1 }
 0x10e   :  { %1530 = vst [vmem:[%s2127_s2 + $0x68] sm:$0xff] %v1426_v58   ;;  %v1506_v52 = vpack.c.bf16 %v1996_v51, %v1990_v41  ;;  %v2000_v54 = vpop.f32.mrb[27].mxu1 }
 0x10f   :  { %1529 = vst [vmem:[%s2127_s2 + $0x60] sm:$0xff] %v1421_v61   ;;  %v977_v3 = vadd.f32 %v1610_v43, %v976_v62  ;;  %v1109_v4 = vadd.f32 %v1108_v60, %v1046_v1  ;;  %v1501_v58 = vpack.c.bf16 %v2000_v54, %v1992_v42  ;;  %v1054_v61 = vmul.f32 %v1854_v8, %v1854_v8 }
 0x110   :  { %1546 = vst [vmem:[%s2127_s2 + $0xe8] sm:$0xff] %v1506_v52  }
 0x111   :  { %v1110_v10 = vadd.f32 %v1109_v4, %v1047_v2  ;;  %v1614_v13 = vpop.f32.mrb[28].mxu0  ;;  %v978_v14 = vadd.f32 %v1611_v55, %v977_v3  ;;  %1545 = vst [vmem:[%s2127_s2 + $0xe0] sm:$0xff] %v1501_v58   ;;  %v1056_v4 = vmul.f32 %v1850_v5, %v1850_v5 }
 0x112   :  { %v489_v16 = vpop.f32.mrb[29].mxu0  ;;  %v1051_v36 = vmul.f32 %v1614_v13, %v1614_v13  ;;  %v2017_v2 = vpop.f32.mrb[28].mxu1 }
 0x113   :  { %v979_v21 = vadd.f32 %v978_v14, %v489_v16  ;;  %v1049_v22 = vmul.f32 %v489_v16, %v489_v16  ;;  %v1111_v25 = vadd.f32 %v1110_v10, %v1048_v9  ;;  %v1615_v26 = vpop.f32.mrb[30].mxu0  ;;  %v2019_v3 = vpop.f32.mrb[29].mxu1  ;;  %v1057_v10 = vmul.f32 %v1872_v24, %v1872_v24 }
 0x114   :  { %v1436_v28 = vpack.c.bf16 %v1615_v26, %v1614_v13  ;;  %v492_v30 = vpop.f32.mrb[31].mxu0  ;;  %v1052_v43 = vmul.f32 %v1615_v26, %v1615_v26 }
 0x115   :  { %v1112_v31 = vadd.f32 %v1111_v25, %v1049_v22  ;;  %v1431_v33 = vpack.c.bf16 %v492_v30, %v489_v16  ;;  %v980_v34 = vadd.f32 %v979_v21, %v492_v30  ;;  %v1050_v35 = vmul.f32 %v492_v30, %v492_v30 }
 0x116   :  { %1532 = vst [vmem:[%s2127_s2 + $0x78] sm:$0xff] %v1436_v28   ;;  %v1058_v25 = vmul.f32 %v1878_v32, %v1878_v32  ;;  %v1060_v28 = vmul.f32 %v1874_v29, %v1874_v29 }
 0x117   :  { %1531 = vst [vmem:[%s2127_s2 + $0x70] sm:$0xff] %v1431_v33   ;;  %v981_v37 = vadd.f32 %v1614_v13, %v980_v34  ;;  %v1113_v38 = vadd.f32 %v1112_v31, %v1050_v35  ;;  %v2026_v13 = vpop.f32.mrb[30].mxu1  ;;  %v1061_v33 = vmul.f32 %v1896_v48, %v1896_v48 }
 0x118   :  { %v1516_v14 = vpack.c.bf16 %v2026_v13, %v2017_v2 }
 0x119   :  { %v1114_v44 = vadd.f32 %v1113_v38, %v1051_v36  ;;  %v982_v46 = vadd.f32 %v1615_v26, %v981_v37  ;;  %v1062_v37 = vmul.f32 %v1902_v56, %v1902_v56 }
 0x11a   :  { %1548 = vst [vmem:[%s2127_s2 + $0xf8] sm:$0xff] %v1516_v14  }
 0x11b   :  { %v983_v55 = vadd.f32 %v982_v46, %v1848_v0  ;;  %v1115_v57 = vadd.f32 %v1114_v44, %v1052_v43  ;;  %v1055_v0 = vmul.f32 %v1846_v63, %v1846_v63 }
 0x11d   :  { %v1116_v59 = vadd.f32 %v1115_v57, %v1053_v49  ;;  %v984_v60 = vadd.f32 %v983_v55, %v1854_v8  ;;  %v1066_v57 = vmul.f32 %v1926_v20, %v1926_v20 }
 0x11f   :  { %v985_v62 = vadd.f32 %v1846_v63, %v984_v60  ;;  %v1117_v1 = vadd.f32 %v1116_v59, %v1054_v61  ;;  %v2030_v63 = vpop.f32.mrb[31].mxu1 }
 0x120   :  { %v1511_v21 = vpack.c.bf16 %v2030_v63, %v2019_v3 }
 0x121   :  { %v1118_v9 = vadd.f32 %v1117_v1, %v1055_v0  ;;  %v986_v8 = vadd.f32 %v1850_v5, %v985_v62 }
 0x122   :  { %1547 = vst [vmem:[%s2127_s2 + $0xf0] sm:$0xff] %v1511_v21  }
 0x123   :  { %v987_v16 = vadd.f32 %v986_v8, %v1872_v24  ;;  %v1119_v18 = vadd.f32 %v1118_v9, %v1056_v4  ;;  %v1059_v24 = vmul.f32 %v1870_v23, %v1870_v23  ;;  %v1070_v4 = vmul.f32 %v1950_v50, %v1950_v50 }
 0x125   :  { %v1120_v5 = vadd.f32 %v1119_v18, %v1057_v10  ;;  %v988_v22 = vadd.f32 %v987_v16, %v1878_v32 }
 0x127   :  { %v989_v26 = vadd.f32 %v1870_v23, %v988_v22  ;;  %v1121_v27 = vadd.f32 %v1120_v5, %v1058_v25  ;;  %v1063_v23 = vmul.f32 %v1894_v47, %v1894_v47  ;;  %v1074_v5 = vmul.f32 %v1974_v19, %v1974_v19 }
 0x129   :  { %v1122_v30 = vadd.f32 %v1121_v27, %v1059_v24  ;;  %v990_v31 = vadd.f32 %v1874_v29, %v989_v26  ;;  %v1064_v29 = vmul.f32 %v1898_v53, %v1898_v53 }
 0x12b   :  { %v991_v32 = vadd.f32 %v990_v31, %v1896_v48  ;;  %v1123_v34 = vadd.f32 %v1122_v30, %v1060_v28  ;;  %v1065_v48 = vmul.f32 %v1920_v12, %v1920_v12  ;;  %v1078_v31 = vmul.f32 %v2000_v54, %v2000_v54 }
 0x12d   :  { %v1124_v35 = vadd.f32 %v1123_v34, %v1061_v33  ;;  %v992_v36 = vadd.f32 %v991_v32, %v1902_v56 }
 0x12f   :  { %v993_v38 = vadd.f32 %v1894_v47, %v992_v36  ;;  %v1125_v43 = vadd.f32 %v1124_v35, %v1062_v37  ;;  %v1067_v47 = vmul.f32 %v1918_v11, %v1918_v11 }
 0x131   :  { %v1126_v44 = vadd.f32 %v1125_v43, %v1063_v23  ;;  %v994_v46 = vadd.f32 %v1898_v53, %v993_v38  ;;  %v1068_v53 = vmul.f32 %v1922_v17, %v1922_v17  ;;  %v1082_v38 = vmul.f32 %v2030_v63, %v2030_v63 }
 0x133   :  { %v995_v49 = vadd.f32 %v994_v46, %v1920_v12  ;;  %v1127_v52 = vadd.f32 %v1126_v44, %v1064_v29  ;;  %v1069_v12 = vmul.f32 %v1944_v40, %v1944_v40 }
 0x135   :  { %v1128_v55 = vadd.f32 %v1127_v52, %v1065_v48  ;;  %v996_v56 = vadd.f32 %v995_v49, %v1926_v20 }
 0x137   :  { %v997_v58 = vadd.f32 %v1918_v11, %v996_v56  ;;  %v1129_v59 = vadd.f32 %v1128_v55, %v1066_v57  ;;  %v1071_v11 = vmul.f32 %v1942_v39, %v1942_v39 }
 0x139   :  { %v1130_v60 = vadd.f32 %v1129_v59, %v1067_v47  ;;  %v998_v61 = vadd.f32 %v1922_v17, %v997_v58  ;;  %v1072_v17 = vmul.f32 %v1946_v45, %v1946_v45 }
 0x13b   :  { %v999_v0 = vadd.f32 %v998_v61, %v1944_v40  ;;  %v1131_v62 = vadd.f32 %v1130_v60, %v1068_v53  ;;  %v1073_v40 = vmul.f32 %v1968_v7, %v1968_v7 }
 0x13d   :  { %v1132_v1 = vadd.f32 %v1131_v62, %v1069_v12  ;;  %v1000_v20 = vadd.f32 %v999_v0, %v1950_v50 }
 0x13f   :  { %v1001_v9 = vadd.f32 %v1942_v39, %v1000_v20  ;;  %v1133_v8 = vadd.f32 %v1132_v1, %v1070_v4  ;;  %v1075_v39 = vmul.f32 %v1966_v6, %v1966_v6 }
 0x141   :  { %v1134_v10 = vadd.f32 %v1133_v8, %v1071_v11  ;;  %v1002_v14 = vadd.f32 %v1946_v45, %v1001_v9  ;;  %v1076_v45 = vmul.f32 %v1970_v15, %v1970_v15 }
 0x143   :  { %v1003_v16 = vadd.f32 %v1002_v14, %v1968_v7  ;;  %v1135_v18 = vadd.f32 %v1134_v10, %v1072_v17  ;;  %v1077_v7 = vmul.f32 %v1992_v42, %v1992_v42 }
 0x145   :  { %v1136_v21 = vadd.f32 %v1135_v18, %v1073_v40  ;;  %v1004_v50 = vadd.f32 %v1003_v16, %v1974_v19 }
 0x147   :  { %v1005_v22 = vadd.f32 %v1966_v6, %v1004_v50  ;;  %v1137_v25 = vadd.f32 %v1136_v21, %v1074_v5  ;;  %v1079_v6 = vmul.f32 %v1990_v41, %v1990_v41 }
 0x149   :  { %v1138_v24 = vadd.f32 %v1137_v25, %v1075_v39  ;;  %v1006_v26 = vadd.f32 %v1970_v15, %v1005_v22  ;;  %v1080_v15 = vmul.f32 %v1996_v51, %v1996_v51 }
 0x14b   :  { %v1007_v27 = vadd.f32 %v1006_v26, %v1992_v42  ;;  %v1139_v28 = vadd.f32 %v1138_v24, %v1076_v45  ;;  %v1081_v42 = vmul.f32 %v2019_v3, %v2019_v3 }
 0x14d   :  { %v1140_v30 = vadd.f32 %v1139_v28, %v1077_v7  ;;  %v1008_v19 = vadd.f32 %v1007_v27, %v2000_v54 }
 0x14f   :  { %v1009_v33 = vadd.f32 %v1990_v41, %v1008_v19  ;;  %v1141_v32 = vadd.f32 %v1140_v30, %v1078_v31  ;;  %v1083_v41 = vmul.f32 %v2017_v2, %v2017_v2 }
 0x151   :  { %v1142_v34 = vadd.f32 %v1141_v32, %v1079_v6  ;;  %v1010_v35 = vadd.f32 %v1996_v51, %v1009_v33  ;;  %v1084_v51 = vmul.f32 %v2026_v13, %v2026_v13 }
 0x153   :  { %v1011_v36 = vadd.f32 %v1010_v35, %v2019_v3  ;;  %v1143_v37 = vadd.f32 %v1142_v34, %v1080_v15 }
 0x155   :  { %v1144_v23 = vadd.f32 %v1143_v37, %v1081_v42  ;;  %v1012_v54 = vadd.f32 %v1011_v36, %v2030_v63 }
 0x157   :  { %v1013_v43 = vadd.f32 %v2017_v2, %v1012_v54  ;;  %v1145_v29 = vadd.f32 %v1144_v23, %v1082_v38 }
 0x159   :  { %v1014_v44 = vadd.f32 %v2026_v13, %v1013_v43  ;;  %v1146_v46 = vadd.f32 %v1145_v29, %v1083_v41 }
 0x15b   :  { %v1015_v3 = vrot.slane %v1014_v44, 4  ;;  %v1147_v48 = vadd.f32 %v1146_v46, %v1084_v51 }
 0x15d   :  { %v1016_v49 = vadd.f32 %v1015_v3, %v1014_v44  ;;  %v1148_v52 = vrot.slane %v1147_v48, 4 }
 0x15f   :  { %v1017_v55 = vrot.slane %v1016_v49, 2  ;;  %v1149_v56 = vadd.f32 %v1148_v52, %v1147_v48 }
 0x161   :  { %v1018_v57 = vadd.f32 %v1017_v55, %v1016_v49  ;;  %v1150_v63 = vrot.slane %v1149_v56, 2 }
 0x163   :  { %v1019_v47 = vrot.slane %v1018_v57, 1  ;;  %v1151_v58 = vadd.f32 %v1150_v63, %v1149_v56 }
 0x165   :  { %v1152_v59 = vrot.slane %v1151_v58, 1  ;;  %v1020_v2 = vadd.f32 %v1019_v47, %v1018_v57 }
 0x167   :  { %v1153_v53 = vadd.f32 %v1152_v59, %v1151_v58 }
 0x169   :  { %v1155_v60 = vsel %vm1154_vm1, %v1020_v2, %v1153_v53 }
 0x16a   :  { %1156 = vst [vmem:[%s2128_s3] sm:$0x3] %v1155_v60 }

// kernel: encoder_forward.10
= control target key start
LH: loop header
LB: loop body
LE: loop exit
PB: predicated region body
PF: predicated region fallthrough
CT: control target
= control target key end

     0   :  { %v2720_v0 = vmov 0   ;;  %vm766_vm0 = vcmask 261120   ;;  %vm1963_vm1 = vcmask 1040384   ;;  %s3456_s1 = inlined_call_operand.vmem [shape: bf16[288,128], index: 1, kind: input, shape index: {}]   ;;  %s3457_s0 = inlined_call_operand.vmem [shape: bf16[512,288], index: 0, kind: input, shape index: {}]   ;;  %s3458_s2 = inlined_call_operand.vmem [shape: bf16[512,128], index: 2, kind: output, shape index: {0}]   ;;  %s3459_s3 = inlined_call_operand.vmem [shape: f32[1,2,128], index: 3, kind: output, shape index: {1}]  }
   0x1   :  { %863 = vmatprep.subr.bf16.mxu0 %v2720_v0  ;;  %2541 = vmatprep.subr.bf16.mxu1 %v2720_v0  ;;  %v2574_v1 = vld [vmem:[%s3456_s1] sm:$0xff]   ;;  %v2575_v2 = vld [vmem:[%s3456_s1 + $0x8] sm:$0xff]   ;;  %v2576_v3 = vld [vmem:[%s3456_s1 + $0x10] sm:$0xff]  }
   0x2   :  { %864 = vmatpush1.bf16.msra.mxu0 %v2574_v1  ;;  %2557 = vmatpush1.bf16.msra.mxu1 %v2574_v1  ;;  %v2577_v4 = vld [vmem:[%s3456_s1 + $0x18] sm:$0xff]   ;;  %v2578_v5 = vld [vmem:[%s3456_s1 + $0x20] sm:$0xff]   ;;  %v2579_v7 = vld [vmem:[%s3456_s1 + $0x28] sm:$0xff]  }
   0x3   :  { %865 = vmatprep.subr.bf16.mxu0 %v2720_v0  ;;  %2542 = vmatprep.subr.bf16.mxu1 %v2720_v0  ;;  %v2592_v6 = vld [vmem:[%s3457_s0 + $0x4] ss:$12 sps:$4 sm:$0xff]   ;;  %v2581_v10 = vld [vmem:[%s3456_s1 + $0x38] sm:$0xff]   ;;  %v2583_v12 = vld [vmem:[%s3456_s1 + $0x48] sm:$0xff]  }
   0x4   :  { %v2595_v8 = vld [vmem:[%s3457_s0 + $0x244] ss:$12 sps:$4 sm:$0xff]   ;;  %895 = vmatprep.mubr.bf16.mxu0 %v2592_v6  ;;  %v2585_v14 = vld [vmem:[%s3456_s1 + $0x58] sm:$0xff]   ;;  %v2587_v16 = vld [vmem:[%s3456_s1 + $0x68] sm:$0xff]  }
   0x5   :  { %1087 = vmatprep.mubr.bf16.mxu1 %v2595_v8  ;;  %v2580_v9 = vld [vmem:[%s3456_s1 + $0x30] sm:$0xff]   ;;  %v2582_v11 = vld [vmem:[%s3456_s1 + $0x40] sm:$0xff]   ;;  %v2589_v18 = vld [vmem:[%s3456_s1 + $0x78] sm:$0xff]  }
   0x6   :  { %866 = vmatpush1.bf16.msra.mxu0 %v2575_v2  ;;  %2558 = vmatpush1.bf16.msra.mxu1 %v2575_v2  ;;  %v2584_v13 = vld [vmem:[%s3456_s1 + $0x50] sm:$0xff]   ;;  %v2586_v15 = vld [vmem:[%s3456_s1 + $0x60] sm:$0xff]   ;;  %v2596_v22 = vld [vmem:[%s3457_s0 + $0x1c] ss:$12 sps:$4 sm:$0xff]  }
   0x7   :  { %867 = vmatprep.subr.bf16.mxu0 %v2720_v0  ;;  %2543 = vmatprep.subr.bf16.mxu1 %v2720_v0  ;;  %v2588_v17 = vld [vmem:[%s3456_s1 + $0x70] sm:$0xff]   ;;  %v2614_v19 = vld [vmem:[%s3456_s1 + $0x80] sm:$0xff]   ;;  %v2598_v23 = vld [vmem:[%s3457_s0 + $0x25c] ss:$12 sps:$4 sm:$0xff]  }
   0x8   :  { %v2590_v20 = vld [vmem:[%s3457_s0] ss:$12 sps:$4 sm:$0xff]   ;;  %v2600_v25 = vld [vmem:[%s3457_s0 + $0x18] ss:$12 sps:$4 sm:$0xff]   ;;  %v2606_v29 = vld [vmem:[%s3457_s0 + $0x30] ss:$12 sps:$4 sm:$0xff]  }
   0x9   :  { %v2593_v21 = vld [vmem:[%s3457_s0 + $0x240] ss:$12 sps:$4 sm:$0xff]   ;;  %v2601_v26 = vld [vmem:[%s3457_s0 + $0x258] ss:$12 sps:$4 sm:$0xff]   ;;  %v2607_v30 = vld [vmem:[%s3457_s0 + $0x270] ss:$12 sps:$4 sm:$0xff]  }
   0xa   :  { %868 = vmatpush1.bf16.msra.mxu0 %v2576_v3  ;;  %2559 = vmatpush1.bf16.msra.mxu1 %v2576_v3  ;;  %v2639_v24 = vld [vmem:[%s3456_s1 + $0x88] sm:$0xff]   ;;  %v2602_v27 = vld [vmem:[%s3457_s0 + $0x34] ss:$12 sps:$4 sm:$0xff]   ;;  %v2615_v35 = vld [vmem:[%s3457_s0 + $0x64] ss:$12 sps:$4 sm:$0xff]  }
   0xb   :  { %869 = vmatprep.subr.bf16.mxu0 %v2720_v0  ;;  %2544 = vmatprep.subr.bf16.mxu1 %v2720_v0  ;;  %v2604_v28 = vld [vmem:[%s3457_s0 + $0x274] ss:$12 sps:$4 sm:$0xff]   ;;  %v2608_v31 = vld [vmem:[%s3457_s0 + $0x4c] ss:$12 sps:$4 sm:$0xff]   ;;  %v2617_v36 = vld [vmem:[%s3457_s0 + $0x2a4] ss:$12 sps:$4 sm:$0xff]  }
   0xc   :  { %v2610_v32 = vld [vmem:[%s3457_s0 + $0x28c] ss:$12 sps:$4 sm:$0xff]   ;;  %v2612_v33 = vld [vmem:[%s3457_s0 + $0x48] ss:$12 sps:$4 sm:$0xff]   ;;  %v2631_v45 = vld [vmem:[%s3457_s0 + $0x90] ss:$12 sps:$4 sm:$0xff]  }
   0xd   :  { %v2613_v34 = vld [vmem:[%s3457_s0 + $0x288] ss:$12 sps:$4 sm:$0xff]   ;;  %v2619_v37 = vld [vmem:[%s3457_s0 + $0x60] ss:$12 sps:$4 sm:$0xff]   ;;  %v2625_v41 = vld [vmem:[%s3457_s0 + $0x78] ss:$12 sps:$4 sm:$0xff]  }
   0xe   :  { %870 = vmatpush1.bf16.msra.mxu0 %v2577_v4  ;;  %2560 = vmatpush1.bf16.msra.mxu1 %v2577_v4  ;;  %v2620_v38 = vld [vmem:[%s3457_s0 + $0x2a0] ss:$12 sps:$4 sm:$0xff]   ;;  %v2621_v39 = vld [vmem:[%s3457_s0 + $0x7c] ss:$12 sps:$4 sm:$0xff]   ;;  %v2626_v42 = vld [vmem:[%s3457_s0 + $0x2b8] ss:$12 sps:$4 sm:$0xff]  }
   0xf   :  { %871 = vmatprep.subr.bf16.mxu0 %v2720_v0  ;;  %2545 = vmatprep.subr.bf16.mxu1 %v2720_v0  ;;  %v2623_v40 = vld [vmem:[%s3457_s0 + $0x2bc] ss:$12 sps:$4 sm:$0xff]   ;;  %v2627_v43 = vld [vmem:[%s3457_s0 + $0x94] ss:$12 sps:$4 sm:$0xff]   ;;  %v2633_v47 = vld [vmem:[%s3457_s0 + $0xac] ss:$12 sps:$4 sm:$0xff]  }
  0x10   :  { %v2629_v44 = vld [vmem:[%s3457_s0 + $0x2d4] ss:$12 sps:$4 sm:$0xff]   ;;  %v2632_v46 = vld [vmem:[%s3457_s0 + $0x2d0] ss:$12 sps:$4 sm:$0xff]   ;;  %v2635_v48 = vld [vmem:[%s3457_s0 + $0x2ec] ss:$12 sps:$4 sm:$0xff]  }
  0x11   :  { %v2637_v49 = vld [vmem:[%s3457_s0 + $0xa8] ss:$12 sps:$4 sm:$0xff]   ;;  %v2640_v51 = vld [vmem:[%s3457_s0 + $0xc4] ss:$12 sps:$4 sm:$0xff]   ;;  %v2643_v53 = vld [vmem:[%s3457_s0 + $0xc0] ss:$12 sps:$4 sm:$0xff]  }
  0x12   :  { %872 = vmatpush1.bf16.msra.mxu0 %v2578_v5  ;;  %2561 = vmatpush1.bf16.msra.mxu1 %v2578_v5  ;;  %v2638_v50 = vld [vmem:[%s3457_s0 + $0x2e8] ss:$12 sps:$4 sm:$0xff]   ;;  %v2644_v54 = vld [vmem:[%s3457_s0 + $0x20] ss:$12 sps:$4 sm:$0xff]   ;;  %v2647_v56 = vld [vmem:[%s3457_s0 + $0x38] ss:$12 sps:$4 sm:$0xff]  }
  0x13   :  { %873 = vmatprep.subr.bf16.mxu0 %v2720_v0  ;;  %2546 = vmatprep.subr.bf16.mxu1 %v2720_v0  ;;  %v2642_v52 = vld [vmem:[%s3457_s0 + $0x8] ss:$12 sps:$4 sm:$0xff]   ;;  %v2648_v57 = vld [vmem:[%s3457_s0 + $0xd8] ss:$12 sps:$4 sm:$0xff]   ;;  %v2649_v58 = vld [vmem:[%s3457_s0 + $0x50] ss:$12 sps:$4 sm:$0xff]  }
  0x14   :  { %v2645_v55 = vld [vmem:[%s3457_s0 + $0xdc] ss:$12 sps:$4 sm:$0xff]   ;;  %v2650_v59 = vld [vmem:[%s3457_s0 + $0xf4] ss:$12 sps:$4 sm:$0xff]   ;;  %v2655_v63 = vld [vmem:[%s3457_s0 + $0x10c] ss:$12 sps:$4 sm:$0xff]  }
  0x15   :  { %v2652_v60 = vld [vmem:[%s3457_s0 + $0x68] ss:$12 sps:$4 sm:$0xff]   ;;  %v2653_v61 = vld [vmem:[%s3457_s0 + $0xf0] ss:$12 sps:$4 sm:$0xff]   ;;  %v2654_v62 = vld [vmem:[%s3457_s0 + $0x80] ss:$12 sps:$4 sm:$0xff]  }
  0x16   :  { %874 = vmatpush1.bf16.msra.mxu0 %v2579_v7  ;;  %2562 = vmatpush1.bf16.msra.mxu1 %v2579_v7  ;;  %v2658_v1 = vld [vmem:[%s3457_s0 + $0x108] ss:$12 sps:$4 sm:$0xff]   ;;  %v2659_v2 = vld [vmem:[%s3457_s0 + $0xb0] ss:$12 sps:$4 sm:$0xff]   ;;  %v2663_v5 = vld [vmem:[%s3457_s0 + $0x120] ss:$12 sps:$4 sm:$0xff]  }
  0x17   :  { %875 = vmatprep.subr.bf16.mxu0 %v2720_v0  ;;  %2547 = vmatprep.subr.bf16.mxu1 %v2720_v0  ;;  %v2660_v3 = vld [vmem:[%s3457_s0 + $0x124] ss:$12 sps:$4 sm:$0xff]   ;;  %v2662_v4 = vld [vmem:[%s3457_s0 + $0xc8] ss:$12 sps:$4 sm:$0xff]   ;;  %v2664_v6 = vld [vmem:[%s3457_s0 + $0xe0] ss:$12 sps:$4 sm:$0xff]  }
  0x18   :  { %v2665_v7 = vld [vmem:[%s3457_s0 + $0x13c] ss:$12 sps:$4 sm:$0xff]   ;;  %v2667_v8 = vld [vmem:[%s3457_s0 + $0xf8] ss:$12 sps:$4 sm:$0xff]  }
  0x1a   :  { %876 = vmatpush1.bf16.msra.mxu0 %v2580_v9  ;;  %2563 = vmatpush1.bf16.msra.mxu1 %v2580_v9  ;;  %v2668_v9 = vld [vmem:[%s3457_s0 + $0x138] ss:$12 sps:$4 sm:$0xff]  }
  0x1b   :  { %877 = vmatprep.subr.bf16.mxu0 %v2720_v0  ;;  %2548 = vmatprep.subr.bf16.mxu1 %v2720_v0 }
  0x1e   :  { %878 = vmatpush1.bf16.msra.mxu0 %v2581_v10  ;;  %2564 = vmatpush1.bf16.msra.mxu1 %v2581_v10  ;;  %v2669_v10 = vld [vmem:[%s3457_s0 + $0x110] ss:$12 sps:$4 sm:$0xff]  }
  0x1f   :  { %879 = vmatprep.subr.bf16.mxu0 %v2720_v0  ;;  %2549 = vmatprep.subr.bf16.mxu1 %v2720_v0 }
  0x22   :  { %880 = vmatpush1.bf16.msra.mxu0 %v2582_v11  ;;  %2565 = vmatpush1.bf16.msra.mxu1 %v2582_v11  ;;  %v2670_v11 = vld [vmem:[%s3457_s0 + $0x154] ss:$12 sps:$4 sm:$0xff]  }
  0x23   :  { %881 = vmatprep.subr.bf16.mxu0 %v2720_v0  ;;  %2550 = vmatprep.subr.bf16.mxu1 %v2720_v0 }
  0x26   :  { %882 = vmatpush1.bf16.msra.mxu0 %v2583_v12  ;;  %2566 = vmatpush1.bf16.msra.mxu1 %v2583_v12  ;;  %v2672_v12 = vld [vmem:[%s3457_s0 + $0x128] ss:$12 sps:$4 sm:$0xff]  }
  0x27   :  { %883 = vmatprep.subr.bf16.mxu0 %v2720_v0  ;;  %2551 = vmatprep.subr.bf16.mxu1 %v2720_v0 }
  0x2a   :  { %884 = vmatpush1.bf16.msra.mxu0 %v2584_v13  ;;  %2567 = vmatpush1.bf16.msra.mxu1 %v2584_v13  ;;  %v2673_v13 = vld [vmem:[%s3457_s0 + $0x150] ss:$12 sps:$4 sm:$0xff]  }
  0x2b   :  { %885 = vmatprep.subr.bf16.mxu0 %v2720_v0  ;;  %2552 = vmatprep.subr.bf16.mxu1 %v2720_v0 }
  0x2e   :  { %886 = vmatpush1.bf16.msra.mxu0 %v2585_v14  ;;  %2568 = vmatpush1.bf16.msra.mxu1 %v2585_v14  ;;  %v2674_v14 = vld [vmem:[%s3457_s0 + $0x140] ss:$12 sps:$4 sm:$0xff]  }
  0x2f   :  { %887 = vmatprep.subr.bf16.mxu0 %v2720_v0  ;;  %2553 = vmatprep.subr.bf16.mxu1 %v2720_v0 }
  0x32   :  { %888 = vmatpush1.bf16.msra.mxu0 %v2586_v15  ;;  %2569 = vmatpush1.bf16.msra.mxu1 %v2586_v15  ;;  %v2675_v15 = vld [vmem:[%s3457_s0 + $0x16c] ss:$12 sps:$4 sm:$0xff]  }
  0x33   :  { %889 = vmatprep.subr.bf16.mxu0 %v2720_v0  ;;  %2554 = vmatprep.subr.bf16.mxu1 %v2720_v0 }
  0x36   :  { %890 = vmatpush1.bf16.msra.mxu0 %v2587_v16  ;;  %2570 = vmatpush1.bf16.msra.mxu1 %v2587_v16  ;;  %v2677_v16 = vld [vmem:[%s3457_s0 + $0x158] ss:$12 sps:$4 sm:$0xff]  }
  0x37   :  { %891 = vmatprep.subr.bf16.mxu0 %v2720_v0  ;;  %2555 = vmatprep.subr.bf16.mxu1 %v2720_v0 }
  0x3a   :  { %892 = vmatpush1.bf16.msra.mxu0 %v2588_v17  ;;  %2571 = vmatpush1.bf16.msra.mxu1 %v2588_v17  ;;  %v2678_v17 = vld [vmem:[%s3457_s0 + $0x168] ss:$12 sps:$4 sm:$0xff]  }
  0x3b   :  { %893 = vmatprep.subr.bf16.mxu0 %v2720_v0  ;;  %2556 = vmatprep.subr.bf16.mxu1 %v2720_v0  ;;  %v2657_v0 = vld [vmem:[%s3457_s0 + $0x98] ss:$12 sps:$4 sm:$0xff]  }
  0x3e   :  { %894 = vmatpush1.bf16.msra.mxu0 %v2589_v18  ;;  %2572 = vmatpush1.bf16.msra.mxu1 %v2589_v18  ;;  %v2679_v18 = vld [vmem:[%s3457_s0 + $0x170] ss:$12 sps:$4 sm:$0xff]  }
  0x3f   :  { %2473 = vmatprep.subr.bf16.mxu1 %v2614_v19 }
  0x41   :  { %896 = vmatmul.mubr.bf16.vlgmr.msra.gmra.mrb[0].mxu0 %v2590_v20  ;;  %1088 = vmatmul.mubr.bf16.vlgmr.msra.gmra.mrb[0].mxu1 %v2593_v21  ;;  %v2682_v20 = vld [vmem:[%s3457_s0 + $0x188] ss:$12 sps:$4 sm:$0xff]   ;;  %v2683_v21 = vld [vmem:[%s3457_s0 + $0x180] ss:$12 sps:$4 sm:$0xff]  }
  0x42   :  { %903 = vmatprep.mubr.bf16.mxu0 %v2596_v22  ;;  %1095 = vmatprep.mubr.bf16.mxu1 %v2598_v23  ;;  %v2684_v22 = vld [vmem:[%s3457_s0 + $0x1a0] ss:$12 sps:$4 sm:$0xff]   ;;  %v2685_v23 = vld [vmem:[%s3457_s0 + $0x19c] ss:$12 sps:$4 sm:$0xff]  }
  0x43   :  { %2474 = vmatpush3.bf16.msra.mxu1 %v2614_v19  ;;  %v2680_v19 = vld [vmem:[%s3457_s0 + $0x184] ss:$12 sps:$4 sm:$0xff]  }
  0x44   :  { %2475 = vmatprep.subr.bf16.mxu1 %v2639_v24 }
  0x47   :  { %2476 = vmatpush3.bf16.msra.mxu1 %v2639_v24  ;;  %v2687_v24 = vld [vmem:[%s3457_s0 + $0x1b8] ss:$12 sps:$4 sm:$0xff]  }
  0x49   :  { %904 = vmatmul.mubr.bf16.gmra.mrb[4].mxu0 %v2600_v25  ;;  %1096 = vmatmul.mubr.bf16.gmra.mrb[4].mxu1 %v2601_v26  ;;  %v2688_v25 = vld [vmem:[%s3457_s0 + $0x198] ss:$12 sps:$4 sm:$0xff]   ;;  %v2689_v26 = vld [vmem:[%s3457_s0 + $0x1d0] ss:$12 sps:$4 sm:$0xff]  }
  0x4a   :  { %911 = vmatprep.mubr.bf16.mxu0 %v2602_v27  ;;  %1103 = vmatprep.mubr.bf16.mxu1 %v2604_v28  ;;  %v2690_v27 = vld [vmem:[%s3457_s0 + $0x1b4] ss:$12 sps:$4 sm:$0xff]  }
  0x4b   :  { %v2692_v28 = vld [vmem:[%s3457_s0 + $0x1e8] ss:$12 sps:$4 sm:$0xff]  }
  0x51   :  { %912 = vmatmul.mubr.bf16.gmra.mrb[8].mxu0 %v2606_v29  ;;  %1104 = vmatmul.mubr.bf16.gmra.mrb[8].mxu1 %v2607_v30  ;;  %v2693_v29 = vld [vmem:[%s3457_s0 + $0x1b0] ss:$12 sps:$4 sm:$0xff]   ;;  %v2694_v30 = vld [vmem:[%s3457_s0 + $0x200] ss:$12 sps:$4 sm:$0xff]  }
  0x52   :  { %919 = vmatprep.mubr.bf16.mxu0 %v2608_v31  ;;  %1111 = vmatprep.mubr.bf16.mxu1 %v2610_v32  ;;  %v2695_v31 = vld [vmem:[%s3457_s0 + $0x1cc] ss:$12 sps:$4 sm:$0xff]  }
  0x53   :  { %v2697_v32 = vld [vmem:[%s3457_s0 + $0x218] ss:$12 sps:$4 sm:$0xff]  }
  0x59   :  { %920 = vmatmul.mubr.bf16.gmra.mrb[12].mxu0 %v2612_v33  ;;  %1112 = vmatmul.mubr.bf16.gmra.mrb[12].mxu1 %v2613_v34  ;;  %v2698_v33 = vld [vmem:[%s3457_s0 + $0x1c8] ss:$12 sps:$4 sm:$0xff]   ;;  %v2699_v34 = vld [vmem:[%s3457_s0 + $0x230] ss:$12 sps:$4 sm:$0xff]  }
  0x5a   :  { %927 = vmatprep.mubr.bf16.mxu0 %v2615_v35  ;;  %1119 = vmatprep.mubr.bf16.mxu1 %v2617_v36  ;;  %v2700_v35 = vld [vmem:[%s3457_s0 + $0x1e4] ss:$12 sps:$4 sm:$0xff]   ;;  %v2702_v36 = vld [vmem:[%s3457_s0 + $0x248] ss:$12 sps:$4 sm:$0xff]  }
  0x61   :  { %928 = vmatmul.mubr.bf16.gmra.mrb[16].mxu0 %v2619_v37  ;;  %1120 = vmatmul.mubr.bf16.gmra.mrb[16].mxu1 %v2620_v38  ;;  %v2703_v37 = vld [vmem:[%s3457_s0 + $0x1e0] ss:$12 sps:$4 sm:$0xff]  }
  0x62   :  { %935 = vmatprep.mubr.bf16.mxu0 %v2621_v39  ;;  %1127 = vmatprep.mubr.bf16.mxu1 %v2623_v40  ;;  %v2704_v38 = vld [vmem:[%s3457_s0 + $0x260] ss:$12 sps:$4 sm:$0xff]   ;;  %v2705_v39 = vld [vmem:[%s3457_s0 + $0x1fc] ss:$12 sps:$4 sm:$0xff]   ;;  %v2707_v40 = vld [vmem:[%s3457_s0 + $0x278] ss:$12 sps:$4 sm:$0xff]  }
  0x69   :  { %936 = vmatmul.mubr.bf16.gmra.mrb[20].mxu0 %v2625_v41  ;;  %1128 = vmatmul.mubr.bf16.gmra.mrb[20].mxu1 %v2626_v42  ;;  %v2708_v41 = vld [vmem:[%s3457_s0 + $0x1f8] ss:$12 sps:$4 sm:$0xff]   ;;  %v2709_v42 = vld [vmem:[%s3457_s0 + $0x290] ss:$12 sps:$4 sm:$0xff]  }
  0x6a   :  { %943 = vmatprep.mubr.bf16.mxu0 %v2627_v43  ;;  %1135 = vmatprep.mubr.bf16.mxu1 %v2629_v44  ;;  %v2710_v43 = vld [vmem:[%s3457_s0 + $0x214] ss:$12 sps:$4 sm:$0xff]  }
  0x6b   :  { %v2712_v44 = vld [vmem:[%s3457_s0 + $0x2a8] ss:$12 sps:$4 sm:$0xff]  }
  0x71   :  { %944 = vmatmul.mubr.bf16.gmra.mrb[24].mxu0 %v2631_v45  ;;  %1136 = vmatmul.mubr.bf16.gmra.mrb[24].mxu1 %v2632_v46  ;;  %v2713_v45 = vld [vmem:[%s3457_s0 + $0x210] ss:$12 sps:$4 sm:$0xff]   ;;  %v2714_v46 = vld [vmem:[%s3457_s0 + $0x2c0] ss:$12 sps:$4 sm:$0xff]  }
  0x72   :  { %951 = vmatprep.mubr.bf16.mxu0 %v2633_v47  ;;  %1143 = vmatprep.mubr.bf16.mxu1 %v2635_v48  ;;  %v2715_v47 = vld [vmem:[%s3457_s0 + $0x22c] ss:$12 sps:$4 sm:$0xff]  }
  0x73   :  { %v2717_v48 = vld [vmem:[%s3457_s0 + $0x2d8] ss:$12 sps:$4 sm:$0xff]  }
  0x79   :  { %952 = vmatmul.mubr.bf16.gmra.mrb[28].mxu0 %v2637_v49  ;;  %1144 = vmatmul.mubr.bf16.gmra.mrb[28].mxu1 %v2638_v50  ;;  %v2718_v49 = vld [vmem:[%s3457_s0 + $0x228] ss:$12 sps:$4 sm:$0xff]   ;;  %v2719_v50 = vld [vmem:[%s3457_s0 + $0x2f0] ss:$12 sps:$4 sm:$0xff]  }
  0x7a   :  { %959 = vmatprep.mubr.bf16.mxu0 %v2640_v51  ;;  %2477 = vmatprep.mubr.msk.bf16.mxu1 %vm766_vm0, %v2642_v52 }
  0x81   :  { %960 = vmatmul.mubr.bf16.gmra.mrb[32].mxu0 %v2643_v53  ;;  %2478 = vmatmul.mubr.msk.bf16.vlgmr.msra.gmra.mrb[32].mxu1 %vm766_vm0, %v2644_v54 }
  0x82   :  { %967 = vmatprep.mubr.bf16.mxu0 %v2645_v55  ;;  %2481 = vmatprep.mubr.msk.bf16.mxu1 %vm766_vm0, %v2647_v56 }
  0x89   :  { %968 = vmatmul.mubr.bf16.gmra.mrb[36].mxu0 %v2648_v57  ;;  %2482 = vmatmul.mubr.msk.bf16.gmra.mrb[36].mxu1 %vm766_vm0, %v2649_v58 }
  0x8a   :  { %975 = vmatprep.mubr.bf16.mxu0 %v2650_v59  ;;  %2485 = vmatprep.mubr.msk.bf16.mxu1 %vm766_vm0, %v2652_v60 }
  0x91   :  { %976 = vmatmul.mubr.bf16.gmra.mrb[40].mxu0 %v2653_v61  ;;  %2486 = vmatmul.mubr.msk.bf16.gmra.mrb[40].mxu1 %vm766_vm0, %v2654_v62 }
  0x92   :  { %983 = vmatprep.mubr.bf16.mxu0 %v2655_v63  ;;  %2489 = vmatprep.mubr.msk.bf16.mxu1 %vm766_vm0, %v2657_v0 }
  0x99   :  { %984 = vmatmul.mubr.bf16.gmra.mrb[44].mxu0 %v2658_v1  ;;  %2490 = vmatmul.mubr.msk.bf16.gmra.mrb[44].mxu1 %vm766_vm0, %v2659_v2 }
  0x9a   :  { %991 = vmatprep.mubr.bf16.mxu0 %v2660_v3  ;;  %2493 = vmatprep.mubr.msk.bf16.mxu1 %vm766_vm0, %v2662_v4 }
  0xa1   :  { %992 = vmatmul.mubr.bf16.gmra.mrb[48].mxu0 %v2663_v5  ;;  %2494 = vmatmul.mubr.msk.bf16.gmra.mrb[48].mxu1 %vm766_vm0, %v2664_v6 }
  0xa2   :  { %999 = vmatprep.mubr.bf16.mxu0 %v2665_v7  ;;  %2497 = vmatprep.mubr.msk.bf16.mxu1 %vm766_vm0, %v2667_v8 }
  0xa9   :  { %1000 = vmatmul.mubr.bf16.gmra.mrb[52].mxu0 %v2668_v9  ;;  %2498 = vmatmul.mubr.msk.bf16.gmra.mrb[52].mxu1 %vm766_vm0, %v2669_v10 }
  0xaa   :  { %1007 = vmatprep.mubr.bf16.mxu0 %v2670_v11  ;;  %2501 = vmatprep.mubr.msk.bf16.mxu1 %vm766_vm0, %v2672_v12 }
  0xb1   :  { %1008 = vmatmul.mubr.bf16.gmra.mrb[56].mxu0 %v2673_v13  ;;  %2502 = vmatmul.mubr.msk.bf16.gmra.mrb[56].mxu1 %vm766_vm0, %v2674_v14 }
  0xb2   :  { %1015 = vmatprep.mubr.bf16.mxu0 %v2675_v15  ;;  %2505 = vmatprep.mubr.msk.bf16.mxu1 %vm766_vm0, %v2677_v16 }
  0xb9   :  { %1016 = vmatmul.mubr.bf16.gmra.mrb[60].mxu0 %v2678_v17  ;;  %2506 = vmatmul.mubr.msk.bf16.gmra.mrb[60].mxu1 %vm766_vm0, %v2679_v18 }
  0xba   :  { %1023 = vmatprep.mubr.bf16.mxu0 %v2680_v19  ;;  %2509 = vmatprep.mubr.msk.bf16.mxu1 %vm766_vm0, %v2682_v20 }
  0xc1   :  { %1024 = vmatmul.mubr.bf16.gmra.mrb[64].mxu0 %v2683_v21  ;;  %2510 = vmatmul.mubr.msk.bf16.gmra.mrb[64].mxu1 %vm766_vm0, %v2684_v22 }
  0xc2   :  { %1031 = vmatprep.mubr.bf16.mxu0 %v2685_v23  ;;  %2513 = vmatprep.mubr.msk.bf16.mxu1 %vm766_vm0, %v2687_v24 }
  0xc9   :  { %1032 = vmatmul.mubr.bf16.gmra.mrb[68].mxu0 %v2688_v25  ;;  %2514 = vmatmul.mubr.msk.bf16.gmra.mrb[68].mxu1 %vm766_vm0, %v2689_v26 }
  0xca   :  { %1039 = vmatprep.mubr.bf16.mxu0 %v2690_v27  ;;  %2517 = vmatprep.mubr.msk.bf16.mxu1 %vm766_vm0, %v2692_v28 }
  0xd1   :  { %1040 = vmatmul.mubr.bf16.gmra.mrb[72].mxu0 %v2693_v29  ;;  %2518 = vmatmul.mubr.msk.bf16.gmra.mrb[72].mxu1 %vm766_vm0, %v2694_v30 }
  0xd2   :  { %1047 = vmatprep.mubr.bf16.mxu0 %v2695_v31  ;;  %2521 = vmatprep.mubr.msk.bf16.mxu1 %vm766_vm0, %v2697_v32 }
  0xd9   :  { %1048 = vmatmul.mubr.bf16.gmra.mrb[76].mxu0 %v2698_v33  ;;  %2522 = vmatmul.mubr.msk.bf16.gmra.mrb[76].mxu1 %vm766_vm0, %v2699_v34 }
  0xda   :  { %1055 = vmatprep.mubr.bf16.mxu0 %v2700_v35  ;;  %2525 = vmatprep.mubr.msk.bf16.mxu1 %vm766_vm0, %v2702_v36 }
  0xe1   :  { %1056 = vmatmul.mubr.bf16.gmra.mrb[80].mxu0 %v2703_v37  ;;  %2526 = vmatmul.mubr.msk.bf16.gmra.mrb[80].mxu1 %vm766_vm0, %v2704_v38 }
  0xe2   :  { %1063 = vmatprep.mubr.bf16.mxu0 %v2705_v39  ;;  %2529 = vmatprep.mubr.msk.bf16.mxu1 %vm766_vm0, %v2707_v40 }
  0xe9   :  { %1064 = vmatmul.mubr.bf16.gmra.mrb[84].mxu0 %v2708_v41  ;;  %2530 = vmatmul.mubr.msk.bf16.gmra.mrb[84].mxu1 %vm766_vm0, %v2709_v42 }
  0xea   :  { %1071 = vmatprep.mubr.bf16.mxu0 %v2710_v43  ;;  %2533 = vmatprep.mubr.msk.bf16.mxu1 %vm766_vm0, %v2712_v44 }
  0xf1   :  { %1072 = vmatmul.mubr.bf16.gmra.mrb[88].mxu0 %v2713_v45  ;;  %2534 = vmatmul.mubr.msk.bf16.gmra.mrb[88].mxu1 %vm766_vm0, %v2714_v46 }
  0xf2   :  { %1079 = vmatprep.mubr.bf16.mxu0 %v2715_v47  ;;  %2537 = vmatprep.mubr.msk.bf16.mxu1 %vm766_vm0, %v2717_v48 }
  0xf9   :  { %1080 = vmatmul.mubr.bf16.gmra.mrb[92].mxu0 %v2718_v49  ;;  %2538 = vmatmul.mubr.msk.bf16.gmra.mrb[92].mxu1 %vm766_vm0, %v2719_v50 }
 0x114   :  { %v3147_v51 = vpop.f32.mrb[0].mxu0  ;;  %v3149_v52 = vpop.f32.mrb[0].mxu1 }
 0x115   :  { %v899_v53 = vpop.f32.mrb[1].mxu0  ;;  %v1091_v54 = vpop.f32.mrb[1].mxu1 }
 0x116   :  { %v3151_v55 = vpop.f32.mrb[2].mxu0  ;;  %v3153_v56 = vpop.f32.mrb[2].mxu1 }
 0x117   :  { %v902_v57 = vpop.f32.mrb[3].mxu0  ;;  %v1094_v58 = vpop.f32.mrb[3].mxu1 }
 0x11c   :  { %v905_v59 = vpop.f32.mrb[4].mxu0  ;;  %v3155_v60 = vpop.f32.mrb[4].mxu1 }
 0x11d   :  { %v907_v61 = vpop.f32.mrb[5].mxu0  ;;  %v1099_v62 = vpop.f32.mrb[5].mxu1 }
 0x11e   :  { %v908_v63 = vpop.f32.mrb[6].mxu0  ;;  %v3157_v0 = vpop.f32.mrb[6].mxu1 }
 0x11f   :  { %v910_v1 = vpop.f32.mrb[7].mxu0  ;;  %v1102_v2 = vpop.f32.mrb[7].mxu1 }
 0x124   :  { %v3159_v3 = vpop.f32.mrb[8].mxu0  ;;  %v3161_v4 = vpop.f32.mrb[8].mxu1 }
 0x125   :  { %v915_v5 = vpop.f32.mrb[9].mxu0  ;;  %v1107_v6 = vpop.f32.mrb[9].mxu1 }
 0x126   :  { %v3163_v7 = vpop.f32.mrb[10].mxu0  ;;  %v3165_v8 = vpop.f32.mrb[10].mxu1 }
 0x127   :  { %v918_v9 = vpop.f32.mrb[11].mxu0  ;;  %v1110_v10 = vpop.f32.mrb[11].mxu1 }
 0x12c   :  { %v3167_v11 = vpop.f32.mrb[12].mxu0  ;;  %v3169_v12 = vpop.f32.mrb[12].mxu1 }
 0x12d   :  { %v923_v13 = vpop.f32.mrb[13].mxu0  ;;  %v1115_v14 = vpop.f32.mrb[13].mxu1 }
 0x12e   :  { %v3171_v15 = vpop.f32.mrb[14].mxu0  ;;  %v3173_v16 = vpop.f32.mrb[14].mxu1 }
 0x12f   :  { %v926_v17 = vpop.f32.mrb[15].mxu0  ;;  %v1118_v18 = vpop.f32.mrb[15].mxu1 }
 0x134   :  { %v3175_v19 = vpop.f32.mrb[16].mxu0  ;;  %v3177_v20 = vpop.f32.mrb[16].mxu1 }
 0x135   :  { %v931_v21 = vpop.f32.mrb[17].mxu0  ;;  %v1123_v22 = vpop.f32.mrb[17].mxu1 }
 0x136   :  { %v3179_v23 = vpop.f32.mrb[18].mxu0  ;;  %v3181_v24 = vpop.f32.mrb[18].mxu1 }
 0x137   :  { %v934_v25 = vpop.f32.mrb[19].mxu0  ;;  %v1126_v26 = vpop.f32.mrb[19].mxu1 }
 0x13c   :  { %v3183_v27 = vpop.f32.mrb[20].mxu0  ;;  %v3185_v28 = vpop.f32.mrb[20].mxu1 }
 0x13d   :  { %v939_v29 = vpop.f32.mrb[21].mxu0  ;;  %v1131_v30 = vpop.f32.mrb[21].mxu1 }
 0x13e   :  { %v3187_v31 = vpop.f32.mrb[22].mxu0  ;;  %v3189_v32 = vpop.f32.mrb[22].mxu1 }
 0x13f   :  { %v942_v33 = vpop.f32.mrb[23].mxu0  ;;  %v1134_v34 = vpop.f32.mrb[23].mxu1 }
 0x144   :  { %v3191_v35 = vpop.f32.mrb[24].mxu0  ;;  %v3193_v36 = vpop.f32.mrb[24].mxu1 }
 0x145   :  { %v947_v37 = vpop.f32.mrb[25].mxu0  ;;  %v1139_v38 = vpop.f32.mrb[25].mxu1 }
 0x146   :  { %v3195_v39 = vpop.f32.mrb[26].mxu0  ;;  %v3197_v40 = vpop.f32.mrb[26].mxu1 }
 0x147   :  { %v950_v41 = vpop.f32.mrb[27].mxu0  ;;  %v1142_v42 = vpop.f32.mrb[27].mxu1 }
 0x14c   :  { %v3199_v43 = vpop.f32.mrb[28].mxu0  ;;  %v3201_v44 = vpop.f32.mrb[28].mxu1 }
 0x14d   :  { %v955_v45 = vpop.f32.mrb[29].mxu0  ;;  %v1147_v46 = vpop.f32.mrb[29].mxu1 }
 0x14e   :  { %v3203_v47 = vpop.f32.mrb[30].mxu0  ;;  %v3205_v48 = vpop.f32.mrb[30].mxu1 }
 0x14f   :  { %v958_v49 = vpop.f32.mrb[31].mxu0  ;;  %v1150_v50 = vpop.f32.mrb[31].mxu1 }
 0x154   :  { %v3207_v53 = vpop.f32.mrb[32].mxu0  ;;  %v2479_v54 = vpop.f32.mrb[32].mxu1 }
 0x155   :  { %v1195_v57 = vadd.f32 %v2479_v54, %v905_v59  ;;  %v963_v58 = vpop.f32.mrb[33].mxu0  ;;  %v1186_v61 = vpop.f32.mrb[33].mxu1 }
 0x156   :  { %v1187_v62 = vadd.f32 %v1186_v61, %v3147_v51  ;;  %v3210_v1 = vpop.f32.mrb[34].mxu0  ;;  %v2480_v2 = vpop.f32.mrb[34].mxu1 }
 0x157   :  { %v1198_v5 = vadd.f32 %v2480_v2, %v908_v63  ;;  %v966_v6 = vpop.f32.mrb[35].mxu0  ;;  %v1189_v9 = vpop.f32.mrb[35].mxu1  ;;  %v1832_v59 = vmul.f32 %v1195_v57, %v1195_v57 }
 0x158   :  { %v1190_v10 = vadd.f32 %v1189_v9, %v3151_v55  ;;  %v1830_v14 = vmul.f32 %v1187_v62, %v1187_v62 }
 0x159   :  { %v2256_v13 = vpack.c.bf16 %v1198_v5, %v1195_v57  ;;  %v1833_v30 = vmul.f32 %v1198_v5, %v1198_v5 }
 0x15a   :  { %v2251_v17 = vpack.c.bf16 %v1190_v10, %v1187_v62  ;;  %v1761_v18 = vadd.f32 %v1190_v10, %v1187_v62  ;;  %v1831_v21 = vmul.f32 %v1190_v10, %v1190_v10 }
 0x15b   :  { %2408 = vst [vmem:[%s3458_s2 + $0x8] sm:$0xff] %v2256_v13  }
 0x15c   :  { %2252 = vst [vmem:[%s3458_s2] sm:$0xff] %v2251_v17   ;;  %v1762_v51 = vadd.f32 %v1761_v18, %v1195_v57  ;;  %v1894_v63 = vadd.f32 %v1831_v21, %v1830_v14  ;;  %v3219_v22 = vpop.f32.mrb[36].mxu0  ;;  %v2483_v25 = vpop.f32.mrb[36].mxu1 }
 0x15d   :  { %v1211_v55 = vadd.f32 %v2483_v25, %v3167_v11  ;;  %v971_v26 = vpop.f32.mrb[37].mxu0  ;;  %v1202_v29 = vpop.f32.mrb[37].mxu1 }
 0x15e   :  { %v1895_v33 = vadd.f32 %v1894_v63, %v1832_v59  ;;  %v1203_v34 = vadd.f32 %v1202_v29, %v3159_v3  ;;  %v1763_v37 = vadd.f32 %v1762_v51, %v1198_v5  ;;  %v3223_v38 = vpop.f32.mrb[38].mxu0  ;;  %v2484_v41 = vpop.f32.mrb[38].mxu1 }
 0x15f   :  { %v1214_v42 = vadd.f32 %v2484_v41, %v3171_v15  ;;  %v974_v45 = vpop.f32.mrb[39].mxu0  ;;  %v1205_v46 = vpop.f32.mrb[39].mxu1  ;;  %v1836_v3 = vmul.f32 %v1211_v55, %v1211_v55 }
 0x160   :  { %v1764_v49 = vadd.f32 %v1763_v37, %v1203_v34  ;;  %v1834_v50 = vmul.f32 %v1203_v34, %v1203_v34  ;;  %v1896_v54 = vadd.f32 %v1895_v33, %v1833_v30  ;;  %v1206_v57 = vadd.f32 %v1205_v46, %v3163_v7 }
 0x161   :  { %v2266_v11 = vpack.c.bf16 %v1214_v42, %v1211_v55  ;;  %v1837_v14 = vmul.f32 %v1214_v42, %v1214_v42 }
 0x162   :  { %v1897_v58 = vadd.f32 %v1896_v54, %v1834_v50  ;;  %v2261_v61 = vpack.c.bf16 %v1206_v57, %v1203_v34  ;;  %v1765_v62 = vadd.f32 %v1764_v49, %v1206_v57  ;;  %v1835_v2 = vmul.f32 %v1206_v57, %v1206_v57 }
 0x163   :  { %2410 = vst [vmem:[%s3458_s2 + $0x18] sm:$0xff] %v2266_v11  }
 0x164   :  { %2409 = vst [vmem:[%s3458_s2 + $0x10] sm:$0xff] %v2261_v61   ;;  %v1766_v15 = vadd.f32 %v1765_v62, %v1211_v55  ;;  %v1898_v5 = vadd.f32 %v1897_v58, %v1835_v2  ;;  %v3233_v6 = vpop.f32.mrb[40].mxu0  ;;  %v2487_v9 = vpop.f32.mrb[40].mxu1 }
 0x165   :  { %v1227_v7 = vadd.f32 %v2487_v9, %v3183_v27  ;;  %v979_v10 = vpop.f32.mrb[41].mxu0  ;;  %v1218_v13 = vpop.f32.mrb[41].mxu1 }
 0x166   :  { %v1899_v17 = vadd.f32 %v1898_v5, %v1836_v3  ;;  %v1219_v18 = vadd.f32 %v1218_v13, %v3175_v19  ;;  %v1767_v21 = vadd.f32 %v1766_v15, %v1214_v42  ;;  %v3237_v59 = vpop.f32.mrb[42].mxu0  ;;  %v2488_v51 = vpop.f32.mrb[42].mxu1 }
 0x167   :  { %v1230_v63 = vadd.f32 %v2488_v51, %v3187_v31  ;;  %v982_v25 = vpop.f32.mrb[43].mxu0  ;;  %v1221_v55 = vpop.f32.mrb[43].mxu1  ;;  %v1840_v19 = vmul.f32 %v1227_v7, %v1227_v7 }
 0x168   :  { %v1768_v26 = vadd.f32 %v1767_v21, %v1219_v18  ;;  %v1838_v29 = vmul.f32 %v1219_v18, %v1219_v18  ;;  %v1900_v30 = vadd.f32 %v1899_v17, %v1837_v14  ;;  %v1222_v33 = vadd.f32 %v1221_v55, %v3179_v23 }
 0x169   :  { %v2276_v27 = vpack.c.bf16 %v1230_v63, %v1227_v7  ;;  %v1841_v57 = vmul.f32 %v1230_v63, %v1230_v63 }
 0x16a   :  { %v1901_v34 = vadd.f32 %v1900_v30, %v1838_v29  ;;  %v2271_v37 = vpack.c.bf16 %v1222_v33, %v1219_v18  ;;  %v1769_v41 = vadd.f32 %v1768_v26, %v1222_v33  ;;  %v1839_v45 = vmul.f32 %v1222_v33, %v1222_v33 }
 0x16b   :  { %2412 = vst [vmem:[%s3458_s2 + $0x28] sm:$0xff] %v2276_v27  }
 0x16c   :  { %2411 = vst [vmem:[%s3458_s2 + $0x20] sm:$0xff] %v2271_v37   ;;  %v1770_v31 = vadd.f32 %v1769_v41, %v1227_v7  ;;  %v1902_v42 = vadd.f32 %v1901_v34, %v1839_v45  ;;  %v985_v46 = vpop.f32.mrb[44].mxu0  ;;  %v2491_v49 = vpop.f32.mrb[44].mxu1 }
 0x16d   :  { %v1243_v23 = vadd.f32 %v2491_v49, %v3199_v43  ;;  %v987_v50 = vpop.f32.mrb[45].mxu0  ;;  %v1234_v54 = vpop.f32.mrb[45].mxu1 }
 0x16e   :  { %v1903_v11 = vadd.f32 %v1902_v42, %v1840_v19  ;;  %v1235_v58 = vadd.f32 %v1234_v54, %v3191_v35  ;;  %v1771_v61 = vadd.f32 %v1770_v31, %v1230_v63  ;;  %v988_v62 = vpop.f32.mrb[46].mxu0  ;;  %v2492_v2 = vpop.f32.mrb[46].mxu1 }
 0x16f   :  { %v1246_v3 = vadd.f32 %v2492_v2, %v3203_v47  ;;  %v990_v15 = vpop.f32.mrb[47].mxu0  ;;  %v1237_v5 = vpop.f32.mrb[47].mxu1  ;;  %v1844_v35 = vmul.f32 %v1243_v23, %v1243_v23 }
 0x170   :  { %v1772_v9 = vadd.f32 %v1771_v61, %v1235_v58  ;;  %v1842_v7 = vmul.f32 %v1235_v58, %v1235_v58  ;;  %v1904_v10 = vadd.f32 %v1903_v11, %v1841_v57  ;;  %v1238_v13 = vadd.f32 %v1237_v5, %v3195_v39 }
 0x171   :  { %v2286_v14 = vpack.c.bf16 %v1246_v3, %v1243_v23  ;;  %v1845_v29 = vmul.f32 %v1246_v3, %v1246_v3 }
 0x172   :  { %v1905_v43 = vadd.f32 %v1904_v10, %v1842_v7  ;;  %v2281_v17 = vpack.c.bf16 %v1238_v13, %v1235_v58  ;;  %v1773_v18 = vadd.f32 %v1772_v9, %v1238_v13  ;;  %v1843_v21 = vmul.f32 %v1238_v13, %v1238_v13 }
 0x173   :  { %2414 = vst [vmem:[%s3458_s2 + $0x38] sm:$0xff] %v2286_v14  }
 0x174   :  { %2413 = vst [vmem:[%s3458_s2 + $0x30] sm:$0xff] %v2281_v17   ;;  %v1774_v47 = vadd.f32 %v1773_v18, %v1243_v23  ;;  %v1906_v51 = vadd.f32 %v1905_v43, %v1843_v21  ;;  %v3257_v63 = vpop.f32.mrb[48].mxu0  ;;  %v2495_v25 = vpop.f32.mrb[48].mxu1 }
 0x175   :  { %v1259_v39 = vadd.f32 %v2495_v25, %v3219_v22  ;;  %v995_v55 = vpop.f32.mrb[49].mxu0  ;;  %v1250_v26 = vpop.f32.mrb[49].mxu1 }
 0x176   :  { %v1907_v30 = vadd.f32 %v1906_v51, %v1844_v35  ;;  %v1251_v33 = vadd.f32 %v1250_v26, %v3207_v53  ;;  %v1775_v27 = vadd.f32 %v1774_v47, %v1246_v3  ;;  %v3261_v34 = vpop.f32.mrb[50].mxu0  ;;  %v2496_v37 = vpop.f32.mrb[50].mxu1 }
 0x177   :  { %v1262_v41 = vadd.f32 %v2496_v37, %v3223_v38  ;;  %v998_v45 = vpop.f32.mrb[51].mxu0  ;;  %v1253_v19 = vpop.f32.mrb[51].mxu1  ;;  %v1848_v53 = vmul.f32 %v1259_v39, %v1259_v39 }
 0x178   :  { %v1776_v31 = vadd.f32 %v1775_v27, %v1251_v33  ;;  %v1846_v42 = vmul.f32 %v1251_v33, %v1251_v33  ;;  %v1908_v49 = vadd.f32 %v1907_v30, %v1845_v29  ;;  %v1254_v23 = vadd.f32 %v1253_v19, %v3210_v1 }
 0x179   :  { %v2296_v22 = vpack.c.bf16 %v1262_v41, %v1259_v39  ;;  %v1849_v5 = vmul.f32 %v1262_v41, %v1262_v41 }
 0x17a   :  { %v1909_v50 = vadd.f32 %v1908_v49, %v1846_v42  ;;  %v2291_v54 = vpack.c.bf16 %v1254_v23, %v1251_v33  ;;  %v1777_v57 = vadd.f32 %v1776_v31, %v1254_v23  ;;  %v1847_v11 = vmul.f32 %v1254_v23, %v1254_v23 }
 0x17b   :  { %2416 = vst [vmem:[%s3458_s2 + $0x48] sm:$0xff] %v2296_v22  }
 0x17c   :  { %2415 = vst [vmem:[%s3458_s2 + $0x40] sm:$0xff] %v2291_v54   ;;  %v1778_v38 = vadd.f32 %v1777_v57, %v1259_v39  ;;  %v1910_v58 = vadd.f32 %v1909_v50, %v1847_v11  ;;  %v1001_v61 = vpop.f32.mrb[52].mxu0  ;;  %v2499_v2 = vpop.f32.mrb[52].mxu1 }
 0x17d   :  { %v1275_v3 = vadd.f32 %v2499_v2, %v985_v46  ;;  %v1003_v1 = vpop.f32.mrb[53].mxu0  ;;  %v1266_v15 = vpop.f32.mrb[53].mxu1 }
 0x17e   :  { %v1911_v9 = vadd.f32 %v1910_v58, %v1848_v53  ;;  %v1267_v7 = vadd.f32 %v1266_v15, %v3233_v6  ;;  %v1779_v10 = vadd.f32 %v1778_v38, %v1262_v41  ;;  %v1004_v13 = vpop.f32.mrb[54].mxu0  ;;  %v2500_v14 = vpop.f32.mrb[54].mxu1 }
 0x17f   :  { %v1278_v43 = vadd.f32 %v2500_v14, %v988_v62  ;;  %v1006_v17 = vpop.f32.mrb[55].mxu0  ;;  %v1269_v18 = vpop.f32.mrb[55].mxu1  ;;  %v1852_v6 = vmul.f32 %v1275_v3, %v1275_v3 }
 0x180   :  { %v1780_v21 = vadd.f32 %v1779_v10, %v1267_v7  ;;  %v1850_v35 = vmul.f32 %v1267_v7, %v1267_v7  ;;  %v1912_v47 = vadd.f32 %v1911_v9, %v1849_v5  ;;  %v1270_v51 = vadd.f32 %v1269_v18, %v3237_v59 }
 0x181   :  { %v2306_v25 = vpack.c.bf16 %v1278_v43, %v1275_v3  ;;  %v1853_v41 = vmul.f32 %v1278_v43, %v1278_v43 }
 0x182   :  { %v1913_v39 = vadd.f32 %v1912_v47, %v1850_v35  ;;  %v2301_v46 = vpack.c.bf16 %v1270_v51, %v1267_v7  ;;  %v1781_v55 = vadd.f32 %v1780_v21, %v1270_v51  ;;  %v1851_v26 = vmul.f32 %v1270_v51, %v1270_v51 }
 0x183   :  { %2418 = vst [vmem:[%s3458_s2 + $0x58] sm:$0xff] %v2306_v25  }
 0x184   :  { %2417 = vst [vmem:[%s3458_s2 + $0x50] sm:$0xff] %v2301_v46   ;;  %v1782_v62 = vadd.f32 %v1781_v55, %v1275_v3  ;;  %v1914_v29 = vadd.f32 %v1913_v39, %v1851_v26  ;;  %v1009_v30 = vpop.f32.mrb[56].mxu0  ;;  %v2503_v33 = vpop.f32.mrb[56].mxu1 }
 0x185   :  { %v1291_v27 = vadd.f32 %v2503_v33, %v1001_v61  ;;  %v1011_v59 = vpop.f32.mrb[57].mxu0  ;;  %v1282_v37 = vpop.f32.mrb[57].mxu1 }
 0x186   :  { %v1915_v45 = vadd.f32 %v1914_v29, %v1852_v6  ;;  %v1283_v19 = vadd.f32 %v1282_v37, %v3257_v63  ;;  %v1783_v31 = vadd.f32 %v1782_v62, %v1278_v43  ;;  %v1012_v42 = vpop.f32.mrb[58].mxu0  ;;  %v2504_v49 = vpop.f32.mrb[58].mxu1 }
 0x187   :  { %v1294_v23 = vadd.f32 %v2504_v49, %v1004_v13  ;;  %v1014_v22 = vpop.f32.mrb[59].mxu0  ;;  %v1285_v50 = vpop.f32.mrb[59].mxu1  ;;  %v1856_v63 = vmul.f32 %v1291_v27, %v1291_v27 }
 0x188   :  { %v1784_v54 = vadd.f32 %v1783_v31, %v1283_v19  ;;  %v1854_v57 = vmul.f32 %v1283_v19, %v1283_v19  ;;  %v1916_v11 = vadd.f32 %v1915_v45, %v1853_v41  ;;  %v1286_v53 = vadd.f32 %v1285_v50, %v3261_v34 }
 0x189   :  { %v2316_v38 = vpack.c.bf16 %v1294_v23, %v1291_v27  ;;  %v1857_v13 = vmul.f32 %v1294_v23, %v1294_v23 }
 0x18a   :  { %v1917_v58 = vadd.f32 %v1916_v11, %v1854_v57  ;;  %v2311_v61 = vpack.c.bf16 %v1286_v53, %v1283_v19  ;;  %v1785_v2 = vadd.f32 %v1784_v54, %v1286_v53  ;;  %v1855_v3 = vmul.f32 %v1286_v53, %v1286_v53 }
 0x18b   :  { %2420 = vst [vmem:[%s3458_s2 + $0x68] sm:$0xff] %v2316_v38  }
 0x18c   :  { %2419 = vst [vmem:[%s3458_s2 + $0x60] sm:$0xff] %v2311_v61   ;;  %v1786_v1 = vadd.f32 %v1785_v2, %v1291_v27  ;;  %v1918_v15 = vadd.f32 %v1917_v58, %v1855_v3  ;;  %v1017_v5 = vpop.f32.mrb[60].mxu0  ;;  %v2507_v9 = vpop.f32.mrb[60].mxu1 }
 0x18d   :  { %v1307_v7 = vadd.f32 %v2507_v9, %v1017_v5  ;;  %v1019_v34 = vpop.f32.mrb[61].mxu0  ;;  %v1298_v10 = vpop.f32.mrb[61].mxu1 }
 0x18e   :  { %v1919_v14 = vadd.f32 %v1918_v15, %v1856_v63  ;;  %v1299_v43 = vadd.f32 %v1298_v10, %v1009_v30  ;;  %v1787_v17 = vadd.f32 %v1786_v1, %v1294_v23  ;;  %v1020_v18 = vpop.f32.mrb[62].mxu0  ;;  %v2508_v21 = vpop.f32.mrb[62].mxu1 }
 0x18f   :  { %v1310_v35 = vadd.f32 %v2508_v21, %v1020_v18  ;;  %v1022_v47 = vpop.f32.mrb[63].mxu0  ;;  %v1301_v51 = vpop.f32.mrb[63].mxu1  ;;  %v1860_v30 = vmul.f32 %v1307_v7, %v1307_v7 }
 0x190   :  { %v1788_v25 = vadd.f32 %v1787_v17, %v1299_v43  ;;  %v1858_v39 = vmul.f32 %v1299_v43, %v1299_v43  ;;  %v1920_v46 = vadd.f32 %v1919_v14, %v1857_v13  ;;  %v1302_v55 = vadd.f32 %v1301_v51, %v1012_v42 }
 0x191   :  { %v2326_v26 = vpack.c.bf16 %v1310_v35, %v1307_v7  ;;  %v1861_v31 = vmul.f32 %v1310_v35, %v1310_v35 }
 0x192   :  { %v1921_v6 = vadd.f32 %v1920_v46, %v1858_v39  ;;  %v2321_v62 = vpack.c.bf16 %v1302_v55, %v1299_v43  ;;  %v1789_v29 = vadd.f32 %v1788_v25, %v1302_v55  ;;  %v1859_v33 = vmul.f32 %v1302_v55, %v1302_v55 }
 0x193   :  { %2422 = vst [vmem:[%s3458_s2 + $0x78] sm:$0xff] %v2326_v26  }
 0x194   :  { %2421 = vst [vmem:[%s3458_s2 + $0x70] sm:$0xff] %v2321_v62   ;;  %v1790_v27 = vadd.f32 %v1789_v29, %v1307_v7  ;;  %v1922_v59 = vadd.f32 %v1921_v6, %v1859_v33  ;;  %v1025_v37 = vpop.f32.mrb[64].mxu0  ;;  %v2511_v41 = vpop.f32.mrb[64].mxu1 }
 0x195   :  { %v1027_v45 = vpop.f32.mrb[65].mxu0  ;;  %v1314_v19 = vpop.f32.mrb[65].mxu1 }
 0x196   :  { %v1923_v42 = vadd.f32 %v1922_v59, %v1860_v30  ;;  %v1315_v49 = vadd.f32 %v1314_v19, %v1025_v37  ;;  %v1791_v23 = vadd.f32 %v1790_v27, %v1310_v35  ;;  %v1028_v22 = vpop.f32.mrb[66].mxu0  ;;  %v2512_v50 = vpop.f32.mrb[66].mxu1 }
 0x197   :  { %v1030_v54 = vpop.f32.mrb[67].mxu0  ;;  %v1317_v57 = vpop.f32.mrb[67].mxu1 }
 0x198   :  { %v1792_v11 = vadd.f32 %v1791_v23, %v1315_v49  ;;  %v1862_v53 = vmul.f32 %v1315_v49, %v1315_v49  ;;  %v1924_v38 = vadd.f32 %v1923_v42, %v1861_v31  ;;  %v1318_v58 = vadd.f32 %v1317_v57, %v1028_v22 }
 0x19a   :  { %v1925_v61 = vadd.f32 %v1924_v38, %v1862_v53  ;;  %v2331_v2 = vpack.c.bf16 %v1318_v58, %v1315_v49  ;;  %v1793_v3 = vadd.f32 %v1792_v11, %v1318_v58  ;;  %v1863_v63 = vmul.f32 %v1318_v58, %v1318_v58 }
 0x19c   :  { %2423 = vst [vmem:[%s3458_s2 + $0x80] sm:$0xff] %v2331_v2   ;;  %v1926_v1 = vadd.f32 %v1925_v61, %v1863_v63  ;;  %v1033_v15 = vpop.f32.mrb[68].mxu0  ;;  %v2515_v5 = vpop.f32.mrb[68].mxu1 }
 0x19d   :  { %v1323_v9 = vadd.f32 %v2511_v41, %v1033_v15  ;;  %v1035_v7 = vpop.f32.mrb[69].mxu0  ;;  %v1330_v34 = vpop.f32.mrb[69].mxu1 }
 0x19e   :  { %v1036_v10 = vpop.f32.mrb[70].mxu0  ;;  %v2516_v13 = vpop.f32.mrb[70].mxu1 }
 0x19f   :  { %v1794_v14 = vadd.f32 %v1793_v3, %v1323_v9  ;;  %v1864_v43 = vmul.f32 %v1323_v9, %v1323_v9  ;;  %v1326_v17 = vadd.f32 %v2512_v50, %v1036_v10  ;;  %v1038_v18 = vpop.f32.mrb[71].mxu0  ;;  %v1333_v21 = vpop.f32.mrb[71].mxu1 }
 0x1a1   :  { %v1927_v35 = vadd.f32 %v1926_v1, %v1864_v43  ;;  %v2336_v47 = vpack.c.bf16 %v1326_v17, %v1323_v9  ;;  %v1795_v51 = vadd.f32 %v1794_v14, %v1326_v17  ;;  %v1865_v25 = vmul.f32 %v1326_v17, %v1326_v17 }
 0x1a3   :  { %2424 = vst [vmem:[%s3458_s2 + $0x88] sm:$0xff] %v2336_v47   ;;  %v1928_v39 = vadd.f32 %v1927_v35, %v1865_v25 }
 0x1a4   :  { %v1041_v46 = vpop.f32.mrb[72].mxu0  ;;  %v3299_v55 = vpop.f32.mrb[72].mxu1 }
 0x1a5   :  { %v1331_v26 = vadd.f32 %v1330_v34, %v1041_v46  ;;  %v1043_v6 = vpop.f32.mrb[73].mxu0  ;;  %v1346_v62 = vpop.f32.mrb[73].mxu1 }
 0x1a6   :  { %v1044_v29 = vpop.f32.mrb[74].mxu0  ;;  %v3301_v33 = vpop.f32.mrb[74].mxu1 }
 0x1a7   :  { %v1796_v30 = vadd.f32 %v1795_v51, %v1331_v26  ;;  %v1866_v27 = vmul.f32 %v1331_v26, %v1331_v26  ;;  %v1334_v59 = vadd.f32 %v1333_v21, %v1044_v29  ;;  %v1046_v37 = vpop.f32.mrb[75].mxu0  ;;  %v1349_v41 = vpop.f32.mrb[75].mxu1 }
 0x1a9   :  { %v1929_v45 = vadd.f32 %v1928_v39, %v1866_v27  ;;  %v2341_v19 = vpack.c.bf16 %v1334_v59, %v1331_v26  ;;  %v1797_v31 = vadd.f32 %v1796_v30, %v1334_v59  ;;  %v1867_v42 = vmul.f32 %v1334_v59, %v1334_v59 }
 0x1ab   :  { %2425 = vst [vmem:[%s3458_s2 + $0x90] sm:$0xff] %v2341_v19   ;;  %v1930_v49 = vadd.f32 %v1929_v45, %v1867_v42 }
 0x1ac   :  { %v1049_v23 = vpop.f32.mrb[76].mxu0  ;;  %v3306_v22 = vpop.f32.mrb[76].mxu1 }
 0x1ad   :  { %v1339_v50 = vadd.f32 %v2515_v5, %v1049_v23  ;;  %v1051_v54 = vpop.f32.mrb[77].mxu0  ;;  %v3308_v57 = vpop.f32.mrb[77].mxu1 }
 0x1ae   :  { %v1052_v11 = vpop.f32.mrb[78].mxu0  ;;  %v3310_v53 = vpop.f32.mrb[78].mxu1 }
 0x1af   :  { %v1798_v38 = vadd.f32 %v1797_v31, %v1339_v50  ;;  %v1868_v58 = vmul.f32 %v1339_v50, %v1339_v50  ;;  %v1342_v61 = vadd.f32 %v2516_v13, %v1052_v11  ;;  %v1054_v2 = vpop.f32.mrb[79].mxu0  ;;  %v3312_v3 = vpop.f32.mrb[79].mxu1 }
 0x1b1   :  { %v1931_v63 = vadd.f32 %v1930_v49, %v1868_v58  ;;  %v2346_v1 = vpack.c.bf16 %v1342_v61, %v1339_v50  ;;  %v1799_v15 = vadd.f32 %v1798_v38, %v1342_v61  ;;  %v1869_v9 = vmul.f32 %v1342_v61, %v1342_v61 }
 0x1b3   :  { %2426 = vst [vmem:[%s3458_s2 + $0x98] sm:$0xff] %v2346_v1   ;;  %v1932_v5 = vadd.f32 %v1931_v63, %v1869_v9 }
 0x1b4   :  { %v1057_v7 = vpop.f32.mrb[80].mxu0  ;;  %v2527_v34 = vpop.f32.mrb[80].mxu1 }
 0x1b5   :  { %v1347_v10 = vadd.f32 %v1346_v62, %v1057_v7  ;;  %v3318_v14 = vadd.f32 %v2527_v34, %v3155_v60  ;;  %v1059_v43 = vpop.f32.mrb[81].mxu0  ;;  %v1378_v13 = vpop.f32.mrb[81].mxu1 }
 0x1b6   :  { %v3321_v17 = vadd.f32 %v1378_v13, %v3149_v52  ;;  %v1060_v18 = vpop.f32.mrb[82].mxu0  ;;  %v2528_v21 = vpop.f32.mrb[82].mxu1 }
 0x1b7   :  { %v1800_v35 = vadd.f32 %v1799_v15, %v1347_v10  ;;  %v1870_v47 = vmul.f32 %v1347_v10, %v1347_v10  ;;  %v1350_v51 = vadd.f32 %v1349_v41, %v1060_v18  ;;  %v1062_v25 = vpop.f32.mrb[83].mxu0  ;;  %v1381_v39 = vpop.f32.mrb[83].mxu1  ;;  %v3324_v46 = vadd.f32 %v2528_v21, %v3157_v0 }
 0x1b8   :  { %v3327_v26 = vadd.f32 %v1381_v39, %v3153_v56 }
 0x1b9   :  { %v1933_v60 = vadd.f32 %v1932_v5, %v1870_v47  ;;  %v2351_v6 = vpack.c.bf16 %v1350_v51, %v1347_v10  ;;  %v1801_v62 = vadd.f32 %v1800_v35, %v1350_v51  ;;  %v1871_v29 = vmul.f32 %v1350_v51, %v1350_v51 }
 0x1ba   :  { %v2376_v52 = vpack.c.bf16 %v3324_v46, %v3318_v14  ;;  %v2371_v30 = vpack.c.bf16 %v3327_v26, %v3321_v17 }
 0x1bb   :  { %2427 = vst [vmem:[%s3458_s2 + $0xa0] sm:$0xff] %v2351_v6   ;;  %v1934_v27 = vadd.f32 %v1933_v60, %v1871_v29 }
 0x1bc   :  { %2432 = vst [vmem:[%s3458_s2 + $0xc8] sm:$0xff] %v2376_v52   ;;  %2431 = vst [vmem:[%s3458_s2 + $0xc0] sm:$0xff] %v2371_v30   ;;  %v1065_v56 = vpop.f32.mrb[84].mxu0  ;;  %v2531_v0 = vpop.f32.mrb[84].mxu1 }
 0x1bd   :  { %v1355_v59 = vadd.f32 %v3299_v55, %v1065_v56  ;;  %v3344_v37 = vadd.f32 %v2531_v0, %v3169_v12  ;;  %v1067_v41 = vpop.f32.mrb[85].mxu0  ;;  %v1394_v45 = vpop.f32.mrb[85].mxu1 }
 0x1be   :  { %v3347_v19 = vadd.f32 %v1394_v45, %v3161_v4  ;;  %v1068_v31 = vpop.f32.mrb[86].mxu0  ;;  %v2532_v42 = vpop.f32.mrb[86].mxu1 }
 0x1bf   :  { %v1802_v49 = vadd.f32 %v1801_v62, %v1355_v59  ;;  %v1872_v23 = vmul.f32 %v1355_v59, %v1355_v59  ;;  %v1358_v50 = vadd.f32 %v3301_v33, %v1068_v31  ;;  %v1070_v54 = vpop.f32.mrb[87].mxu0  ;;  %v1397_v11 = vpop.f32.mrb[87].mxu1  ;;  %v3351_v38 = vadd.f32 %v2532_v42, %v3173_v16 }
 0x1c0   :  { %v3354_v55 = vadd.f32 %v1397_v11, %v3165_v8 }
 0x1c1   :  { %v1935_v12 = vadd.f32 %v1934_v27, %v1872_v23  ;;  %v2356_v58 = vpack.c.bf16 %v1358_v50, %v1355_v59  ;;  %v1803_v61 = vadd.f32 %v1802_v49, %v1358_v50  ;;  %v1873_v2 = vmul.f32 %v1358_v50, %v1358_v50 }
 0x1c2   :  { %v2386_v4 = vpack.c.bf16 %v3351_v38, %v3344_v37  ;;  %v2381_v63 = vpack.c.bf16 %v3354_v55, %v3347_v19 }
 0x1c3   :  { %2428 = vst [vmem:[%s3458_s2 + $0xa8] sm:$0xff] %v2356_v58   ;;  %v1936_v33 = vadd.f32 %v1935_v12, %v1873_v2 }
 0x1c4   :  { %2434 = vst [vmem:[%s3458_s2 + $0xd8] sm:$0xff] %v2386_v4   ;;  %2433 = vst [vmem:[%s3458_s2 + $0xd0] sm:$0xff] %v2381_v63   ;;  %v1073_v8 = vpop.f32.mrb[88].mxu0  ;;  %v2535_v16 = vpop.f32.mrb[88].mxu1  ;;  %v1881_v4 = vmul.f32 %v3324_v46, %v3324_v46 }
 0x1c5   :  { %v1363_v1 = vadd.f32 %v3308_v57, %v1073_v8  ;;  %v3371_v15 = vadd.f32 %v2535_v16, %v3185_v28  ;;  %v1075_v9 = vpop.f32.mrb[89].mxu0  ;;  %v1410_v5 = vpop.f32.mrb[89].mxu1  ;;  %v1882_v8 = vmul.f32 %v3347_v19, %v3347_v19 }
 0x1c6   :  { %v3374_v7 = vadd.f32 %v1410_v5, %v3177_v20  ;;  %v1076_v34 = vpop.f32.mrb[90].mxu0  ;;  %v2536_v10 = vpop.f32.mrb[90].mxu1 }
 0x1c7   :  { %v1804_v43 = vadd.f32 %v1803_v61, %v1363_v1  ;;  %v1874_v13 = vmul.f32 %v1363_v1, %v1363_v1  ;;  %v1366_v18 = vadd.f32 %v3312_v3, %v1076_v34  ;;  %v1078_v21 = vpop.f32.mrb[91].mxu0  ;;  %v1413_v35 = vpop.f32.mrb[91].mxu1  ;;  %v3378_v47 = vadd.f32 %v2536_v10, %v3189_v32 }
 0x1c8   :  { %v3381_v57 = vadd.f32 %v1413_v35, %v3181_v24  ;;  %v1880_v61 = vmul.f32 %v3318_v14, %v3318_v14 }
 0x1c9   :  { %v1937_v28 = vadd.f32 %v1936_v33, %v1874_v13  ;;  %v2361_v51 = vpack.c.bf16 %v1366_v18, %v1363_v1  ;;  %v1805_v25 = vadd.f32 %v1804_v43, %v1366_v18  ;;  %v1875_v39 = vmul.f32 %v1366_v18, %v1366_v18 }
 0x1ca   :  { %v2396_v20 = vpack.c.bf16 %v3378_v47, %v3371_v15  ;;  %v2391_v60 = vpack.c.bf16 %v3381_v57, %v3374_v7 }
 0x1cb   :  { %2429 = vst [vmem:[%s3458_s2 + $0xb0] sm:$0xff] %v2361_v51   ;;  %v1938_v3 = vadd.f32 %v1937_v28, %v1875_v39 }
 0x1cc   :  { %2436 = vst [vmem:[%s3458_s2 + $0xe8] sm:$0xff] %v2396_v20   ;;  %2435 = vst [vmem:[%s3458_s2 + $0xe0] sm:$0xff] %v2391_v60   ;;  %v1081_v24 = vpop.f32.mrb[92].mxu0  ;;  %v2539_v32 = vpop.f32.mrb[92].mxu1 }
 0x1cd   :  { %v1371_v6 = vadd.f32 %v3306_v22, %v1081_v24  ;;  %v3398_v62 = vadd.f32 %v2539_v32, %v3201_v44  ;;  %v1083_v29 = vpop.f32.mrb[93].mxu0  ;;  %v1426_v52 = vpop.f32.mrb[93].mxu1 }
 0x1ce   :  { %v1427_v30 = vadd.f32 %v1426_v52, %v3193_v36  ;;  %v1084_v27 = vpop.f32.mrb[94].mxu0  ;;  %v2540_v56 = vpop.f32.mrb[94].mxu1  ;;  %v1878_v36 = vmul.f32 %v3321_v17, %v3321_v17 }
 0x1cf   :  { %v1806_v0 = vadd.f32 %v1805_v25, %v1371_v6  ;;  %v1876_v59 = vmul.f32 %v1371_v6, %v1371_v6  ;;  %v1374_v41 = vadd.f32 %v3310_v53, %v1084_v27  ;;  %v1086_v45 = vpop.f32.mrb[95].mxu0  ;;  %v1429_v31 = vpop.f32.mrb[95].mxu1  ;;  %v1438_v42 = vadd.f32 %v2540_v56, %v3205_v48 }
 0x1d0   :  { %v1430_v49 = vadd.f32 %v1429_v31, %v3197_v40  ;;  %v1879_v40 = vmul.f32 %v3327_v26, %v3327_v26 }
 0x1d1   :  { %v1939_v22 = vadd.f32 %v1938_v3, %v1876_v59  ;;  %v2366_v23 = vpack.c.bf16 %v1374_v41, %v1371_v6  ;;  %v1807_v44 = vadd.f32 %v1806_v0, %v1374_v41  ;;  %v1877_v50 = vmul.f32 %v1374_v41, %v1374_v41 }
 0x1d2   :  { %v2406_v54 = vpack.c.bf16 %v1438_v42, %v3398_v62  ;;  %v2401_v11 = vpack.c.bf16 %v1430_v49, %v1427_v30  ;;  %v1891_v32 = vmul.f32 %v1430_v49, %v1430_v49 }
 0x1d3   :  { %2430 = vst [vmem:[%s3458_s2 + $0xb8] sm:$0xff] %v2366_v23   ;;  %v1808_v53 = vadd.f32 %v1807_v44, %v3321_v17  ;;  %v1940_v12 = vadd.f32 %v1939_v22, %v1877_v50 }
 0x1d4   :  { %2438 = vst [vmem:[%s3458_s2 + $0xf8] sm:$0xff] %v2406_v54   ;;  %2437 = vst [vmem:[%s3458_s2 + $0xf0] sm:$0xff] %v2401_v11  }
 0x1d5   :  { %v1809_v48 = vadd.f32 %v1808_v53, %v3327_v26  ;;  %v1941_v58 = vadd.f32 %v1940_v12, %v1878_v36  ;;  %v1883_v26 = vmul.f32 %v3354_v55, %v3354_v55 }
 0x1d7   :  { %v1810_v17 = vadd.f32 %v1809_v48, %v3318_v14  ;;  %v1942_v2 = vadd.f32 %v1941_v58, %v1879_v40  ;;  %v1884_v14 = vmul.f32 %v3344_v37, %v3344_v37 }
 0x1d9   :  { %v1811_v63 = vadd.f32 %v1810_v17, %v3324_v46  ;;  %v1943_v33 = vadd.f32 %v1942_v2, %v1880_v61  ;;  %v1885_v46 = vmul.f32 %v3351_v38, %v3351_v38 }
 0x1db   :  { %v1812_v16 = vadd.f32 %v1811_v63, %v3347_v19  ;;  %v1944_v1 = vadd.f32 %v1943_v33, %v1881_v4  ;;  %v1886_v19 = vmul.f32 %v3374_v7, %v3374_v7 }
 0x1dd   :  { %v1813_v9 = vadd.f32 %v1812_v16, %v3354_v55  ;;  %v1945_v5 = vadd.f32 %v1944_v1, %v1882_v8  ;;  %v1887_v55 = vmul.f32 %v3381_v57, %v3381_v57 }
 0x1df   :  { %v1946_v34 = vadd.f32 %v1945_v5, %v1883_v26  ;;  %v1814_v10 = vadd.f32 %v1813_v9, %v3344_v37  ;;  %v1888_v37 = vmul.f32 %v3371_v15, %v3371_v15 }
 0x1e1   :  { %v1815_v43 = vadd.f32 %v1814_v10, %v3351_v38  ;;  %v1947_v13 = vadd.f32 %v1946_v34, %v1884_v14  ;;  %v1889_v38 = vmul.f32 %v3378_v47, %v3378_v47 }
 0x1e3   :  { %v1816_v18 = vadd.f32 %v1815_v43, %v3374_v7  ;;  %v1948_v21 = vadd.f32 %v1947_v13, %v1885_v46  ;;  %v1890_v7 = vmul.f32 %v1427_v30, %v1427_v30 }
 0x1e5   :  { %v1817_v35 = vadd.f32 %v1816_v18, %v3381_v57  ;;  %v1949_v28 = vadd.f32 %v1948_v21, %v1886_v19  ;;  %v1892_v57 = vmul.f32 %v3398_v62, %v3398_v62 }
 0x1e7   :  { %v1818_v51 = vadd.f32 %v1817_v35, %v3371_v15  ;;  %v1950_v25 = vadd.f32 %v1949_v28, %v1887_v55  ;;  %v1893_v15 = vmul.f32 %v1438_v42, %v1438_v42 }
 0x1e9   :  { %v1819_v39 = vadd.f32 %v1818_v51, %v3378_v47  ;;  %v1951_v20 = vadd.f32 %v1950_v25, %v1888_v37 }
 0x1eb   :  { %v1820_v60 = vadd.f32 %v1819_v39, %v1427_v30  ;;  %v1952_v3 = vadd.f32 %v1951_v20, %v1889_v38 }
 0x1ed   :  { %v1821_v24 = vadd.f32 %v1820_v60, %v1430_v49  ;;  %v1953_v6 = vadd.f32 %v1952_v3, %v1890_v7 }
 0x1ef   :  { %v1822_v29 = vadd.f32 %v1821_v24, %v3398_v62  ;;  %v1954_v52 = vadd.f32 %v1953_v6, %v1891_v32 }
 0x1f1   :  { %v1823_v27 = vadd.f32 %v1822_v29, %v1438_v42  ;;  %v1955_v56 = vadd.f32 %v1954_v52, %v1892_v57 }
 0x1f3   :  { %v1824_v0 = vrot.slane %v1823_v27, 4  ;;  %v1956_v59 = vadd.f32 %v1955_v56, %v1893_v15 }
 0x1f5   :  { %v1825_v41 = vadd.f32 %v1824_v0, %v1823_v27  ;;  %v1957_v47 = vrot.slane %v1956_v59, 4 }
 0x1f7   :  { %v1826_v45 = vrot.slane %v1825_v41, 2  ;;  %v1958_v31 = vadd.f32 %v1957_v47, %v1956_v59 }
 0x1f9   :  { %v1827_v30 = vadd.f32 %v1826_v45, %v1825_v41  ;;  %v1959_v22 = vrot.slane %v1958_v31, 2 }
 0x1fb   :  { %v1828_v23 = vrot.slane %v1827_v30, 1  ;;  %v1960_v49 = vadd.f32 %v1959_v22, %v1958_v31 }
 0x1fd   :  { %v1961_v44 = vrot.slane %v1960_v49, 1  ;;  %v1829_v50 = vadd.f32 %v1828_v23, %v1827_v30 }
 0x1ff   :  { %v1962_v54 = vadd.f32 %v1961_v44, %v1960_v49 }
 0x201   :  { %v1964_v11 = vsel %vm1963_vm1, %v1829_v50, %v1962_v54 }
 0x202   :  { %1965 = vst [vmem:[%s3459_s3] sm:$0x3] %v1964_v11 }

// kernel: encoder_forward.12
= control target key start
LH: loop header
LB: loop body
LE: loop exit
PB: predicated region body
PF: predicated region fallthrough
CT: control target
= control target key end

     0   :  { %vm550_vm0 = vcmask 523264   ;;  %vm1004_vm1 = vcmask 1040384   ;;  %s1770_s1 = inlined_call_operand.vmem [shape: bf16[576,128], index: 1, kind: input, shape index: {}]   ;;  %s1771_s0 = inlined_call_operand.vmem [shape: bf16[128,576], index: 0, kind: input, shape index: {}]   ;;  %s1772_s2 = inlined_call_operand.vmem [shape: bf16[128,128], index: 2, kind: output, shape index: {0}]   ;;  %s1773_s3 = inlined_call_operand.vmem [shape: f32[1,2,128], index: 3, kind: output, shape index: {1}]  }
   0x1   :  { %v1350_v0 = vld [vmem:[%s1770_s1 + $0x40] sm:$0xff]   ;;  %v1354_v4 = vld [vmem:[%s1770_s1 + $0x48] sm:$0xff]   ;;  %v1358_v8 = vld [vmem:[%s1770_s1 + $0x50] sm:$0xff]  }
   0x2   :  { %v1351_v1 = vld [vmem:[%s1770_s1 + $0xc0] sm:$0xff]   ;;  %1178 = vmatprep.subr.bf16.mxu0 %v1350_v0  ;;  %v1355_v5 = vld [vmem:[%s1770_s1 + $0xc8] sm:$0xff]   ;;  %v1359_v9 = vld [vmem:[%s1770_s1 + $0xd0] sm:$0xff]  }
   0x3   :  { %v1352_v2 = vld [vmem:[%s1770_s1] sm:$0xff]   ;;  %1242 = vmatprep.subr.bf16.mxu1 %v1351_v1  ;;  %v1356_v6 = vld [vmem:[%s1770_s1 + $0x8] sm:$0xff]   ;;  %v1360_v10 = vld [vmem:[%s1770_s1 + $0x10] sm:$0xff]  }
   0x4   :  { %v1353_v3 = vld [vmem:[%s1770_s1 + $0x80] sm:$0xff]   ;;  %1179 = vmatpush3.bf16.msra.mxu0 %v1352_v2  ;;  %v1357_v7 = vld [vmem:[%s1770_s1 + $0x88] sm:$0xff]   ;;  %v1361_v11 = vld [vmem:[%s1770_s1 + $0x90] sm:$0xff]  }
   0x5   :  { %1243 = vmatpush3.bf16.msra.mxu1 %v1353_v3  ;;  %1180 = vmatprep.subr.bf16.mxu0 %v1354_v4  ;;  %v1362_v12 = vld [vmem:[%s1770_s1 + $0x58] sm:$0xff]   ;;  %v1366_v16 = vld [vmem:[%s1770_s1 + $0x60] sm:$0xff]   ;;  %v1370_v20 = vld [vmem:[%s1770_s1 + $0x68] sm:$0xff]  }
   0x6   :  { %1244 = vmatprep.subr.bf16.mxu1 %v1355_v5  ;;  %v1363_v13 = vld [vmem:[%s1770_s1 + $0xd8] sm:$0xff]   ;;  %v1367_v17 = vld [vmem:[%s1770_s1 + $0xe0] sm:$0xff]   ;;  %v1371_v21 = vld [vmem:[%s1770_s1 + $0xe8] sm:$0xff]  }
   0x7   :  { %v1364_v14 = vld [vmem:[%s1770_s1 + $0x18] sm:$0xff]   ;;  %v1368_v18 = vld [vmem:[%s1770_s1 + $0x20] sm:$0xff]   ;;  %v1372_v22 = vld [vmem:[%s1770_s1 + $0x28] sm:$0xff]  }
   0x8   :  { %1181 = vmatpush3.bf16.msra.mxu0 %v1356_v6  ;;  %v1365_v15 = vld [vmem:[%s1770_s1 + $0x98] sm:$0xff]   ;;  %v1369_v19 = vld [vmem:[%s1770_s1 + $0xa0] sm:$0xff]   ;;  %v1373_v23 = vld [vmem:[%s1770_s1 + $0xa8] sm:$0xff]  }
   0x9   :  { %1245 = vmatpush3.bf16.msra.mxu1 %v1357_v7  ;;  %1182 = vmatprep.subr.bf16.mxu0 %v1358_v8  ;;  %v1374_v24 = vld [vmem:[%s1770_s1 + $0x70] sm:$0xff]   ;;  %v1378_v28 = vld [vmem:[%s1770_s1 + $0x78] sm:$0xff]   ;;  %v1387_v35 = vld [vmem:[%s1771_s0 + $0xc] ss:$20 sps:$4 sm:$0xff]  }
   0xa   :  { %1246 = vmatprep.subr.bf16.mxu1 %v1359_v9  ;;  %v1375_v25 = vld [vmem:[%s1770_s1 + $0xf0] sm:$0xff]   ;;  %v1379_v29 = vld [vmem:[%s1770_s1 + $0xf8] sm:$0xff]   ;;  %v1388_v36 = vld [vmem:[%s1770_s1 + $0x100] sm:$0xff]   ;;  %704 = vmatprep.mubr.bf16.mxu1 %v1387_v35 }
   0xb   :  { %v1376_v26 = vld [vmem:[%s1770_s1 + $0x30] sm:$0xff]   ;;  %v1380_v30 = vld [vmem:[%s1770_s1 + $0x38] sm:$0xff]   ;;  %v1389_v37 = vld [vmem:[%s1771_s0 + $0x2c] ss:$20 sps:$4 sm:$0xff]  }
   0xc   :  { %1183 = vmatpush3.bf16.msra.mxu0 %v1360_v10  ;;  %v1377_v27 = vld [vmem:[%s1770_s1 + $0xb0] sm:$0xff]   ;;  %v1381_v31 = vld [vmem:[%s1770_s1 + $0xb8] sm:$0xff]   ;;  %v1401_v42 = vld [vmem:[%s1770_s1 + $0x108] sm:$0xff]  }
   0xd   :  { %1247 = vmatpush3.bf16.msra.mxu1 %v1361_v11  ;;  %1184 = vmatprep.subr.bf16.mxu0 %v1362_v12  ;;  %v1382_v32 = vld [vmem:[%s1771_s0] ss:$20 sps:$4 sm:$0xff]   ;;  %v1384_v33 = vld [vmem:[%s1771_s0 + $0x4] ss:$20 sps:$4 sm:$0xff]   ;;  %v1385_v34 = vld [vmem:[%s1771_s0 + $0x8] ss:$20 sps:$4 sm:$0xff]  }
   0xe   :  { %1248 = vmatprep.subr.bf16.mxu1 %v1363_v13  ;;  %607 = vmatprep.mubr.bf16.mxu0 %v1384_v33  ;;  %v1391_v38 = vld [vmem:[%s1771_s0 + $0x34] ss:$20 sps:$4 sm:$0xff]   ;;  %v1394_v40 = vld [vmem:[%s1771_s0 + $0x30] ss:$20 sps:$4 sm:$0xff]   ;;  %v1400_v45 = vld [vmem:[%s1771_s0 + $0x58] ss:$20 sps:$4 sm:$0xff]  }
   0xf   :  { %v1393_v39 = vld [vmem:[%s1771_s0 + $0x28] ss:$20 sps:$4 sm:$0xff]   ;;  %v1399_v44 = vld [vmem:[%s1771_s0 + $0x50] ss:$20 sps:$4 sm:$0xff]   ;;  %v1406_v50 = vld [vmem:[%s1771_s0 + $0x78] ss:$20 sps:$4 sm:$0xff]  }
  0x10   :  { %1185 = vmatpush3.bf16.msra.mxu0 %v1364_v14  ;;  %v1395_v41 = vld [vmem:[%s1771_s0 + $0x54] ss:$20 sps:$4 sm:$0xff]   ;;  %v1397_v43 = vld [vmem:[%s1771_s0 + $0x5c] ss:$20 sps:$4 sm:$0xff]   ;;  %v1404_v48 = vld [vmem:[%s1771_s0 + $0x84] ss:$20 sps:$4 sm:$0xff]  }
  0x11   :  { %1249 = vmatpush3.bf16.msra.mxu1 %v1365_v15  ;;  %1186 = vmatprep.subr.bf16.mxu0 %v1366_v16  ;;  %v1414_v46 = vld [vmem:[%s1770_s1 + $0x110] sm:$0xff]   ;;  %v1427_v49 = vld [vmem:[%s1770_s1 + $0x118] sm:$0xff]   ;;  %v1410_v53 = vld [vmem:[%s1771_s0 + $0xac] ss:$20 sps:$4 sm:$0xff]  }
  0x12   :  { %1250 = vmatprep.subr.bf16.mxu1 %v1367_v17  ;;  %v1402_v47 = vld [vmem:[%s1771_s0 + $0x7c] ss:$20 sps:$4 sm:$0xff]   ;;  %v1407_v51 = vld [vmem:[%s1771_s0 + $0x80] ss:$20 sps:$4 sm:$0xff]   ;;  %v1408_v52 = vld [vmem:[%s1771_s0 + $0xa4] ss:$20 sps:$4 sm:$0xff]  }
  0x13   :  { %v1412_v54 = vld [vmem:[%s1771_s0 + $0xa0] ss:$20 sps:$4 sm:$0xff]   ;;  %v1413_v55 = vld [vmem:[%s1771_s0 + $0xa8] ss:$20 sps:$4 sm:$0xff]   ;;  %v1420_v59 = vld [vmem:[%s1771_s0 + $0xd0] ss:$20 sps:$4 sm:$0xff]  }
  0x14   :  { %1187 = vmatpush3.bf16.msra.mxu0 %v1368_v18  ;;  %v1415_v56 = vld [vmem:[%s1771_s0 + $0xcc] ss:$20 sps:$4 sm:$0xff]   ;;  %v1417_v57 = vld [vmem:[%s1771_s0 + $0xd4] ss:$20 sps:$4 sm:$0xff]   ;;  %v1423_v61 = vld [vmem:[%s1771_s0 + $0xfc] ss:$20 sps:$4 sm:$0xff]  }
  0x15   :  { %1251 = vmatpush3.bf16.msra.mxu1 %v1369_v19  ;;  %1188 = vmatprep.subr.bf16.mxu0 %v1370_v20  ;;  %v1419_v58 = vld [vmem:[%s1771_s0 + $0xc8] ss:$20 sps:$4 sm:$0xff]   ;;  %v1425_v62 = vld [vmem:[%s1771_s0 + $0xf0] ss:$20 sps:$4 sm:$0xff]   ;;  %v1426_v63 = vld [vmem:[%s1771_s0 + $0xf8] ss:$20 sps:$4 sm:$0xff]  }
  0x16   :  { %1252 = vmatprep.subr.bf16.mxu1 %v1371_v21  ;;  %v1421_v60 = vld [vmem:[%s1771_s0 + $0xf4] ss:$20 sps:$4 sm:$0xff]   ;;  %v1428_v0 = vld [vmem:[%s1771_s0 + $0x11c] ss:$20 sps:$4 sm:$0xff]   ;;  %v1430_v1 = vld [vmem:[%s1771_s0 + $0x124] ss:$20 sps:$4 sm:$0xff]  }
  0x17   :  { %v1432_v2 = vld [vmem:[%s1771_s0 + $0x118] ss:$20 sps:$4 sm:$0xff]   ;;  %v1433_v3 = vld [vmem:[%s1771_s0 + $0x120] ss:$20 sps:$4 sm:$0xff]   ;;  %v1434_v4 = vld [vmem:[%s1771_s0 + $0x10] ss:$20 sps:$4 sm:$0xff]  }
  0x18   :  { %1189 = vmatpush3.bf16.msra.mxu0 %v1372_v22  ;;  %v1435_v5 = vld [vmem:[%s1771_s0 + $0xb0] ss:$20 sps:$4 sm:$0xff]   ;;  %v1436_v6 = vld [vmem:[%s1771_s0 + $0x38] ss:$20 sps:$4 sm:$0xff]   ;;  %v1438_v8 = vld [vmem:[%s1771_s0 + $0x60] ss:$20 sps:$4 sm:$0xff]  }
  0x19   :  { %1253 = vmatpush3.bf16.msra.mxu1 %v1373_v23  ;;  %1190 = vmatprep.subr.bf16.mxu0 %v1374_v24  ;;  %v1437_v7 = vld [vmem:[%s1771_s0 + $0xd8] ss:$20 sps:$4 sm:$0xff]   ;;  %v1439_v9 = vld [vmem:[%s1771_s0 + $0x100] ss:$20 sps:$4 sm:$0xff]   ;;  %v1440_v10 = vld [vmem:[%s1771_s0 + $0x88] ss:$20 sps:$4 sm:$0xff]  }
  0x1a   :  { %1254 = vmatprep.subr.bf16.mxu1 %v1375_v25  ;;  %v1441_v11 = vld [vmem:[%s1771_s0 + $0x128] ss:$20 sps:$4 sm:$0xff]  }
  0x1c   :  { %1191 = vmatpush3.bf16.msra.mxu0 %v1376_v26 }
  0x1d   :  { %1255 = vmatpush3.bf16.msra.mxu1 %v1377_v27  ;;  %1192 = vmatprep.subr.bf16.mxu0 %v1378_v28 }
  0x1e   :  { %1256 = vmatprep.subr.bf16.mxu1 %v1379_v29 }
  0x20   :  { %1193 = vmatpush3.bf16.msra.mxu0 %v1380_v30 }
  0x21   :  { %1257 = vmatpush3.bf16.msra.mxu1 %v1381_v31  ;;  %1318 = vmatprep.subr.bf16.mxu0 %v1388_v36 }
  0x22   :  { %1342 = vmatprep.subr.bf16.mxu1 %v1388_v36 }
  0x23   :  { %608 = vmatmul.mubr.bf16.vlgmr.msra.gmra.mrb[0].mxu0 %v1382_v32 }
  0x24   :  { %705 = vmatmul.mubr.bf16.vlgmr.msra.gmra.mrb[0].mxu1 %v1385_v34  ;;  %1319 = vmatpush3.bf16.msra.mxu0 %v1388_v36 }
  0x25   :  { %615 = vmatprep.mubr.bf16.mxu0 %v1389_v37  ;;  %712 = vmatprep.mubr.bf16.mxu1 %v1391_v38 }
  0x26   :  { %1346 = vmatpush3.bf16.msra.mxu1 %v1388_v36  ;;  %1320 = vmatprep.subr.bf16.mxu0 %v1401_v42 }
  0x27   :  { %1343 = vmatprep.subr.bf16.mxu1 %v1401_v42 }
  0x28   :  { %1321 = vmatpush3.bf16.msra.mxu0 %v1401_v42 }
  0x29   :  { %1322 = vmatprep.subr.bf16.mxu0 %v1414_v46 }
  0x2a   :  { %1347 = vmatpush3.bf16.msra.mxu1 %v1401_v42 }
  0x2b   :  { %616 = vmatmul.mubr.bf16.gmra.mrb[4].mxu0 %v1393_v39  ;;  %1344 = vmatprep.subr.bf16.mxu1 %v1414_v46 }
  0x2c   :  { %713 = vmatmul.mubr.bf16.gmra.mrb[4].mxu1 %v1394_v40  ;;  %623 = vmatprep.mubr.bf16.mxu0 %v1395_v41 }
  0x2d   :  { %720 = vmatprep.mubr.bf16.mxu1 %v1397_v43  ;;  %1323 = vmatpush3.bf16.msra.mxu0 %v1414_v46 }
  0x2e   :  { %1348 = vmatpush3.bf16.msra.mxu1 %v1414_v46  ;;  %1324 = vmatprep.subr.bf16.mxu0 %v1427_v49 }
  0x2f   :  { %1345 = vmatprep.subr.bf16.mxu1 %v1427_v49 }
  0x31   :  { %1325 = vmatpush3.bf16.msra.mxu0 %v1427_v49 }
  0x32   :  { %1349 = vmatpush3.bf16.msra.mxu1 %v1427_v49 }
  0x33   :  { %624 = vmatmul.mubr.bf16.gmra.mrb[8].mxu0 %v1399_v44 }
  0x34   :  { %721 = vmatmul.mubr.bf16.gmra.mrb[8].mxu1 %v1400_v45  ;;  %631 = vmatprep.mubr.bf16.mxu0 %v1402_v47 }
  0x35   :  { %728 = vmatprep.mubr.bf16.mxu1 %v1404_v48 }
  0x3b   :  { %632 = vmatmul.mubr.bf16.gmra.mrb[12].mxu0 %v1406_v50 }
  0x3c   :  { %729 = vmatmul.mubr.bf16.gmra.mrb[12].mxu1 %v1407_v51  ;;  %639 = vmatprep.mubr.bf16.mxu0 %v1408_v52 }
  0x3d   :  { %736 = vmatprep.mubr.bf16.mxu1 %v1410_v53 }
  0x43   :  { %640 = vmatmul.mubr.bf16.gmra.mrb[16].mxu0 %v1412_v54 }
  0x44   :  { %737 = vmatmul.mubr.bf16.gmra.mrb[16].mxu1 %v1413_v55  ;;  %647 = vmatprep.mubr.bf16.mxu0 %v1415_v56 }
  0x45   :  { %744 = vmatprep.mubr.bf16.mxu1 %v1417_v57 }
  0x4b   :  { %648 = vmatmul.mubr.bf16.gmra.mrb[20].mxu0 %v1419_v58 }
  0x4c   :  { %745 = vmatmul.mubr.bf16.gmra.mrb[20].mxu1 %v1420_v59  ;;  %655 = vmatprep.mubr.bf16.mxu0 %v1421_v60 }
  0x4d   :  { %752 = vmatprep.mubr.bf16.mxu1 %v1423_v61 }
  0x53   :  { %656 = vmatmul.mubr.bf16.gmra.mrb[24].mxu0 %v1425_v62 }
  0x54   :  { %753 = vmatmul.mubr.bf16.gmra.mrb[24].mxu1 %v1426_v63  ;;  %663 = vmatprep.mubr.bf16.mxu0 %v1428_v0 }
  0x55   :  { %760 = vmatprep.mubr.bf16.mxu1 %v1430_v1 }
  0x5b   :  { %664 = vmatmul.mubr.bf16.gmra.mrb[28].mxu0 %v1432_v2 }
  0x5c   :  { %761 = vmatmul.mubr.bf16.gmra.mrb[28].mxu1 %v1433_v3  ;;  %1326 = vmatprep.mubr.msk.bf16.mxu0 %vm550_vm0, %v1434_v4 }
  0x5d   :  { %1334 = vmatprep.mubr.msk.bf16.mxu1 %vm550_vm0, %v1435_v5 }
  0x63   :  { %1327 = vmatmul.mubr.msk.bf16.vlgmr.msra.gmra.mrb[32].mxu0 %vm550_vm0, %v1436_v6 }
  0x64   :  { %1335 = vmatmul.mubr.msk.bf16.vlgmr.msra.gmra.mrb[32].mxu1 %vm550_vm0, %v1437_v7  ;;  %1330 = vmatprep.mubr.msk.bf16.mxu0 %vm550_vm0, %v1438_v8 }
  0x65   :  { %1338 = vmatprep.mubr.msk.bf16.mxu1 %vm550_vm0, %v1439_v9 }
  0x6b   :  { %1331 = vmatmul.mubr.msk.bf16.gmra.mrb[36].mxu0 %vm550_vm0, %v1440_v10 }
  0x6c   :  { %1339 = vmatmul.mubr.msk.bf16.gmra.mrb[36].mxu1 %vm550_vm0, %v1441_v11 }
  0xf6   :  { %v1194_v12 = vpop.f32.mrb[0].mxu0 }
  0xf7   :  { %v1258_v13 = vpop.f32.mrb[0].mxu1  ;;  %v1195_v14 = vpop.f32.mrb[1].mxu0 }
  0xf8   :  { %v1196_v15 = vadd.f32 %v1195_v14, %v1194_v12  ;;  %v1259_v16 = vpop.f32.mrb[1].mxu1  ;;  %v1197_v17 = vpop.f32.mrb[2].mxu0 }
  0xf9   :  { %v1260_v18 = vadd.f32 %v1259_v16, %v1258_v13  ;;  %v1261_v19 = vpop.f32.mrb[2].mxu1  ;;  %v1198_v20 = vpop.f32.mrb[3].mxu0 }
  0xfa   :  { %v1199_v21 = vadd.f32 %v1198_v20, %v1197_v17  ;;  %v1262_v22 = vpop.f32.mrb[3].mxu1 }
  0xfb   :  { %v1263_v23 = vadd.f32 %v1262_v22, %v1261_v19  ;;  %v1698_v24 = vadd.f32 %v1260_v18, %v1196_v15 }
  0xfd   :  { %v1700_v25 = vadd.f32 %v1263_v23, %v1199_v21 }
  0xfe   :  { %v1200_v26 = vpop.f32.mrb[4].mxu0 }
  0xff   :  { %v1264_v27 = vpop.f32.mrb[4].mxu1  ;;  %v1201_v28 = vpop.f32.mrb[5].mxu0 }
 0x100   :  { %v1202_v29 = vadd.f32 %v1201_v28, %v1200_v26  ;;  %v1265_v30 = vpop.f32.mrb[5].mxu1  ;;  %v1203_v31 = vpop.f32.mrb[6].mxu0 }
 0x101   :  { %v1266_v32 = vadd.f32 %v1265_v30, %v1264_v27  ;;  %v1267_v33 = vpop.f32.mrb[6].mxu1  ;;  %v1204_v34 = vpop.f32.mrb[7].mxu0 }
 0x102   :  { %v1205_v35 = vadd.f32 %v1204_v34, %v1203_v31  ;;  %v1268_v36 = vpop.f32.mrb[7].mxu1 }
 0x103   :  { %v1269_v37 = vadd.f32 %v1268_v36, %v1267_v33  ;;  %v1702_v38 = vadd.f32 %v1266_v32, %v1202_v29 }
 0x105   :  { %v1704_v39 = vadd.f32 %v1269_v37, %v1205_v35 }
 0x106   :  { %v1206_v40 = vpop.f32.mrb[8].mxu0 }
 0x107   :  { %v1270_v41 = vpop.f32.mrb[8].mxu1  ;;  %v1207_v42 = vpop.f32.mrb[9].mxu0 }
 0x108   :  { %v1208_v43 = vadd.f32 %v1207_v42, %v1206_v40  ;;  %v1271_v44 = vpop.f32.mrb[9].mxu1  ;;  %v1209_v45 = vpop.f32.mrb[10].mxu0 }
 0x109   :  { %v1272_v46 = vadd.f32 %v1271_v44, %v1270_v41  ;;  %v1273_v47 = vpop.f32.mrb[10].mxu1  ;;  %v1210_v48 = vpop.f32.mrb[11].mxu0 }
 0x10a   :  { %v1211_v49 = vadd.f32 %v1210_v48, %v1209_v45  ;;  %v1274_v50 = vpop.f32.mrb[11].mxu1 }
 0x10b   :  { %v1275_v51 = vadd.f32 %v1274_v50, %v1273_v47  ;;  %v1706_v52 = vadd.f32 %v1272_v46, %v1208_v43 }
 0x10d   :  { %v1708_v53 = vadd.f32 %v1275_v51, %v1211_v49 }
 0x10e   :  { %v1212_v54 = vpop.f32.mrb[12].mxu0 }
 0x10f   :  { %v1276_v55 = vpop.f32.mrb[12].mxu1  ;;  %v1213_v56 = vpop.f32.mrb[13].mxu0 }
 0x110   :  { %v1214_v57 = vadd.f32 %v1213_v56, %v1212_v54  ;;  %v1277_v58 = vpop.f32.mrb[13].mxu1  ;;  %v1215_v59 = vpop.f32.mrb[14].mxu0 }
 0x111   :  { %v1278_v60 = vadd.f32 %v1277_v58, %v1276_v55  ;;  %v1279_v61 = vpop.f32.mrb[14].mxu1  ;;  %v1216_v62 = vpop.f32.mrb[15].mxu0 }
 0x112   :  { %v1217_v63 = vadd.f32 %v1216_v62, %v1215_v59  ;;  %v1280_v0 = vpop.f32.mrb[15].mxu1 }
 0x113   :  { %v1281_v1 = vadd.f32 %v1280_v0, %v1279_v61  ;;  %v1710_v2 = vadd.f32 %v1278_v60, %v1214_v57 }
 0x115   :  { %v1712_v3 = vadd.f32 %v1281_v1, %v1217_v63 }
 0x116   :  { %v1218_v4 = vpop.f32.mrb[16].mxu0 }
 0x117   :  { %v1282_v5 = vpop.f32.mrb[16].mxu1  ;;  %v1219_v6 = vpop.f32.mrb[17].mxu0 }
 0x118   :  { %v1220_v7 = vadd.f32 %v1219_v6, %v1218_v4  ;;  %v1283_v8 = vpop.f32.mrb[17].mxu1  ;;  %v1221_v9 = vpop.f32.mrb[18].mxu0 }
 0x119   :  { %v1284_v10 = vadd.f32 %v1283_v8, %v1282_v5  ;;  %v1285_v11 = vpop.f32.mrb[18].mxu1  ;;  %v1222_v12 = vpop.f32.mrb[19].mxu0 }
 0x11a   :  { %v1223_v13 = vadd.f32 %v1222_v12, %v1221_v9  ;;  %v1286_v14 = vpop.f32.mrb[19].mxu1 }
 0x11b   :  { %v1287_v15 = vadd.f32 %v1286_v14, %v1285_v11  ;;  %v739_v16 = vadd.f32 %v1284_v10, %v1220_v7 }
 0x11d   :  { %v742_v17 = vadd.f32 %v1287_v15, %v1223_v13 }
 0x11e   :  { %v1224_v18 = vpop.f32.mrb[20].mxu0 }
 0x11f   :  { %v1288_v19 = vpop.f32.mrb[20].mxu1  ;;  %v1225_v20 = vpop.f32.mrb[21].mxu0 }
 0x120   :  { %v1226_v21 = vadd.f32 %v1225_v20, %v1224_v18  ;;  %v1289_v22 = vpop.f32.mrb[21].mxu1  ;;  %v1227_v23 = vpop.f32.mrb[22].mxu0 }
 0x121   :  { %v1290_v26 = vadd.f32 %v1289_v22, %v1288_v19  ;;  %v1291_v27 = vpop.f32.mrb[22].mxu1  ;;  %v1228_v28 = vpop.f32.mrb[23].mxu0 }
 0x122   :  { %v1229_v29 = vadd.f32 %v1228_v28, %v1227_v23  ;;  %v1292_v30 = vpop.f32.mrb[23].mxu1 }
 0x123   :  { %v1293_v31 = vadd.f32 %v1292_v30, %v1291_v27  ;;  %v747_v32 = vadd.f32 %v1290_v26, %v1226_v21 }
 0x125   :  { %v750_v33 = vadd.f32 %v1293_v31, %v1229_v29 }
 0x126   :  { %v1230_v34 = vpop.f32.mrb[24].mxu0 }
 0x127   :  { %v1294_v35 = vpop.f32.mrb[24].mxu1  ;;  %v1231_v36 = vpop.f32.mrb[25].mxu0 }
 0x128   :  { %v1232_v37 = vadd.f32 %v1231_v36, %v1230_v34  ;;  %v1295_v40 = vpop.f32.mrb[25].mxu1  ;;  %v1233_v41 = vpop.f32.mrb[26].mxu0 }
 0x129   :  { %v1296_v42 = vadd.f32 %v1295_v40, %v1294_v35  ;;  %v1297_v43 = vpop.f32.mrb[26].mxu1  ;;  %v1234_v44 = vpop.f32.mrb[27].mxu0 }
 0x12a   :  { %v1235_v45 = vadd.f32 %v1234_v44, %v1233_v41  ;;  %v1298_v46 = vpop.f32.mrb[27].mxu1 }
 0x12b   :  { %v1299_v47 = vadd.f32 %v1298_v46, %v1297_v43  ;;  %v755_v48 = vadd.f32 %v1296_v42, %v1232_v37 }
 0x12d   :  { %v1714_v49 = vadd.f32 %v1299_v47, %v1235_v45 }
 0x12e   :  { %v1236_v50 = vpop.f32.mrb[28].mxu0 }
 0x12f   :  { %v1300_v51 = vpop.f32.mrb[28].mxu1  ;;  %v1237_v54 = vpop.f32.mrb[29].mxu0 }
 0x130   :  { %v1238_v55 = vadd.f32 %v1237_v54, %v1236_v50  ;;  %v1301_v56 = vpop.f32.mrb[29].mxu1  ;;  %v1239_v57 = vpop.f32.mrb[30].mxu0 }
 0x131   :  { %v1302_v58 = vadd.f32 %v1301_v56, %v1300_v51  ;;  %v1303_v59 = vpop.f32.mrb[30].mxu1  ;;  %v1240_v60 = vpop.f32.mrb[31].mxu0 }
 0x132   :  { %v1241_v61 = vadd.f32 %v1240_v60, %v1239_v57  ;;  %v1304_v62 = vpop.f32.mrb[31].mxu1 }
 0x133   :  { %v1305_v63 = vadd.f32 %v1304_v62, %v1303_v59  ;;  %v763_v0 = vadd.f32 %v1302_v58, %v1238_v55 }
 0x135   :  { %v766_v1 = vadd.f32 %v1305_v63, %v1241_v61 }
 0x136   :  { %v1328_v4 = vpop.f32.mrb[32].mxu0 }
 0x137   :  { %v812_v5 = vadd.f32 %v1328_v4, %v1702_v38  ;;  %v1336_v6 = vpop.f32.mrb[32].mxu1  ;;  %v803_v7 = vpop.f32.mrb[33].mxu0 }
 0x138   :  { %v1717_v8 = vadd.f32 %v1336_v6, %v747_v32  ;;  %v804_v9 = vadd.f32 %v803_v7, %v1698_v24  ;;  %v835_v10 = vpop.f32.mrb[33].mxu1  ;;  %v1329_v11 = vpop.f32.mrb[34].mxu0 }
 0x139   :  { %v1720_v12 = vadd.f32 %v835_v10, %v739_v16  ;;  %v815_v13 = vadd.f32 %v1329_v11, %v1704_v39  ;;  %v1337_v14 = vpop.f32.mrb[34].mxu1  ;;  %v806_v15 = vpop.f32.mrb[35].mxu0  ;;  %v969_v27 = vmul.f32 %v812_v5, %v812_v5 }
 0x13a   :  { %v1723_v18 = vadd.f32 %v1337_v14, %v750_v33  ;;  %v807_v19 = vadd.f32 %v806_v15, %v1700_v25  ;;  %v838_v20 = vpop.f32.mrb[35].mxu1  ;;  %v967_v26 = vmul.f32 %v804_v9, %v804_v9  ;;  %v977_v7 = vmul.f32 %v1717_v8, %v1717_v8 }
 0x13b   :  { %v1139_v38 = vpack.c.bf16 %v815_v13, %v812_v5  ;;  %v839_v21 = vadd.f32 %v838_v20, %v742_v17  ;;  %v970_v37 = vmul.f32 %v815_v13, %v815_v13  ;;  %v975_v63 = vmul.f32 %v1720_v12, %v1720_v12 }
 0x13c   :  { %v1159_v22 = vpack.c.bf16 %v1723_v18, %v1717_v8  ;;  %v1134_v23 = vpack.c.bf16 %v807_v19, %v804_v9  ;;  %v946_v24 = vadd.f32 %v807_v19, %v804_v9  ;;  %v968_v39 = vmul.f32 %v807_v19, %v807_v19 }
 0x13d   :  { %1171 = vst [vmem:[%s1772_s2 + $0x8] sm:$0xff] %v1139_v38   ;;  %v1154_v16 = vpack.c.bf16 %v839_v21, %v1720_v12  ;;  %v976_v4 = vmul.f32 %v839_v21, %v839_v21  ;;  %v978_v11 = vmul.f32 %v1723_v18, %v1723_v18 }
 0x13e   :  { %1175 = vst [vmem:[%s1772_s2 + $0x28] sm:$0xff] %v1159_v22   ;;  %1135 = vst [vmem:[%s1772_s2] sm:$0xff] %v1134_v23   ;;  %v947_v25 = vadd.f32 %v946_v24, %v812_v5  ;;  %v1332_v17 = vpop.f32.mrb[36].mxu0  ;;  %v983_v28 = vadd.f32 %v968_v39, %v967_v26 }
 0x13f   :  { %1174 = vst [vmem:[%s1772_s2 + $0x20] sm:$0xff] %v1154_v16   ;;  %v828_v29 = vadd.f32 %v1332_v17, %v1710_v2  ;;  %v1340_v30 = vpop.f32.mrb[36].mxu1  ;;  %v819_v31 = vpop.f32.mrb[37].mxu0 }
 0x140   :  { %v860_v32 = vadd.f32 %v1340_v30, %v763_v0  ;;  %v820_v33 = vadd.f32 %v819_v31, %v1706_v52  ;;  %v948_v34 = vadd.f32 %v947_v25, %v815_v13  ;;  %v851_v35 = vpop.f32.mrb[37].mxu1  ;;  %v1333_v36 = vpop.f32.mrb[38].mxu0  ;;  %v984_v40 = vadd.f32 %v983_v28, %v969_v27 }
 0x141   :  { %v852_v41 = vadd.f32 %v851_v35, %v755_v48  ;;  %v831_v42 = vadd.f32 %v1333_v36, %v1712_v3  ;;  %v1341_v43 = vpop.f32.mrb[38].mxu1  ;;  %v822_v44 = vpop.f32.mrb[39].mxu0  ;;  %v973_v59 = vmul.f32 %v828_v29, %v828_v29 }
 0x142   :  { %v949_v45 = vadd.f32 %v948_v34, %v820_v33  ;;  %v971_v46 = vmul.f32 %v820_v33, %v820_v33  ;;  %v863_v47 = vadd.f32 %v1341_v43, %v766_v1  ;;  %v854_v50 = vpop.f32.mrb[39].mxu1  ;;  %v985_v2 = vadd.f32 %v984_v40, %v970_v37 }
 0x143   :  { %v1149_v51 = vpack.c.bf16 %v831_v42, %v828_v29  ;;  %v823_v55 = vadd.f32 %v822_v44, %v1708_v53  ;;  %v855_v52 = vadd.f32 %v854_v50, %v1714_v49  ;;  %v974_v60 = vmul.f32 %v831_v42, %v831_v42 }
 0x144   :  { %v1169_v54 = vpack.c.bf16 %v863_v47, %v860_v32  ;;  %v986_v56 = vadd.f32 %v985_v2, %v971_v46  ;;  %v979_v15 = vmul.f32 %v852_v41, %v852_v41  ;;  %v981_v23 = vmul.f32 %v860_v32, %v860_v32 }
 0x145   :  { %1173 = vst [vmem:[%s1772_s2 + $0x18] sm:$0xff] %v1149_v51   ;;  %v1144_v3 = vpack.c.bf16 %v823_v55, %v820_v33  ;;  %v950_v48 = vadd.f32 %v949_v45, %v823_v55  ;;  %v972_v57 = vmul.f32 %v823_v55, %v823_v55  ;;  %v1164_v58 = vpack.c.bf16 %v855_v52, %v852_v41 }
 0x146   :  { %1177 = vst [vmem:[%s1772_s2 + $0x38] sm:$0xff] %v1169_v54   ;;  %v980_v38 = vmul.f32 %v855_v52, %v855_v52  ;;  %v982_v26 = vmul.f32 %v863_v47, %v863_v47 }
 0x147   :  { %1172 = vst [vmem:[%s1772_s2 + $0x10] sm:$0xff] %v1144_v3   ;;  %v951_v53 = vadd.f32 %v950_v48, %v828_v29  ;;  %v987_v49 = vadd.f32 %v986_v56, %v972_v57  ;;  %1176 = vst [vmem:[%s1772_s2 + $0x30] sm:$0xff] %v1164_v58  }
 0x149   :  { %v952_v61 = vadd.f32 %v951_v53, %v831_v42  ;;  %v988_v62 = vadd.f32 %v987_v49, %v973_v59 }
 0x14b   :  { %v953_v0 = vadd.f32 %v952_v61, %v1720_v12  ;;  %v989_v1 = vadd.f32 %v988_v62, %v974_v60 }
 0x14d   :  { %v990_v5 = vadd.f32 %v989_v1, %v975_v63  ;;  %v954_v6 = vadd.f32 %v953_v0, %v839_v21 }
 0x14f   :  { %v955_v9 = vadd.f32 %v954_v6, %v1717_v8  ;;  %v991_v10 = vadd.f32 %v990_v5, %v976_v4 }
 0x151   :  { %v956_v13 = vadd.f32 %v955_v9, %v1723_v18  ;;  %v992_v14 = vadd.f32 %v991_v10, %v977_v7 }
 0x153   :  { %v957_v19 = vadd.f32 %v956_v13, %v852_v41  ;;  %v993_v20 = vadd.f32 %v992_v14, %v978_v11 }
 0x155   :  { %v958_v12 = vadd.f32 %v957_v19, %v855_v52  ;;  %v994_v22 = vadd.f32 %v993_v20, %v979_v15 }
 0x157   :  { %v959_v21 = vadd.f32 %v958_v12, %v860_v32  ;;  %v995_v24 = vadd.f32 %v994_v22, %v980_v38 }
 0x159   :  { %v960_v39 = vadd.f32 %v959_v21, %v863_v47  ;;  %v996_v16 = vadd.f32 %v995_v24, %v981_v23 }
 0x15b   :  { %v961_v8 = vrot.slane %v960_v39, 4  ;;  %v997_v25 = vadd.f32 %v996_v16, %v982_v26 }
 0x15d   :  { %v962_v17 = vadd.f32 %v961_v8, %v960_v39  ;;  %v998_v27 = vrot.slane %v997_v25, 4 }
 0x15f   :  { %v963_v28 = vrot.slane %v962_v17, 2  ;;  %v999_v29 = vadd.f32 %v998_v27, %v997_v25 }
 0x161   :  { %v964_v18 = vadd.f32 %v963_v28, %v962_v17  ;;  %v1000_v30 = vrot.slane %v999_v29, 2 }
 0x163   :  { %v965_v31 = vrot.slane %v964_v18, 1  ;;  %v1001_v33 = vadd.f32 %v1000_v30, %v999_v29 }
 0x165   :  { %v1002_v34 = vrot.slane %v1001_v33, 1  ;;  %v966_v35 = vadd.f32 %v965_v31, %v964_v18 }
 0x167   :  { %v1003_v36 = vadd.f32 %v1002_v34, %v1001_v33 }
 0x169   :  { %v1005_v37 = vsel %vm1004_vm1, %v966_v35, %v1003_v36 }
 0x16a   :  { %1006 = vst [vmem:[%s1773_s3] sm:$0x3] %v1005_v37 }

// kernel: encoder_forward.13
= control target key start
LH: loop header
LB: loop body
LE: loop exit
PB: predicated region body
PF: predicated region fallthrough
CT: control target
= control target key end

     0   :  { %s422_s0 = inlined_call_operand.vmem [shape: bf16[128,128], index: 0, kind: input, shape index: {}]   ;;  %s423_s1 = inlined_call_operand.vmem [shape: f32[1,128], index: 1, kind: input, shape index: {}]   ;;  %s424_s2 = inlined_call_operand.vmem [shape: f32[1,128], index: 2, kind: input, shape index: {}]   ;;  %s425_s3 = inlined_call_operand.vmem [shape: bf16[128,128], index: 3, kind: output, shape index: {}]  }
   0x1   :  { %v227_v0 = vld [vmem:[%s422_s0] sm:$0xff]   ;;  %v298_v4 = vld [vmem:[%s422_s0 + $0x8] sm:$0xff]   ;;  %v299_v5 = vld [vmem:[%s422_s0 + $0x10] sm:$0xff]  }
   0x2   :  { %v338_v1 = vld [vmem:[%s423_s1] ss:$0 sm:$0xff]  ;;  %v228_v2 = vunpack.c.l.bf16 %v227_v0  ;;  %v229_v3 = vunpack.c.h.bf16 %v227_v0  ;;  %v300_v6 = vld [vmem:[%s422_s0 + $0x18] sm:$0xff]   ;;  %v232_v8 = vunpack.c.l.bf16 %v298_v4  ;;  %v233_v9 = vunpack.c.h.bf16 %v298_v4  ;;  %v302_v33 = vld [vmem:[%s422_s0 + $0x28] sm:$0xff]  }
   0x3   :  { %v352_v7 = vld [vmem:[%s424_s2] ss:$0 sm:$0xff]  ;;  %v236_v10 = vunpack.c.l.bf16 %v299_v5  ;;  %v237_v11 = vunpack.c.h.bf16 %v299_v5  ;;  %v240_v14 = vunpack.c.l.bf16 %v300_v6  ;;  %v241_v15 = vunpack.c.h.bf16 %v300_v6  ;;  %v303_v38 = vld [vmem:[%s422_s0 + $0x30] sm:$0xff]   ;;  %v304_v43 = vld [vmem:[%s422_s0 + $0x38] sm:$0xff]  }
   0x4   :  { %v53_v12 = vmul.f32 %v228_v2, %v338_v1  ;;  %v54_v13 = vmul.f32 %v229_v3, %v338_v1  ;;  %v55_v16 = vmul.f32 %v232_v8, %v338_v1  ;;  %v56_v17 = vmul.f32 %v233_v9, %v338_v1  ;;  %v301_v28 = vld [vmem:[%s422_s0 + $0x20] sm:$0xff]  }
   0x5   :  { %v57_v18 = vmul.f32 %v236_v10, %v338_v1  ;;  %v58_v19 = vmul.f32 %v237_v11, %v338_v1  ;;  %v59_v22 = vmul.f32 %v240_v14, %v338_v1  ;;  %v60_v23 = vmul.f32 %v241_v15, %v338_v1 }
   0x6   :  { %v76_v20 = vadd.f32 %v352_v7, %v53_v12  ;;  %v77_v21 = vadd.f32 %v352_v7, %v54_v13  ;;  %v78_v24 = vadd.f32 %v352_v7, %v55_v16  ;;  %v79_v25 = vadd.f32 %v352_v7, %v56_v17 }
   0x7   :  { %v80_v26 = vadd.f32 %v352_v7, %v57_v18  ;;  %v81_v27 = vadd.f32 %v352_v7, %v58_v19  ;;  %v82_v31 = vadd.f32 %v352_v7, %v59_v22  ;;  %v83_v32 = vadd.f32 %v352_v7, %v60_v23 }
   0x8   :  { %v92_v29 = vmax.f32 %v76_v20, 0.0  ;;  %v93_v30 = vmax.f32 %v77_v21, 0.0  ;;  %v94_v34 = vmax.f32 %v78_v24, 0.0  ;;  %v95_v35 = vmax.f32 %v79_v25, 0.0 }
   0x9   :  { %v96_v36 = vmax.f32 %v80_v26, 0.0  ;;  %v97_v37 = vmax.f32 %v81_v27, 0.0  ;;  %v98_v40 = vmax.f32 %v82_v31, 0.0  ;;  %v99_v41 = vmax.f32 %v83_v32, 0.0 }
   0xa   :  { %v261_v39 = vpack.c.bf16 %v93_v30, %v92_v29  ;;  %v244_v42 = vunpack.c.l.bf16 %v301_v28  ;;  %v266_v44 = vpack.c.bf16 %v95_v35, %v94_v34  ;;  %v245_v46 = vunpack.c.h.bf16 %v301_v28 }
   0xb   :  { %v271_v45 = vpack.c.bf16 %v97_v37, %v96_v36  ;;  %v248_v47 = vunpack.c.l.bf16 %v302_v33  ;;  %v276_v48 = vpack.c.bf16 %v99_v41, %v98_v40  ;;  %v249_v50 = vunpack.c.h.bf16 %v302_v33 }
   0xc   :  { %262 = vst [vmem:[%s425_s3] sm:$0xff] %v261_v39   ;;  %v61_v49 = vmul.f32 %v244_v42, %v338_v1  ;;  %v252_v51 = vunpack.c.l.bf16 %v303_v38  ;;  %305 = vst [vmem:[%s425_s3 + $0x8] sm:$0xff] %v266_v44   ;;  %v62_v52 = vmul.f32 %v245_v46, %v338_v1  ;;  %v253_v54 = vunpack.c.h.bf16 %v303_v38 }
   0xd   :  { %306 = vst [vmem:[%s425_s3 + $0x10] sm:$0xff] %v271_v45   ;;  %v63_v53 = vmul.f32 %v248_v47, %v338_v1  ;;  %v256_v55 = vunpack.c.l.bf16 %v304_v43  ;;  %307 = vst [vmem:[%s425_s3 + $0x18] sm:$0xff] %v276_v48   ;;  %v64_v57 = vmul.f32 %v249_v50, %v338_v1  ;;  %v257_v59 = vunpack.c.h.bf16 %v304_v43 }
   0xe   :  { %v84_v56 = vadd.f32 %v352_v7, %v61_v49  ;;  %v65_v58 = vmul.f32 %v252_v51, %v338_v1  ;;  %v85_v60 = vadd.f32 %v352_v7, %v62_v52  ;;  %v66_v62 = vmul.f32 %v253_v54, %v338_v1 }
   0xf   :  { %v86_v61 = vadd.f32 %v352_v7, %v63_v53  ;;  %v67_v63 = vmul.f32 %v256_v55, %v338_v1  ;;  %v87_v2 = vadd.f32 %v352_v7, %v64_v57  ;;  %v68_v4 = vmul.f32 %v257_v59, %v338_v1 }
  0x10   :  { %v100_v0 = vmax.f32 %v84_v56, 0.0  ;;  %v88_v3 = vadd.f32 %v352_v7, %v65_v58  ;;  %v101_v5 = vmax.f32 %v85_v60, 0.0  ;;  %v89_v8 = vadd.f32 %v352_v7, %v66_v62 }
  0x11   :  { %v102_v6 = vmax.f32 %v86_v61, 0.0  ;;  %v90_v9 = vadd.f32 %v352_v7, %v67_v63  ;;  %v103_v10 = vmax.f32 %v87_v2, 0.0  ;;  %v91_v12 = vadd.f32 %v352_v7, %v68_v4 }
  0x12   :  { %v104_v11 = vmax.f32 %v88_v3, 0.0  ;;  %v281_v13 = vpack.c.bf16 %v101_v5, %v100_v0  ;;  %v105_v14 = vmax.f32 %v89_v8, 0.0 }
  0x13   :  { %v106_v15 = vmax.f32 %v90_v9, 0.0  ;;  %v286_v16 = vpack.c.bf16 %v103_v10, %v102_v6  ;;  %v107_v17 = vmax.f32 %v91_v12, 0.0 }
  0x14   :  { %308 = vst [vmem:[%s425_s3 + $0x20] sm:$0xff] %v281_v13   ;;  %v291_v1 = vpack.c.bf16 %v105_v14, %v104_v11 }
  0x15   :  { %309 = vst [vmem:[%s425_s3 + $0x28] sm:$0xff] %v286_v16   ;;  %v296_v18 = vpack.c.bf16 %v107_v17, %v106_v15 }
  0x16   :  { %310 = vst [vmem:[%s425_s3 + $0x30] sm:$0xff] %v291_v1  }
  0x17   :  { %311 = vst [vmem:[%s425_s3 + $0x38] sm:$0xff] %v296_v18  }

// kernel: encoder_forward.14
= control target key start
LH: loop header
LB: loop body
LE: loop exit
PB: predicated region body
PF: predicated region fallthrough
CT: control target
= control target key end

     0   :  { %vm1327_vm0 = vcmask 1040384   ;;  %s2334_s1 = inlined_call_operand.vmem [shape: bf16[1152,256], index: 1, kind: input, shape index: {}]   ;;  %s2335_s0 = inlined_call_operand.vmem [shape: bf16[32,1152], index: 0, kind: input, shape index: {}]   ;;  %s2336_s2 = inlined_call_operand.vmem [shape: bf16[32,256], index: 2, kind: output, shape index: {0}]   ;;  %s2337_s3 = inlined_call_operand.vmem [shape: f32[1,2,256], index: 3, kind: output, shape index: {1}]  }
   0x1   :  { %v1570_v0 = vld [vmem:[%s2334_s1 + $0x4] ss:$8 sps:$4 sm:$0xff]   ;;  %v1574_v2 = vld [vmem:[%s2334_s1] ss:$8 sps:$4 sm:$0xff]   ;;  %v1576_v4 = vld [vmem:[%s2334_s1 + $0x14] ss:$8 sps:$4 sm:$0xff]  }
   0x2   :  { %v1572_v1 = vld [vmem:[%s2334_s1 + $0x204] ss:$8 sps:$4 sm:$0xff]   ;;  %990 = vmatprep.subr.bf16.mxu1 %v1570_v0  ;;  %v1575_v3 = vld [vmem:[%s2334_s1 + $0x200] ss:$8 sps:$4 sm:$0xff]   ;;  %v1578_v5 = vld [vmem:[%s2334_s1 + $0x214] ss:$8 sps:$4 sm:$0xff]  }
   0x3   :  { %1096 = vmatprep.subr.bf16.mxu0 %v1572_v1  ;;  %991 = vmatpush1.bf16.msra.mxu1 %v1574_v2  ;;  %v1580_v6 = vld [vmem:[%s2334_s1 + $0x10] ss:$8 sps:$4 sm:$0xff]   ;;  %v1582_v8 = vld [vmem:[%s2334_s1 + $0x24] ss:$8 sps:$4 sm:$0xff]   ;;  %v1586_v10 = vld [vmem:[%s2334_s1 + $0x20] ss:$8 sps:$4 sm:$0xff]  }
   0x4   :  { %1097 = vmatpush1.bf16.msra.mxu0 %v1575_v3  ;;  %992 = vmatprep.subr.bf16.mxu1 %v1576_v4  ;;  %v1581_v7 = vld [vmem:[%s2334_s1 + $0x210] ss:$8 sps:$4 sm:$0xff]   ;;  %v1584_v9 = vld [vmem:[%s2334_s1 + $0x224] ss:$8 sps:$4 sm:$0xff]   ;;  %v1587_v11 = vld [vmem:[%s2334_s1 + $0x220] ss:$8 sps:$4 sm:$0xff]  }
   0x5   :  { %1098 = vmatprep.subr.bf16.mxu0 %v1578_v5  ;;  %v1588_v12 = vld [vmem:[%s2334_s1 + $0x34] ss:$8 sps:$4 sm:$0xff]   ;;  %v1592_v14 = vld [vmem:[%s2334_s1 + $0x30] ss:$8 sps:$4 sm:$0xff]   ;;  %v1594_v16 = vld [vmem:[%s2334_s1 + $0x44] ss:$8 sps:$4 sm:$0xff]  }
   0x6   :  { %v1590_v13 = vld [vmem:[%s2334_s1 + $0x234] ss:$8 sps:$4 sm:$0xff]   ;;  %v1593_v15 = vld [vmem:[%s2334_s1 + $0x230] ss:$8 sps:$4 sm:$0xff]   ;;  %v1596_v17 = vld [vmem:[%s2334_s1 + $0x244] ss:$8 sps:$4 sm:$0xff]  }
   0x7   :  { %993 = vmatpush1.bf16.msra.mxu1 %v1580_v6  ;;  %v1598_v18 = vld [vmem:[%s2334_s1 + $0x40] ss:$8 sps:$4 sm:$0xff]   ;;  %v1600_v20 = vld [vmem:[%s2334_s1 + $0x54] ss:$8 sps:$4 sm:$0xff]   ;;  %v1604_v22 = vld [vmem:[%s2334_s1 + $0x50] ss:$8 sps:$4 sm:$0xff]  }
   0x8   :  { %1099 = vmatpush1.bf16.msra.mxu0 %v1581_v7  ;;  %994 = vmatprep.subr.bf16.mxu1 %v1582_v8  ;;  %v1599_v19 = vld [vmem:[%s2334_s1 + $0x240] ss:$8 sps:$4 sm:$0xff]   ;;  %v1602_v21 = vld [vmem:[%s2334_s1 + $0x254] ss:$8 sps:$4 sm:$0xff]   ;;  %v1605_v23 = vld [vmem:[%s2334_s1 + $0x250] ss:$8 sps:$4 sm:$0xff]  }
   0x9   :  { %1100 = vmatprep.subr.bf16.mxu0 %v1584_v9  ;;  %v1606_v24 = vld [vmem:[%s2334_s1 + $0x64] ss:$8 sps:$4 sm:$0xff]   ;;  %v1610_v26 = vld [vmem:[%s2334_s1 + $0x60] ss:$8 sps:$4 sm:$0xff]   ;;  %v1612_v28 = vld [vmem:[%s2334_s1 + $0x74] ss:$8 sps:$4 sm:$0xff]  }
   0xa   :  { %v1608_v25 = vld [vmem:[%s2334_s1 + $0x264] ss:$8 sps:$4 sm:$0xff]   ;;  %v1611_v27 = vld [vmem:[%s2334_s1 + $0x260] ss:$8 sps:$4 sm:$0xff]   ;;  %v1614_v29 = vld [vmem:[%s2334_s1 + $0x274] ss:$8 sps:$4 sm:$0xff]  }
   0xb   :  { %995 = vmatpush1.bf16.msra.mxu1 %v1586_v10  ;;  %v1616_v30 = vld [vmem:[%s2334_s1 + $0x70] ss:$8 sps:$4 sm:$0xff]   ;;  %v1618_v32 = vld [vmem:[%s2334_s1 + $0x84] ss:$8 sps:$4 sm:$0xff]   ;;  %v1622_v34 = vld [vmem:[%s2334_s1 + $0x80] ss:$8 sps:$4 sm:$0xff]  }
   0xc   :  { %1101 = vmatpush1.bf16.msra.mxu0 %v1587_v11  ;;  %996 = vmatprep.subr.bf16.mxu1 %v1588_v12  ;;  %v1617_v31 = vld [vmem:[%s2334_s1 + $0x270] ss:$8 sps:$4 sm:$0xff]   ;;  %v1620_v33 = vld [vmem:[%s2334_s1 + $0x284] ss:$8 sps:$4 sm:$0xff]   ;;  %v1623_v35 = vld [vmem:[%s2334_s1 + $0x280] ss:$8 sps:$4 sm:$0xff]  }
   0xd   :  { %1102 = vmatprep.subr.bf16.mxu0 %v1590_v13  ;;  %v1624_v36 = vld [vmem:[%s2334_s1 + $0x94] ss:$8 sps:$4 sm:$0xff]   ;;  %v1628_v38 = vld [vmem:[%s2334_s1 + $0x90] ss:$8 sps:$4 sm:$0xff]   ;;  %v1630_v40 = vld [vmem:[%s2334_s1 + $0xa4] ss:$8 sps:$4 sm:$0xff]  }
   0xe   :  { %v1626_v37 = vld [vmem:[%s2334_s1 + $0x294] ss:$8 sps:$4 sm:$0xff]   ;;  %v1629_v39 = vld [vmem:[%s2334_s1 + $0x290] ss:$8 sps:$4 sm:$0xff]   ;;  %v1632_v41 = vld [vmem:[%s2334_s1 + $0x2a4] ss:$8 sps:$4 sm:$0xff]  }
   0xf   :  { %997 = vmatpush1.bf16.msra.mxu1 %v1592_v14  ;;  %v1634_v42 = vld [vmem:[%s2334_s1 + $0xa0] ss:$8 sps:$4 sm:$0xff]   ;;  %v1636_v44 = vld [vmem:[%s2334_s1 + $0xb4] ss:$8 sps:$4 sm:$0xff]   ;;  %v1640_v46 = vld [vmem:[%s2334_s1 + $0xb0] ss:$8 sps:$4 sm:$0xff]  }
  0x10   :  { %1103 = vmatpush1.bf16.msra.mxu0 %v1593_v15  ;;  %998 = vmatprep.subr.bf16.mxu1 %v1594_v16  ;;  %v1635_v43 = vld [vmem:[%s2334_s1 + $0x2a0] ss:$8 sps:$4 sm:$0xff]   ;;  %v1638_v45 = vld [vmem:[%s2334_s1 + $0x2b4] ss:$8 sps:$4 sm:$0xff]   ;;  %v1641_v47 = vld [vmem:[%s2334_s1 + $0x2b0] ss:$8 sps:$4 sm:$0xff]  }
  0x11   :  { %1104 = vmatprep.subr.bf16.mxu0 %v1596_v17  ;;  %v1668_v48 = vld [vmem:[%s2335_s0 + $0x4] ss:$36 sps:$4 sm:$0xff]   ;;  %v1674_v51 = vld [vmem:[%s2335_s0 + $0x14] ss:$36 sps:$4 sm:$0xff]  }
  0x12   :  { %v1642_v49 = vld [vmem:[%s2334_s1 + $0xc4] ss:$8 sps:$4 sm:$0xff]   ;;  %1022 = vmatprep.mubr.bf16.mxu1 %v1668_v48  ;;  %v1646_v52 = vld [vmem:[%s2334_s1 + $0xc0] ss:$8 sps:$4 sm:$0xff]   ;;  %v1648_v54 = vld [vmem:[%s2334_s1 + $0xd4] ss:$8 sps:$4 sm:$0xff]   ;;  %1128 = vmatprep.mubr.bf16.mxu0 %v1674_v51 }
  0x13   :  { %999 = vmatpush1.bf16.msra.mxu1 %v1598_v18  ;;  %v1644_v50 = vld [vmem:[%s2334_s1 + $0x2c4] ss:$8 sps:$4 sm:$0xff]   ;;  %v1647_v53 = vld [vmem:[%s2334_s1 + $0x2c0] ss:$8 sps:$4 sm:$0xff]   ;;  %v1650_v55 = vld [vmem:[%s2334_s1 + $0x2d4] ss:$8 sps:$4 sm:$0xff]  }
  0x14   :  { %1105 = vmatpush1.bf16.msra.mxu0 %v1599_v19  ;;  %1000 = vmatprep.subr.bf16.mxu1 %v1600_v20  ;;  %v1652_v56 = vld [vmem:[%s2334_s1 + $0xd0] ss:$8 sps:$4 sm:$0xff]   ;;  %v1654_v58 = vld [vmem:[%s2334_s1 + $0xe4] ss:$8 sps:$4 sm:$0xff]   ;;  %v1658_v60 = vld [vmem:[%s2334_s1 + $0xe0] ss:$8 sps:$4 sm:$0xff]  }
  0x15   :  { %1106 = vmatprep.subr.bf16.mxu0 %v1602_v21  ;;  %v1653_v57 = vld [vmem:[%s2334_s1 + $0x2d0] ss:$8 sps:$4 sm:$0xff]   ;;  %v1656_v59 = vld [vmem:[%s2334_s1 + $0x2e4] ss:$8 sps:$4 sm:$0xff]   ;;  %v1659_v61 = vld [vmem:[%s2334_s1 + $0x2e0] ss:$8 sps:$4 sm:$0xff]  }
  0x16   :  { %v1660_v62 = vld [vmem:[%s2334_s1 + $0xf4] ss:$8 sps:$4 sm:$0xff]   ;;  %v1664_v0 = vld [vmem:[%s2334_s1 + $0xf0] ss:$8 sps:$4 sm:$0xff]   ;;  %v1671_v2 = vld [vmem:[%s2334_s1 + $0x104] ss:$8 sps:$4 sm:$0xff]  }
  0x17   :  { %1001 = vmatpush1.bf16.msra.mxu1 %v1604_v22  ;;  %v1662_v63 = vld [vmem:[%s2334_s1 + $0x2f4] ss:$8 sps:$4 sm:$0xff]   ;;  %v1665_v1 = vld [vmem:[%s2334_s1 + $0x2f0] ss:$8 sps:$4 sm:$0xff]   ;;  %v1677_v3 = vld [vmem:[%s2334_s1 + $0x304] ss:$8 sps:$4 sm:$0xff]  }
  0x18   :  { %1107 = vmatpush1.bf16.msra.mxu0 %v1605_v23  ;;  %1002 = vmatprep.subr.bf16.mxu1 %v1606_v24  ;;  %v1666_v4 = vld [vmem:[%s2335_s0] ss:$36 sps:$4 sm:$0xff]   ;;  %v1672_v6 = vld [vmem:[%s2335_s0 + $0x10] ss:$36 sps:$4 sm:$0xff]  }
  0x19   :  { %1108 = vmatprep.subr.bf16.mxu0 %v1608_v25  ;;  %v1669_v5 = vld [vmem:[%s2334_s1 + $0x100] ss:$8 sps:$4 sm:$0xff]   ;;  %v1680_v8 = vld [vmem:[%s2334_s1 + $0x114] ss:$8 sps:$4 sm:$0xff]   ;;  %v1678_v10 = vld [vmem:[%s2334_s1 + $0x110] ss:$8 sps:$4 sm:$0xff]  }
  0x1a   :  { %v1675_v7 = vld [vmem:[%s2334_s1 + $0x300] ss:$8 sps:$4 sm:$0xff]   ;;  %v1683_v9 = vld [vmem:[%s2334_s1 + $0x314] ss:$8 sps:$4 sm:$0xff]   ;;  %v1681_v11 = vld [vmem:[%s2334_s1 + $0x310] ss:$8 sps:$4 sm:$0xff]  }
  0x1b   :  { %1003 = vmatpush1.bf16.msra.mxu1 %v1610_v26  ;;  %v1686_v12 = vld [vmem:[%s2334_s1 + $0x124] ss:$8 sps:$4 sm:$0xff]   ;;  %v1684_v14 = vld [vmem:[%s2334_s1 + $0x120] ss:$8 sps:$4 sm:$0xff]   ;;  %v1692_v16 = vld [vmem:[%s2334_s1 + $0x134] ss:$8 sps:$4 sm:$0xff]  }
  0x1c   :  { %1109 = vmatpush1.bf16.msra.mxu0 %v1611_v27  ;;  %1004 = vmatprep.subr.bf16.mxu1 %v1612_v28  ;;  %v1689_v13 = vld [vmem:[%s2334_s1 + $0x324] ss:$8 sps:$4 sm:$0xff]   ;;  %v1687_v15 = vld [vmem:[%s2334_s1 + $0x320] ss:$8 sps:$4 sm:$0xff]   ;;  %v1695_v17 = vld [vmem:[%s2334_s1 + $0x334] ss:$8 sps:$4 sm:$0xff]  }
  0x1d   :  { %1110 = vmatprep.subr.bf16.mxu0 %v1614_v29  ;;  %v1690_v18 = vld [vmem:[%s2334_s1 + $0x130] ss:$8 sps:$4 sm:$0xff]   ;;  %v1698_v20 = vld [vmem:[%s2334_s1 + $0x144] ss:$8 sps:$4 sm:$0xff]   ;;  %v1696_v22 = vld [vmem:[%s2334_s1 + $0x140] ss:$8 sps:$4 sm:$0xff]  }
  0x1e   :  { %v1693_v19 = vld [vmem:[%s2334_s1 + $0x330] ss:$8 sps:$4 sm:$0xff]   ;;  %v1701_v21 = vld [vmem:[%s2334_s1 + $0x344] ss:$8 sps:$4 sm:$0xff]   ;;  %v1699_v23 = vld [vmem:[%s2334_s1 + $0x340] ss:$8 sps:$4 sm:$0xff]  }
  0x1f   :  { %1005 = vmatpush1.bf16.msra.mxu1 %v1616_v30  ;;  %v1704_v24 = vld [vmem:[%s2334_s1 + $0x154] ss:$8 sps:$4 sm:$0xff]   ;;  %v1702_v26 = vld [vmem:[%s2334_s1 + $0x150] ss:$8 sps:$4 sm:$0xff]   ;;  %v1710_v28 = vld [vmem:[%s2334_s1 + $0x164] ss:$8 sps:$4 sm:$0xff]  }
  0x20   :  { %1111 = vmatpush1.bf16.msra.mxu0 %v1617_v31  ;;  %1006 = vmatprep.subr.bf16.mxu1 %v1618_v32  ;;  %v1707_v25 = vld [vmem:[%s2334_s1 + $0x354] ss:$8 sps:$4 sm:$0xff]   ;;  %v1705_v27 = vld [vmem:[%s2334_s1 + $0x350] ss:$8 sps:$4 sm:$0xff]   ;;  %v1760_v31 = vld [vmem:[%s2335_s0 + $0x48] ss:$36 sps:$4 sm:$0xff]  }
  0x21   :  { %1112 = vmatprep.subr.bf16.mxu0 %v1620_v33  ;;  %v1756_v29 = vld [vmem:[%s2335_s0 + $0x4c] ss:$36 sps:$4 sm:$0xff]   ;;  %v1758_v30 = vld [vmem:[%s2335_s0 + $0x5c] ss:$36 sps:$4 sm:$0xff]  }
  0x22   :  { %v1713_v32 = vld [vmem:[%s2334_s1 + $0x364] ss:$8 sps:$4 sm:$0xff]   ;;  %v1764_v33 = vld [vmem:[%s2335_s0 + $0x58] ss:$36 sps:$4 sm:$0xff]  }
  0x23   :  { %1007 = vmatpush1.bf16.msra.mxu1 %v1622_v34  ;;  %v1708_v34 = vld [vmem:[%s2334_s1 + $0x160] ss:$8 sps:$4 sm:$0xff]   ;;  %v1726_v48 = vld [vmem:[%s2334_s1 + $0x190] ss:$8 sps:$4 sm:$0xff]   ;;  %v1737_v51 = vld [vmem:[%s2334_s1 + $0x3a4] ss:$8 sps:$4 sm:$0xff]  }
  0x24   :  { %1113 = vmatpush1.bf16.msra.mxu0 %v1623_v35  ;;  %1008 = vmatprep.subr.bf16.mxu1 %v1624_v36  ;;  %v1711_v35 = vld [vmem:[%s2334_s1 + $0x360] ss:$8 sps:$4 sm:$0xff]   ;;  %v1716_v36 = vld [vmem:[%s2334_s1 + $0x174] ss:$8 sps:$4 sm:$0xff]  }
  0x25   :  { %1114 = vmatprep.subr.bf16.mxu0 %v1626_v37  ;;  %v1719_v37 = vld [vmem:[%s2334_s1 + $0x374] ss:$8 sps:$4 sm:$0xff]  }
  0x27   :  { %1009 = vmatpush1.bf16.msra.mxu1 %v1628_v38  ;;  %v1714_v38 = vld [vmem:[%s2334_s1 + $0x170] ss:$8 sps:$4 sm:$0xff]  }
  0x28   :  { %1115 = vmatpush1.bf16.msra.mxu0 %v1629_v39  ;;  %1010 = vmatprep.subr.bf16.mxu1 %v1630_v40  ;;  %v1717_v39 = vld [vmem:[%s2334_s1 + $0x370] ss:$8 sps:$4 sm:$0xff]   ;;  %v1722_v40 = vld [vmem:[%s2334_s1 + $0x184] ss:$8 sps:$4 sm:$0xff]  }
  0x29   :  { %1116 = vmatprep.subr.bf16.mxu0 %v1632_v41  ;;  %v1776_v41 = vld [vmem:[%s2335_s0 + $0xc] ss:$36 sps:$4 sm:$0xff]  }
  0x2b   :  { %1011 = vmatpush1.bf16.msra.mxu1 %v1634_v42  ;;  %v1725_v42 = vld [vmem:[%s2334_s1 + $0x384] ss:$8 sps:$4 sm:$0xff]  }
  0x2c   :  { %1117 = vmatpush1.bf16.msra.mxu0 %v1635_v43  ;;  %1012 = vmatprep.subr.bf16.mxu1 %v1636_v44  ;;  %v1779_v43 = vld [vmem:[%s2335_s0 + $0x1c] ss:$36 sps:$4 sm:$0xff]  }
  0x2d   :  { %1118 = vmatprep.subr.bf16.mxu0 %v1638_v45  ;;  %v1720_v44 = vld [vmem:[%s2334_s1 + $0x180] ss:$8 sps:$4 sm:$0xff]  }
  0x2e   :  { %v1723_v45 = vld [vmem:[%s2334_s1 + $0x380] ss:$8 sps:$4 sm:$0xff]  }
  0x2f   :  { %1013 = vmatpush1.bf16.msra.mxu1 %v1640_v46  ;;  %v1728_v46 = vld [vmem:[%s2334_s1 + $0x194] ss:$8 sps:$4 sm:$0xff]  }
  0x30   :  { %1119 = vmatpush1.bf16.msra.mxu0 %v1641_v47  ;;  %1014 = vmatprep.subr.bf16.mxu1 %v1642_v49  ;;  %v1731_v47 = vld [vmem:[%s2334_s1 + $0x394] ss:$8 sps:$4 sm:$0xff]   ;;  %v1729_v49 = vld [vmem:[%s2334_s1 + $0x390] ss:$8 sps:$4 sm:$0xff]  }
  0x31   :  { %1120 = vmatprep.subr.bf16.mxu0 %v1644_v50  ;;  %v1734_v50 = vld [vmem:[%s2334_s1 + $0x1a4] ss:$8 sps:$4 sm:$0xff]  }
  0x33   :  { %1015 = vmatpush1.bf16.msra.mxu1 %v1646_v52  ;;  %v1732_v52 = vld [vmem:[%s2334_s1 + $0x1a0] ss:$8 sps:$4 sm:$0xff]  }
  0x34   :  { %1121 = vmatpush1.bf16.msra.mxu0 %v1647_v53  ;;  %1016 = vmatprep.subr.bf16.mxu1 %v1648_v54  ;;  %v1735_v53 = vld [vmem:[%s2334_s1 + $0x3a0] ss:$8 sps:$4 sm:$0xff]   ;;  %v1740_v54 = vld [vmem:[%s2334_s1 + $0x1b4] ss:$8 sps:$4 sm:$0xff]  }
  0x35   :  { %1122 = vmatprep.subr.bf16.mxu0 %v1650_v55  ;;  %v1743_v55 = vld [vmem:[%s2334_s1 + $0x3b4] ss:$8 sps:$4 sm:$0xff]  }
  0x37   :  { %1017 = vmatpush1.bf16.msra.mxu1 %v1652_v56  ;;  %v1738_v56 = vld [vmem:[%s2334_s1 + $0x1b0] ss:$8 sps:$4 sm:$0xff]  }
  0x38   :  { %1123 = vmatpush1.bf16.msra.mxu0 %v1653_v57  ;;  %1018 = vmatprep.subr.bf16.mxu1 %v1654_v58  ;;  %v1741_v57 = vld [vmem:[%s2334_s1 + $0x3b0] ss:$8 sps:$4 sm:$0xff]   ;;  %v1746_v58 = vld [vmem:[%s2334_s1 + $0x1c4] ss:$8 sps:$4 sm:$0xff]  }
  0x39   :  { %1124 = vmatprep.subr.bf16.mxu0 %v1656_v59  ;;  %v1749_v59 = vld [vmem:[%s2334_s1 + $0x3c4] ss:$8 sps:$4 sm:$0xff]  }
  0x3b   :  { %1019 = vmatpush1.bf16.msra.mxu1 %v1658_v60  ;;  %v1744_v60 = vld [vmem:[%s2334_s1 + $0x1c0] ss:$8 sps:$4 sm:$0xff]  }
  0x3c   :  { %1125 = vmatpush1.bf16.msra.mxu0 %v1659_v61  ;;  %1020 = vmatprep.subr.bf16.mxu1 %v1660_v62  ;;  %v1747_v61 = vld [vmem:[%s2334_s1 + $0x3c0] ss:$8 sps:$4 sm:$0xff]   ;;  %v1752_v62 = vld [vmem:[%s2334_s1 + $0x1d4] ss:$8 sps:$4 sm:$0xff]  }
  0x3d   :  { %1126 = vmatprep.subr.bf16.mxu0 %v1662_v63  ;;  %v1755_v63 = vld [vmem:[%s2334_s1 + $0x3d4] ss:$8 sps:$4 sm:$0xff]  }
  0x3f   :  { %1021 = vmatpush1.bf16.msra.mxu1 %v1664_v0  ;;  %v1750_v0 = vld [vmem:[%s2334_s1 + $0x1d0] ss:$8 sps:$4 sm:$0xff]  }
  0x40   :  { %1127 = vmatpush1.bf16.msra.mxu0 %v1665_v1  ;;  %1043 = vmatprep.subr.bf16.mxu1 %v1671_v2  ;;  %v1753_v1 = vld [vmem:[%s2334_s1 + $0x3d0] ss:$8 sps:$4 sm:$0xff]   ;;  %v1763_v2 = vld [vmem:[%s2334_s1 + $0x1e4] ss:$8 sps:$4 sm:$0xff]  }
  0x41   :  { %1149 = vmatprep.subr.bf16.mxu0 %v1677_v3  ;;  %v1767_v3 = vld [vmem:[%s2334_s1 + $0x3e4] ss:$8 sps:$4 sm:$0xff]  }
  0x42   :  { %1023 = vmatmul.mubr.bf16.vlgmr.msra.gmra.mrb[0].mxu1 %v1666_v4  ;;  %v1761_v4 = vld [vmem:[%s2334_s1 + $0x1e0] ss:$8 sps:$4 sm:$0xff]  }
  0x43   :  { %1129 = vmatmul.mubr.bf16.vlgmr.msra.gmra.mrb[0].mxu0 %v1672_v6  ;;  %1044 = vmatpush1.bf16.msra.mxu1 %v1669_v5  ;;  %v1765_v5 = vld [vmem:[%s2334_s1 + $0x3e0] ss:$8 sps:$4 sm:$0xff]   ;;  %v1770_v6 = vld [vmem:[%s2334_s1 + $0x1f4] ss:$8 sps:$4 sm:$0xff]  }
  0x44   :  { %1150 = vmatpush1.bf16.msra.mxu0 %v1675_v7  ;;  %1045 = vmatprep.subr.bf16.mxu1 %v1680_v8  ;;  %v1773_v7 = vld [vmem:[%s2334_s1 + $0x3f4] ss:$8 sps:$4 sm:$0xff]   ;;  %v1768_v8 = vld [vmem:[%s2334_s1 + $0x1f0] ss:$8 sps:$4 sm:$0xff]  }
  0x45   :  { %1151 = vmatprep.subr.bf16.mxu0 %v1683_v9  ;;  %1032 = vmatprep.mubr.bf16.mxu1 %v1756_v29  ;;  %v1771_v9 = vld [vmem:[%s2334_s1 + $0x3f0] ss:$8 sps:$4 sm:$0xff]   ;;  %v1806_v29 = vld [vmem:[%s2334_s1 + $0x464] ss:$8 sps:$4 sm:$0xff]  }
  0x46   :  { %1138 = vmatprep.mubr.bf16.mxu0 %v1758_v30  ;;  %v1804_v30 = vld [vmem:[%s2334_s1 + $0x460] ss:$8 sps:$4 sm:$0xff]  }
  0x47   :  { %1046 = vmatpush1.bf16.msra.mxu1 %v1678_v10  ;;  %v1782_v10 = vld [vmem:[%s2334_s1 + $0x404] ss:$8 sps:$4 sm:$0xff]  }
  0x48   :  { %1152 = vmatpush1.bf16.msra.mxu0 %v1681_v11  ;;  %1047 = vmatprep.subr.bf16.mxu1 %v1686_v12  ;;  %v1774_v11 = vld [vmem:[%s2335_s0 + $0x8] ss:$36 sps:$4 sm:$0xff]   ;;  %v1777_v12 = vld [vmem:[%s2335_s0 + $0x18] ss:$36 sps:$4 sm:$0xff]  }
  0x49   :  { %1153 = vmatprep.subr.bf16.mxu0 %v1689_v13  ;;  %v1780_v13 = vld [vmem:[%s2334_s1 + $0x400] ss:$8 sps:$4 sm:$0xff]  }
  0x4a   :  { %1033 = vmatmul.mubr.bf16.gmra.mrb[4].mxu1 %v1760_v31  ;;  %v1809_v31 = vld [vmem:[%s2334_s1 + $0x474] ss:$8 sps:$4 sm:$0xff]  }
  0x4b   :  { %1048 = vmatpush1.bf16.msra.mxu1 %v1684_v14  ;;  %1139 = vmatmul.mubr.bf16.gmra.mrb[4].mxu0 %v1764_v33  ;;  %v1785_v14 = vld [vmem:[%s2334_s1 + $0x414] ss:$8 sps:$4 sm:$0xff]   ;;  %v1810_v33 = vld [vmem:[%s2335_s0 + $0x20] ss:$36 sps:$4 sm:$0xff]  }
  0x4c   :  { %1154 = vmatpush1.bf16.msra.mxu0 %v1687_v15  ;;  %1049 = vmatprep.subr.bf16.mxu1 %v1692_v16  ;;  %v1786_v15 = vld [vmem:[%s2335_s0 + $0x54] ss:$36 sps:$4 sm:$0xff]   ;;  %v1788_v16 = vld [vmem:[%s2335_s0 + $0x64] ss:$36 sps:$4 sm:$0xff]  }
  0x4d   :  { %1155 = vmatprep.subr.bf16.mxu0 %v1695_v17  ;;  %1075 = vmatprep.mubr.bf16.mxu1 %v1776_v41  ;;  %v1783_v17 = vld [vmem:[%s2334_s1 + $0x410] ss:$8 sps:$4 sm:$0xff]  }
  0x4e   :  { %1181 = vmatprep.mubr.bf16.mxu0 %v1779_v43 }
  0x4f   :  { %1050 = vmatpush1.bf16.msra.mxu1 %v1690_v18  ;;  %v1794_v18 = vld [vmem:[%s2334_s1 + $0x424] ss:$8 sps:$4 sm:$0xff]  }
  0x50   :  { %1156 = vmatpush1.bf16.msra.mxu0 %v1693_v19  ;;  %1051 = vmatprep.subr.bf16.mxu1 %v1698_v20  ;;  %v1790_v19 = vld [vmem:[%s2335_s0 + $0x50] ss:$36 sps:$4 sm:$0xff]   ;;  %v1791_v20 = vld [vmem:[%s2335_s0 + $0x60] ss:$36 sps:$4 sm:$0xff]  }
  0x51   :  { %1157 = vmatprep.subr.bf16.mxu0 %v1701_v21  ;;  %v1792_v21 = vld [vmem:[%s2334_s1 + $0x420] ss:$8 sps:$4 sm:$0xff]  }
  0x53   :  { %1052 = vmatpush1.bf16.msra.mxu1 %v1696_v22  ;;  %v1797_v22 = vld [vmem:[%s2334_s1 + $0x434] ss:$8 sps:$4 sm:$0xff]  }
  0x54   :  { %1158 = vmatpush1.bf16.msra.mxu0 %v1699_v23  ;;  %1053 = vmatprep.subr.bf16.mxu1 %v1704_v24  ;;  %v1795_v23 = vld [vmem:[%s2334_s1 + $0x430] ss:$8 sps:$4 sm:$0xff]   ;;  %v1800_v24 = vld [vmem:[%s2334_s1 + $0x444] ss:$8 sps:$4 sm:$0xff]  }
  0x55   :  { %1159 = vmatprep.subr.bf16.mxu0 %v1707_v25  ;;  %v1812_v25 = vmov 0  }
  0x57   :  { %1054 = vmatpush1.bf16.msra.mxu1 %v1702_v26  ;;  %v1798_v26 = vld [vmem:[%s2334_s1 + $0x440] ss:$8 sps:$4 sm:$0xff]  }
  0x58   :  { %1160 = vmatpush1.bf16.msra.mxu0 %v1705_v27  ;;  %1055 = vmatprep.subr.bf16.mxu1 %v1710_v28  ;;  %v1803_v27 = vld [vmem:[%s2334_s1 + $0x454] ss:$8 sps:$4 sm:$0xff]   ;;  %v1801_v28 = vld [vmem:[%s2334_s1 + $0x450] ss:$8 sps:$4 sm:$0xff]  }
  0x59   :  { %1161 = vmatprep.subr.bf16.mxu0 %v1713_v32  ;;  %v1807_v32 = vld [vmem:[%s2334_s1 + $0x470] ss:$8 sps:$4 sm:$0xff]  }
  0x5b   :  { %1056 = vmatpush1.bf16.msra.mxu1 %v1708_v34  ;;  %v1811_v34 = vld [vmem:[%s2335_s0 + $0x68] ss:$36 sps:$4 sm:$0xff]  }
  0x5c   :  { %1162 = vmatpush1.bf16.msra.mxu0 %v1711_v35  ;;  %1057 = vmatprep.subr.bf16.mxu1 %v1716_v36 }
  0x5d   :  { %1163 = vmatprep.subr.bf16.mxu0 %v1719_v37 }
  0x5f   :  { %1058 = vmatpush1.bf16.msra.mxu1 %v1714_v38 }
  0x60   :  { %1164 = vmatpush1.bf16.msra.mxu0 %v1717_v39  ;;  %1059 = vmatprep.subr.bf16.mxu1 %v1722_v40 }
  0x61   :  { %1165 = vmatprep.subr.bf16.mxu0 %v1725_v42 }
  0x63   :  { %1060 = vmatpush1.bf16.msra.mxu1 %v1720_v44 }
  0x64   :  { %1166 = vmatpush1.bf16.msra.mxu0 %v1723_v45  ;;  %1061 = vmatprep.subr.bf16.mxu1 %v1728_v46 }
  0x65   :  { %1167 = vmatprep.subr.bf16.mxu0 %v1731_v47 }
  0x67   :  { %1062 = vmatpush1.bf16.msra.mxu1 %v1726_v48 }
  0x68   :  { %1168 = vmatpush1.bf16.msra.mxu0 %v1729_v49  ;;  %1063 = vmatprep.subr.bf16.mxu1 %v1734_v50 }
  0x69   :  { %1169 = vmatprep.subr.bf16.mxu0 %v1737_v51 }
  0x6b   :  { %1064 = vmatpush1.bf16.msra.mxu1 %v1732_v52 }
  0x6c   :  { %1170 = vmatpush1.bf16.msra.mxu0 %v1735_v53  ;;  %1065 = vmatprep.subr.bf16.mxu1 %v1740_v54 }
  0x6d   :  { %1171 = vmatprep.subr.bf16.mxu0 %v1743_v55 }
  0x6f   :  { %1066 = vmatpush1.bf16.msra.mxu1 %v1738_v56 }
  0x70   :  { %1172 = vmatpush1.bf16.msra.mxu0 %v1741_v57  ;;  %1067 = vmatprep.subr.bf16.mxu1 %v1746_v58 }
  0x71   :  { %1173 = vmatprep.subr.bf16.mxu0 %v1749_v59 }
  0x73   :  { %1068 = vmatpush1.bf16.msra.mxu1 %v1744_v60 }
  0x74   :  { %1174 = vmatpush1.bf16.msra.mxu0 %v1747_v61  ;;  %1069 = vmatprep.subr.bf16.mxu1 %v1752_v62 }
  0x75   :  { %1175 = vmatprep.subr.bf16.mxu0 %v1755_v63 }
  0x77   :  { %1070 = vmatpush1.bf16.msra.mxu1 %v1750_v0 }
  0x78   :  { %1176 = vmatpush1.bf16.msra.mxu0 %v1753_v1  ;;  %1071 = vmatprep.subr.bf16.mxu1 %v1763_v2 }
  0x79   :  { %1177 = vmatprep.subr.bf16.mxu0 %v1767_v3 }
  0x7b   :  { %1072 = vmatpush1.bf16.msra.mxu1 %v1761_v4 }
  0x7c   :  { %1178 = vmatpush1.bf16.msra.mxu0 %v1765_v5  ;;  %1073 = vmatprep.subr.bf16.mxu1 %v1770_v6 }
  0x7d   :  { %1179 = vmatprep.subr.bf16.mxu0 %v1773_v7 }
  0x7f   :  { %1074 = vmatpush1.bf16.msra.mxu1 %v1768_v8 }
  0x80   :  { %1180 = vmatpush1.bf16.msra.mxu0 %v1771_v9  ;;  %1521 = vmatprep.subr.bf16.mxu1 %v1782_v10 }
  0x81   :  { %1202 = vmatprep.subr.bf16.mxu0 %v1782_v10 }
  0x82   :  { %1076 = vmatmul.mubr.bf16.vlgmr.msra.gmra.mrb[0].mxu1 %v1774_v11 }
  0x83   :  { %1182 = vmatmul.mubr.bf16.vlgmr.msra.gmra.mrb[0].mxu0 %v1777_v12  ;;  %1529 = vmatpush1.bf16.msra.mxu1 %v1780_v13 }
  0x84   :  { %1203 = vmatpush1.bf16.msra.mxu0 %v1780_v13  ;;  %1522 = vmatprep.subr.bf16.mxu1 %v1785_v14 }
  0x85   :  { %1204 = vmatprep.subr.bf16.mxu0 %v1785_v14  ;;  %1085 = vmatprep.mubr.bf16.mxu1 %v1786_v15 }
  0x86   :  { %1191 = vmatprep.mubr.bf16.mxu0 %v1788_v16 }
  0x87   :  { %1530 = vmatpush1.bf16.msra.mxu1 %v1783_v17 }
  0x88   :  { %1205 = vmatpush1.bf16.msra.mxu0 %v1783_v17  ;;  %1523 = vmatprep.subr.bf16.mxu1 %v1794_v18 }
  0x89   :  { %1206 = vmatprep.subr.bf16.mxu0 %v1794_v18 }
  0x8a   :  { %1086 = vmatmul.mubr.bf16.gmra.mrb[4].mxu1 %v1790_v19 }
  0x8b   :  { %1192 = vmatmul.mubr.bf16.gmra.mrb[4].mxu0 %v1791_v20  ;;  %1531 = vmatpush1.bf16.msra.mxu1 %v1792_v21 }
  0x8c   :  { %1207 = vmatpush1.bf16.msra.mxu0 %v1792_v21  ;;  %1524 = vmatprep.subr.bf16.mxu1 %v1797_v22 }
  0x8d   :  { %1208 = vmatprep.subr.bf16.mxu0 %v1797_v22  ;;  %1234 = vmatprep.mubr.bf16.mxu0 %v1812_v25 }
  0x8e   :  { %1244 = vmatprep.mubr.bf16.mxu1 %v1812_v25 }
  0x8f   :  { %1532 = vmatpush1.bf16.msra.mxu1 %v1795_v23 }
  0x90   :  { %1209 = vmatpush1.bf16.msra.mxu0 %v1795_v23  ;;  %1525 = vmatprep.subr.bf16.mxu1 %v1800_v24 }
  0x91   :  { %1210 = vmatprep.subr.bf16.mxu0 %v1800_v24 }
  0x93   :  { %1533 = vmatpush1.bf16.msra.mxu1 %v1798_v26 }
  0x94   :  { %1211 = vmatpush1.bf16.msra.mxu0 %v1798_v26  ;;  %1526 = vmatprep.subr.bf16.mxu1 %v1803_v27 }
  0x95   :  { %1212 = vmatprep.subr.bf16.mxu0 %v1803_v27 }
  0x97   :  { %1534 = vmatpush1.bf16.msra.mxu1 %v1801_v28 }
  0x98   :  { %1213 = vmatpush1.bf16.msra.mxu0 %v1801_v28  ;;  %1527 = vmatprep.subr.bf16.mxu1 %v1806_v29 }
  0x99   :  { %1214 = vmatprep.subr.bf16.mxu0 %v1806_v29 }
  0x9b   :  { %1535 = vmatpush1.bf16.msra.mxu1 %v1804_v30 }
  0x9c   :  { %1215 = vmatpush1.bf16.msra.mxu0 %v1804_v30  ;;  %1528 = vmatprep.subr.bf16.mxu1 %v1809_v31 }
  0x9d   :  { %1216 = vmatprep.subr.bf16.mxu0 %v1809_v31 }
  0x9f   :  { %1536 = vmatpush1.bf16.msra.mxu1 %v1807_v32 }
  0xa0   :  { %1217 = vmatpush1.bf16.msra.mxu0 %v1807_v32 }
  0xa2   :  { %1245 = vmatmul.mubr.bf16.vlgmr.msra.gmra.mrb[8].mxu1 %v1811_v34 }
  0xa3   :  { %1235 = vmatmul.mubr.bf16.vlgmr.msra.gmra.mrb[0].mxu0 %v1810_v33 }
 0x155   :  { %v1077_v35 = vpop.f32.mrb[0].mxu1 }
 0x156   :  { %v1079_v36 = vpop.f32.mrb[1].mxu1 }
 0x157   :  { %v1081_v37 = vpop.f32.mrb[2].mxu1 }
 0x158   :  { %v1083_v38 = vpop.f32.mrb[3].mxu1 }
 0x15d   :  { %v1087_v39 = vpop.f32.mrb[4].mxu1 }
 0x15e   :  { %v1193_v40 = vpop.f32.mrb[4].mxu0  ;;  %v1089_v42 = vpop.f32.mrb[5].mxu1 }
 0x15f   :  { %v1541_v41 = vadd.f32 %v1193_v40, %v1087_v39  ;;  %v1195_v43 = vpop.f32.mrb[5].mxu0  ;;  %v1091_v45 = vpop.f32.mrb[6].mxu1 }
 0x160   :  { %v1543_v44 = vadd.f32 %v1195_v43, %v1089_v42  ;;  %v1197_v46 = vpop.f32.mrb[6].mxu0  ;;  %v1093_v48 = vpop.f32.mrb[7].mxu1 }
 0x161   :  { %v1545_v47 = vadd.f32 %v1197_v46, %v1091_v45  ;;  %v1199_v49 = vpop.f32.mrb[7].mxu0 }
 0x162   :  { %v1547_v50 = vadd.f32 %v1199_v49, %v1093_v48 }
 0x175   :  { %v1246_v52 = vpop.f32.mrb[8].mxu1 }
 0x176   :  { %v1236_v51 = vpop.f32.mrb[0].mxu0  ;;  %v1542_v54 = vadd.f32 %v1541_v41, %v1246_v52  ;;  %v1248_v56 = vpop.f32.mrb[9].mxu1 }
 0x177   :  { %v1537_v53 = vadd.f32 %v1236_v51, %v1077_v35  ;;  %v1238_v55 = vpop.f32.mrb[1].mxu0  ;;  %v1544_v58 = vadd.f32 %v1543_v44, %v1248_v56  ;;  %v1250_v60 = vpop.f32.mrb[10].mxu1 }
 0x178   :  { %v1538_v57 = vadd.f32 %v1238_v55, %v1079_v36  ;;  %v1240_v59 = vpop.f32.mrb[2].mxu0  ;;  %v1546_v62 = vadd.f32 %v1545_v47, %v1250_v60  ;;  %v1252_v0 = vpop.f32.mrb[11].mxu1  ;;  %v1305_v7 = vmul.f32 %v1542_v54, %v1542_v54 }
 0x179   :  { %v1539_v61 = vadd.f32 %v1240_v59, %v1081_v37  ;;  %v1242_v63 = vpop.f32.mrb[3].mxu0  ;;  %v1519_v2 = vpack.c.bf16 %v1544_v58, %v1542_v54  ;;  %v1301_v3 = vmul.f32 %v1537_v53, %v1537_v53  ;;  %v1548_v8 = vadd.f32 %v1547_v50, %v1252_v0 }
 0x17a   :  { %v1517_v1 = vpack.c.bf16 %v1538_v57, %v1537_v53  ;;  %v1540_v6 = vadd.f32 %v1242_v63, %v1083_v38  ;;  %v1302_v13 = vmul.f32 %v1538_v57, %v1538_v57  ;;  %v1307_v17 = vmul.f32 %v1546_v62, %v1546_v62 }
 0x17b   :  { %v1283_v4 = vadd.f32 %v1539_v61, %v1537_v53  ;;  %v1303_v5 = vmul.f32 %v1539_v61, %v1539_v61  ;;  %1281 = vst [vmem:[%s2336_s2 + $0x10] sm:$0xff] %v1519_v2  ;;  %v1520_v15 = vpack.c.bf16 %v1548_v8, %v1546_v62  ;;  %v1306_v20 = vmul.f32 %v1544_v58, %v1544_v58 }
 0x17c   :  { %1279 = vst [vmem:[%s2336_s2] sm:$0xff] %v1517_v1  ;;  %v1518_v11 = vpack.c.bf16 %v1540_v6, %v1539_v61  ;;  %v1292_v12 = vadd.f32 %v1540_v6, %v1538_v57  ;;  %v1304_v14 = vmul.f32 %v1540_v6, %v1540_v6  ;;  %v1308_v25 = vmul.f32 %v1548_v8, %v1548_v8 }
 0x17d   :  { %v1309_v9 = vadd.f32 %v1303_v5, %v1301_v3  ;;  %v1284_v10 = vadd.f32 %v1542_v54, %v1283_v4  ;;  %1282 = vst [vmem:[%s2336_s2 + $0x18] sm:$0xff] %v1520_v15 }
 0x17e   :  { %1280 = vst [vmem:[%s2336_s2 + $0x8] sm:$0xff] %v1518_v11  ;;  %v1293_v19 = vadd.f32 %v1544_v58, %v1292_v12  ;;  %v1318_v21 = vadd.f32 %v1304_v14, %v1302_v13 }
 0x17f   :  { %v1285_v16 = vadd.f32 %v1546_v62, %v1284_v10  ;;  %v1310_v18 = vadd.f32 %v1309_v9, %v1305_v7 }
 0x180   :  { %v1294_v24 = vadd.f32 %v1548_v8, %v1293_v19  ;;  %v1319_v26 = vadd.f32 %v1318_v21, %v1306_v20 }
 0x181   :  { %v1286_v22 = vrot.slane %v1285_v16, 4  ;;  %v1311_v23 = vadd.f32 %v1310_v18, %v1307_v17 }
 0x182   :  { %v1295_v29 = vrot.slane %v1294_v24, 4  ;;  %v1320_v30 = vadd.f32 %v1319_v26, %v1308_v25 }
 0x183   :  { %v1287_v27 = vadd.f32 %v1286_v22, %v1285_v16  ;;  %v1312_v28 = vrot.slane %v1311_v23, 4 }
 0x184   :  { %v1296_v33 = vadd.f32 %v1295_v29, %v1294_v24  ;;  %v1321_v34 = vrot.slane %v1320_v30, 4 }
 0x185   :  { %v1288_v31 = vrot.slane %v1287_v27, 2  ;;  %v1313_v32 = vadd.f32 %v1312_v28, %v1311_v23 }
 0x186   :  { %v1297_v37 = vrot.slane %v1296_v33, 2  ;;  %v1322_v38 = vadd.f32 %v1321_v34, %v1320_v30 }
 0x187   :  { %v1289_v35 = vadd.f32 %v1288_v31, %v1287_v27  ;;  %v1314_v36 = vrot.slane %v1313_v32, 2 }
 0x188   :  { %v1298_v41 = vadd.f32 %v1297_v37, %v1296_v33  ;;  %v1323_v42 = vrot.slane %v1322_v38, 2 }
 0x189   :  { %v1290_v39 = vrot.slane %v1289_v35, 1  ;;  %v1315_v40 = vadd.f32 %v1314_v36, %v1313_v32 }
 0x18a   :  { %v1299_v44 = vrot.slane %v1298_v41, 1  ;;  %v1324_v45 = vadd.f32 %v1323_v42, %v1322_v38 }
 0x18b   :  { %v1316_v43 = vrot.slane %v1315_v40, 1  ;;  %v1291_v46 = vadd.f32 %v1290_v39, %v1289_v35 }
 0x18c   :  { %v1325_v48 = vrot.slane %v1324_v45, 1  ;;  %v1300_v50 = vadd.f32 %v1299_v44, %v1298_v41 }
 0x18d   :  { %v1317_v47 = vadd.f32 %v1316_v43, %v1315_v40 }
 0x18e   :  { %v1326_v51 = vadd.f32 %v1325_v48, %v1324_v45 }
 0x18f   :  { %v1328_v49 = vsel %vm1327_vm0, %v1291_v46, %v1317_v47 }
 0x190   :  { %v1329_v52 = vsel %vm1327_vm0, %v1300_v50, %v1326_v51 }
 0x191   :  { %v1332_v53 = vcombine.low %v1328_v49, %v1329_v52 }
 0x193   :  { %1516 = vst.sshfl [vmem:[%s2337_s3] sm:$0x33 pattern:$0x76325410] %v1332_v53 }

// kernel: encoder_forward.15
= control target key start
LH: loop header
LB: loop body
LE: loop exit
PB: predicated region body
PF: predicated region fallthrough
CT: control target
= control target key end

     0   :  { %v28_v0 = vlaneseq  ;;  %s164_s0 = inlined_call_operand.vmem [shape: bf16[32,256], index: 0, kind: input, shape index: {}]   ;;  %s165_s1 = inlined_call_operand.vmem [shape: f32[1,256], index: 1, kind: input, shape index: {}]   ;;  %s166_s2 = inlined_call_operand.vmem [shape: f32[1,256], index: 2, kind: input, shape index: {}]   ;;  %s167_s3 = inlined_call_operand.vmem [shape: bf16[32,256], index: 3, kind: output, shape index: {}]  }
   0x1   :  { %v14_v1 = vld [vmem:[%s164_s0] sm:$0xff]  ;;  %v15_v3 = vld [vmem:[%s164_s0 + $0x8] sm:$0xff]  ;;  %v16_v4 = vld [vmem:[%s164_s0 + $0x10] sm:$0xff] }
   0x2   :  { %v29_v2 = vshrl.u32 %v28_v0, 7  ;;  %v17_v5 = vld [vmem:[%s164_s0 + $0x18] sm:$0xff]  ;;  %v18_v6 = vunpack.c.l.bf16 %v14_v1  ;;  %v19_v7 = vunpack.c.h.bf16 %v14_v1  ;;  %v26_v8 = vld [vmem:[%s165_s1] sm:$0x3]  ;;  %v20_v12 = vunpack.c.l.bf16 %v15_v3 }
   0x3   :  { %v46_v9 = vld [vmem:[%s166_s2] sm:$0x3]  ;;  %v21_v13 = vunpack.c.h.bf16 %v15_v3  ;;  %v22_v14 = vunpack.c.l.bf16 %v16_v4  ;;  %v23_v15 = vunpack.c.h.bf16 %v16_v4  ;;  %v24_v16 = vunpack.c.l.bf16 %v17_v5 }
   0x4   :  { %v30_v10 = vsub.s32 0, %v29_v2  ;;  %v34_v11 = vsub.s32 1, %v29_v2  ;;  %v25_v17 = vunpack.c.h.bf16 %v17_v5 }
   0x6   :  { %v31_v18 = vrot.slane %v26_v8, %v30_v10  ;;  %v35_v19 = vrot.slane %v26_v8, %v34_v11  ;;  %v51_v20 = vrot.slane %v46_v9, %v30_v10  ;;  %v55_v21 = vrot.slane %v46_v9, %v34_v11 }
   0x8   :  { %v38_v22 = vmul.f32 %v31_v18, %v18_v6  ;;  %v39_v23 = vmul.f32 %v35_v19, %v19_v7  ;;  %v40_v24 = vmul.f32 %v31_v18, %v20_v12  ;;  %v41_v25 = vmul.f32 %v35_v19, %v21_v13 }
   0x9   :  { %v42_v26 = vmul.f32 %v31_v18, %v22_v14  ;;  %v43_v27 = vmul.f32 %v35_v19, %v23_v15  ;;  %v44_v28 = vmul.f32 %v31_v18, %v24_v16  ;;  %v45_v29 = vmul.f32 %v35_v19, %v25_v17 }
   0xa   :  { %v58_v30 = vadd.f32 %v51_v20, %v38_v22  ;;  %v59_v31 = vadd.f32 %v55_v21, %v39_v23  ;;  %v60_v32 = vadd.f32 %v51_v20, %v40_v24  ;;  %v61_v33 = vadd.f32 %v55_v21, %v41_v25 }
   0xb   :  { %v62_v34 = vadd.f32 %v51_v20, %v42_v26  ;;  %v63_v35 = vadd.f32 %v55_v21, %v43_v27  ;;  %v64_v36 = vadd.f32 %v51_v20, %v44_v28  ;;  %v65_v37 = vadd.f32 %v55_v21, %v45_v29 }
   0xc   :  { %v66_v38 = vmax.f32 %v58_v30, 0.0  ;;  %v67_v39 = vmax.f32 %v59_v31, 0.0  ;;  %v68_v40 = vmax.f32 %v60_v32, 0.0  ;;  %v69_v41 = vmax.f32 %v61_v33, 0.0 }
   0xd   :  { %v70_v42 = vmax.f32 %v62_v34, 0.0  ;;  %v71_v43 = vmax.f32 %v63_v35, 0.0  ;;  %v72_v44 = vmax.f32 %v64_v36, 0.0  ;;  %v73_v45 = vmax.f32 %v65_v37, 0.0 }
   0xe   :  { %v110_v46 = vpack.c.bf16 %v67_v39, %v66_v38  ;;  %v111_v47 = vpack.c.bf16 %v69_v41, %v68_v40 }
   0xf   :  { %v112_v48 = vpack.c.bf16 %v71_v43, %v70_v42  ;;  %v113_v49 = vpack.c.bf16 %v73_v45, %v72_v44 }
  0x10   :  { %98 = vst [vmem:[%s167_s3] sm:$0xff] %v110_v46  ;;  %99 = vst [vmem:[%s167_s3 + $0x8] sm:$0xff] %v111_v47 }
  0x11   :  { %100 = vst [vmem:[%s167_s3 + $0x10] sm:$0xff] %v112_v48  ;;  %101 = vst [vmem:[%s167_s3 + $0x18] sm:$0xff] %v113_v49 }

</bundles_post_ra>
